<compile_context>
chip_gen: v7x
topology: tpu7x:2x2x1
jax: 0.10.0
libtpu: 0.0.40
codegen_flags: <defaults>
</compile_context>

<pallas_src>
import functools

import jax
import jax.numpy as jnp
from jax.experimental import pallas as pl
from jax.experimental.pallas import tpu as pltpu

NC = 1
NDF = 64
BN_EPS = 1e-5
LANE = 128
TILE_M_MAX = 512  # rows per M-tile; fits v7x's 64 MiB VMEM comfortably


def _round_up(x, m):
    return (x + m - 1) // m * m


# ----------------------------- Pallas kernel ------------------------------- #
def _fused_conv_matmul_kernel(a_ref, b_ref, scale_ref, bias_ref, o_ref, *, act):
    # a_ref: (TILE_M, K) bf16 im2col patches; b_ref: (K, Cout) bf16 weights.
    acc = jnp.dot(a_ref[...], b_ref[...], preferred_element_type=jnp.float32)
    # Folded BatchNorm affine (identity for layers without BN) -- f32 epilogue.
    y = acc * scale_ref[...] + bias_ref[...]
    if act == "leaky_relu":
        y = jnp.maximum(y, 0.2 * y)
    elif act == "sigmoid":
        y = pl.reciprocal(1.0 + jnp.exp(-y), approx=True)
        y = jnp.clip(y, 0.0, 1.0)
    o_ref[...] = y.astype(o_ref.dtype)


def fused_conv_matmul(patches, w_mat, scale, bias, act, out_dtype):
    """patches:(M,K) bf16, w_mat:(K,Cout) bf16, scale/bias:(1,Cout) f32."""
    m, k = patches.shape
    _, cout = w_mat.shape

    # Pad M to a clean multiple-of-8 tile grid.
    m_pad = _round_up(m, 8)
    tile_m = min(TILE_M_MAX, m_pad)
    m_pad = _round_up(m_pad, tile_m)
    if m_pad != m:
        patches = jnp.pad(patches, ((0, m_pad - m), (0, 0)))
    grid_m = m_pad // tile_m

    flops = 2 * m_pad * k * cout
    transcendentals = m_pad * cout if act == "sigmoid" else 0
    bytes_accessed = (m_pad * k * 2 + k * cout * 2      # bf16 patches + weights
                      + 2 * cout * 4                    # scale + bias (f32)
                      + m_pad * cout * jnp.dtype(out_dtype).itemsize)

    kernel = functools.partial(_fused_conv_matmul_kernel, act=act)
    out = pl.pallas_call(
        kernel,
        out_shape=jax.ShapeDtypeStruct((m_pad, cout), out_dtype),
        grid=(grid_m,),
        in_specs=[
            pl.BlockSpec((tile_m, k), lambda i: (i, 0)),      # streamed over M
            pl.BlockSpec((k, cout), lambda i: (0, 0)),        # VMEM-resident
            pl.BlockSpec((1, cout), lambda i: (0, 0)),        # VMEM-resident
            pl.BlockSpec((1, cout), lambda i: (0, 0)),        # VMEM-resident
        ],
        out_specs=pl.BlockSpec((tile_m, cout), lambda i: (i, 0)),
        compiler_params=pltpu.CompilerParams(
            dimension_semantics=("parallel",),
            vmem_limit_bytes=64 * 1024 * 1024,
        ),
        cost_estimate=pl.CostEstimate(
            flops=int(flops),
            transcendentals=int(transcendentals),
            bytes_accessed=int(bytes_accessed),
        ),
    )(patches, w_mat, scale, bias)
    return out[:m]


# ------------------------------ JAX glue ------------------------------------ #
def im2col_nhwc(x, k=4, s=2, p=1):
    """x: (N, H, W, C) -> (N*Ho*Wo, k*k*C), inner ordering (kh, kw, C)."""
    n, h, w, c = x.shape
    ho = (h + 2 * p - k) // s + 1
    wo = (w + 2 * p - k) // s + 1
    xp = jnp.pad(x, ((0, 0), (p, p), (p, p), (0, 0)))
    cols = []
    for di in range(k):
        for dj in range(k):
            cols.append(xp[:, di:di + s * ho:s, dj:dj + s * wo:s, :])
    pt = jnp.stack(cols, axis=3)                 # (N, Ho, Wo, k*k, C)
    return pt.reshape(n * ho * wo, k * k * c), ho, wo


def conv_block(x_nhwc, weight, scale, bias, act, out_dtype=jnp.bfloat16):
    """Conv2d(4,2,1,bias=False) + affine + activation. NHWC in / NHWC out.

    Handles channel padding: the activation may carry more channels than the
    PyTorch weight's Cin (lane padding from the previous layer) -> pad the
    weight's Cin with zeros.  Cout is padded to a multiple of 128 for
    lane-dense stores; padded output channels are exactly zero (or dropped at
    the very end), so they are safe to carry into the next layer.
    """
    n = x_nhwc.shape[0]
    c_act = x_nhwc.shape[-1]
    cout, cin, kh, kw = weight.shape
    if c_act != cin:                              # absorb lane padding into K
        weight = jnp.pad(weight, ((0, 0), (0, c_act - cin), (0, 0), (0, 0)))
    cout_p = _round_up(cout, LANE)

    # (Cout, Cin, kh, kw) -> (kh, kw, Cin, Cout) -> (kh*kw*Cin, Cout); matches
    # the im2col (kh, kw, C) patch ordering.
    w_mat = weight.transpose(2, 3, 1, 0).reshape(kh * kw * c_act, cout)
    if cout_p != cout:
        w_mat = jnp.pad(w_mat, ((0, 0), (0, cout_p - cout)))
        scale = jnp.pad(scale, (0, cout_p - cout))
        bias = jnp.pad(bias, (0, cout_p - cout))

    patches, ho, wo = im2col_nhwc(x_nhwc)
    out = fused_conv_matmul(
        patches.astype(jnp.bfloat16),
        w_mat.astype(jnp.bfloat16),
        scale.reshape(1, cout_p).astype(jnp.float32),
        bias.reshape(1, cout_p).astype(jnp.float32),
        act,
        out_dtype,
    )
    return out.reshape(n, ho, wo, cout_p), cout


def fold_bn(gamma, beta, mean, var):
    scale = gamma / jnp.sqrt(var + BN_EPS)
    return scale, beta - mean * scale


def init_params(key):
    def conv_w(kk, cout, cin):
        return 0.02 * jax.random.normal(kk, (cout, cin, 4, 4), jnp.float32)

    def bn(keys, c):
        gamma = 1.0 + 0.1 * jax.random.normal(keys[0], (c,), jnp.float32)
        beta = 0.1 * jax.random.normal(keys[1], (c,), jnp.float32)
        mean = 0.05 * jax.random.normal(keys[2], (c,), jnp.float32)
        var = 0.5 + jnp.abs(jax.random.normal(keys[3], (c,), jnp.float32))
        return gamma, beta, mean, var

    k = jax.random.split(key, 12)
    return {
        "w1": conv_w(k[0], NDF, NC),
        "w2": conv_w(k[1], NDF * 2, NDF),
        "w3": conv_w(k[2], NDF * 4, NDF * 2),
        "w4": conv_w(k[3], 1, NDF * 4),
        "bn2": bn(k[4:8], NDF * 2),
        "bn3": bn(k[8:12], NDF * 4),
    }


def discriminator_forward(x_nchw, params):
    x = jnp.transpose(x_nchw, (0, 2, 3, 1))            # NCHW -> NHWC, once
    one1 = jnp.ones((NDF,), jnp.float32)
    zero1 = jnp.zeros((NDF,), jnp.float32)
    x, _ = conv_block(x, params["w1"], one1, zero1, "leaky_relu")        # layer1
    s2, b2 = fold_bn(*params["bn2"])
    x, _ = conv_block(x, params["w2"], s2, b2, "leaky_relu")             # layer2
    s3, b3 = fold_bn(*params["bn3"])
    x, _ = conv_block(x, params["w3"], s3, b3, "leaky_relu")             # layer3
    x, cout = conv_block(x, params["w4"], jnp.ones((1,), jnp.float32),
                         jnp.zeros((1,), jnp.float32), "sigmoid",
                         out_dtype=jnp.float32)                          # output
    x = x[..., :cout]                                   # strip lane padding
    return jnp.transpose(x, (0, 3, 1, 2))               # back to NCHW


if __name__ == "__main__":
    key = jax.random.PRNGKey(0)
    pkey, xkey = jax.random.split(key)
    params = init_params(pkey)
    # NCHW input: batch=2, nc=1, 16x16  ->  output (2, 1, 1, 1)
    x = jax.random.normal(xkey, (2, NC, 16, 16), jnp.float32)
    out = jax.jit(discriminator_forward)(x, params)
    out = jax.block_until_ready(out)
    assert out.shape == (2, 1, 1, 1), out.shape
    assert bool(jnp.all((out >= 0.0) & (out <= 1.0)))
    print("KERNEL_OK")
</pallas_src>

<mosaic_0001>
module attributes {stable_mosaic.version = 11 : i64} {
  func.func @_fused_conv_matmul_kernel(%arg0: i32, %arg1: memref<128x16xbf16, #tpu.memory_space<vmem>>, %arg2: memref<16x128xbf16, #tpu.memory_space<vmem>>, %arg3: memref<1x128xf32, #tpu.memory_space<vmem>>, %arg4: memref<1x128xf32, #tpu.memory_space<vmem>>, %arg5: memref<128x128xbf16, #tpu.memory_space<vmem>>) attributes {dimension_semantics = [#tpu.dimension_semantics<parallel>], iteration_bounds = array<i64: 1>, scalar_prefetch = 0 : i64, scratch_operands = 0 : i64, tpu.core_type = #tpu.core_type<tc>, window_params = [{transform_indices = @transform_0, window_bounds = array<i64: 128, 16>}, {pipeline_mode = #tpu.pipeline_mode<synchronous>, transform_indices = @transform_1, window_bounds = array<i64: 16, 128>}, {pipeline_mode = #tpu.pipeline_mode<synchronous>, transform_indices = @transform_2, window_bounds = array<i64: 1, 128>}, {pipeline_mode = #tpu.pipeline_mode<synchronous>, transform_indices = @transform_3, window_bounds = array<i64: 1, 128>}, {transform_indices = @transform_4, window_bounds = array<i64: 128, 128>}]} {
    %c0 = arith.constant 0 : index
    %c0_0 = arith.constant 0 : index
    %0 = vector.load %arg1[%c0, %c0_0] : memref<128x16xbf16, #tpu.memory_space<vmem>>, vector<128x16xbf16>
    %c0_1 = arith.constant 0 : index
    %c0_2 = arith.constant 0 : index
    %1 = vector.load %arg2[%c0_1, %c0_2] : memref<16x128xbf16, #tpu.memory_space<vmem>>, vector<16x128xbf16>
    %cst = arith.constant dense<0.000000e+00> : vector<128x128xf32>
    %2 = tpu.matmul %0, %1, %cst {dimension_numbers = #tpu.dot_dimension_numbers<[1], [0], [0], [1], [0, 0, 1, 1], [], []>} : vector<128x16xbf16>, vector<16x128xbf16>, vector<128x128xf32> -> vector<128x128xf32>
    %c0_3 = arith.constant 0 : index
    %c0_4 = arith.constant 0 : index
    %3 = vector.load %arg3[%c0_3, %c0_4] : memref<1x128xf32, #tpu.memory_space<vmem>>, vector<1x128xf32>
    %4 = vector.broadcast %3 : vector<1x128xf32> to vector<128x128xf32>
    %5 = arith.mulf %2, %4 : vector<128x128xf32>
    %c0_5 = arith.constant 0 : index
    %c0_6 = arith.constant 0 : index
    %6 = vector.load %arg4[%c0_5, %c0_6] : memref<1x128xf32, #tpu.memory_space<vmem>>, vector<1x128xf32>
    %7 = vector.broadcast %6 : vector<1x128xf32> to vector<128x128xf32>
    %8 = arith.addf %5, %7 : vector<128x128xf32>
    %cst_7 = arith.constant 2.000000e-01 : f32
    %9 = vector.broadcast %cst_7 : f32 to vector<128x128xf32>
    %10 = arith.mulf %9, %8 : vector<128x128xf32>
    %11 = arith.maximumf %8, %10 : vector<128x128xf32>
    %12 = arith.truncf %11 : vector<128x128xf32> to vector<128x128xbf16>
    %c0_8 = arith.constant 0 : index
    %c0_9 = arith.constant 0 : index
    %13 = vector.load %arg5[%c0_8, %c0_9] : memref<128x128xbf16, #tpu.memory_space<vmem>>, vector<128x128xbf16>
    tpu.vector_store %arg5[%c0_8, %c0_9], %12 {strides = array<i32>} : memref<128x128xbf16, #tpu.memory_space<vmem>>, vector<128x128xbf16>,
    return
  }
  func.func @transform_0(%arg0: i32) -> (i32, i32) {
    %c0_i32 = arith.constant 0 : i32
    %c0_i32_0 = arith.constant 0 : i32
    return %arg0, %c0_i32 : i32, i32
  }
  func.func @transform_1(%arg0: i32) -> (i32, i32) {
    %c0_i32 = arith.constant 0 : i32
    %c0_i32_0 = arith.constant 0 : i32
    %c0_i32_1 = arith.constant 0 : i32
    return %c0_i32, %c0_i32_0 : i32, i32
  }
  func.func @transform_2(%arg0: i32) -> (i32, i32) {
    %c0_i32 = arith.constant 0 : i32
    %c0_i32_0 = arith.constant 0 : i32
    %c0_i32_1 = arith.constant 0 : i32
    return %c0_i32, %c0_i32_0 : i32, i32
  }
  func.func @transform_3(%arg0: i32) -> (i32, i32) {
    %c0_i32 = arith.constant 0 : i32
    %c0_i32_0 = arith.constant 0 : i32
    %c0_i32_1 = arith.constant 0 : i32
    return %c0_i32, %c0_i32_0 : i32, i32
  }
  func.func @transform_4(%arg0: i32) -> (i32, i32) {
    %c0_i32 = arith.constant 0 : i32
    %c0_i32_0 = arith.constant 0 : i32
    return %arg0, %c0_i32 : i32, i32
  }
}

module attributes {stable_mosaic.version = 11 : i64} {
  func.func @_fused_conv_matmul_kernel(%arg0: i32, %arg1: memref<32x2048xbf16, #tpu.memory_space<vmem>>, %arg2: memref<2048x128xbf16, #tpu.memory_space<vmem>>, %arg3: memref<1x128xf32, #tpu.memory_space<vmem>>, %arg4: memref<1x128xf32, #tpu.memory_space<vmem>>, %arg5: memref<32x128xbf16, #tpu.memory_space<vmem>>) attributes {dimension_semantics = [#tpu.dimension_semantics<parallel>], iteration_bounds = array<i64: 1>, scalar_prefetch = 0 : i64, scratch_operands = 0 : i64, tpu.core_type = #tpu.core_type<tc>, window_params = [{transform_indices = @transform_0, window_bounds = array<i64: 32, 2048>}, {pipeline_mode = #tpu.pipeline_mode<synchronous>, transform_indices = @transform_1, window_bounds = array<i64: 2048, 128>}, {pipeline_mode = #tpu.pipeline_mode<synchronous>, transform_indices = @transform_2, window_bounds = array<i64: 1, 128>}, {pipeline_mode = #tpu.pipeline_mode<synchronous>, transform_indices = @transform_3, window_bounds = array<i64: 1, 128>}, {transform_indices = @transform_4, window_bounds = array<i64: 32, 128>}]} {
    %c0 = arith.constant 0 : index
    %c0_0 = arith.constant 0 : index
    %0 = vector.load %arg1[%c0, %c0_0] : memref<32x2048xbf16, #tpu.memory_space<vmem>>, vector<32x2048xbf16>
    %c0_1 = arith.constant 0 : index
    %c0_2 = arith.constant 0 : index
    %1 = vector.load %arg2[%c0_1, %c0_2] : memref<2048x128xbf16, #tpu.memory_space<vmem>>, vector<2048x128xbf16>
    %cst = arith.constant dense<0.000000e+00> : vector<32x128xf32>
    %2 = tpu.matmul %0, %1, %cst {dimension_numbers = #tpu.dot_dimension_numbers<[1], [0], [0], [1], [0, 0, 1, 1], [], []>} : vector<32x2048xbf16>, vector<2048x128xbf16>, vector<32x128xf32> -> vector<32x128xf32>
    %c0_3 = arith.constant 0 : index
    %c0_4 = arith.constant 0 : index
    %3 = vector.load %arg3[%c0_3, %c0_4] : memref<1x128xf32, #tpu.memory_space<vmem>>, vector<1x128xf32>
    %4 = vector.broadcast %3 : vector<1x128xf32> to vector<32x128xf32>
    %5 = arith.mulf %2, %4 : vector<32x128xf32>
    %c0_5 = arith.constant 0 : index
    %c0_6 = arith.constant 0 : index
    %6 = vector.load %arg4[%c0_5, %c0_6] : memref<1x128xf32, #tpu.memory_space<vmem>>, vector<1x128xf32>
    %7 = vector.broadcast %6 : vector<1x128xf32> to vector<32x128xf32>
    %8 = arith.addf %5, %7 : vector<32x128xf32>
    %cst_7 = arith.constant 2.000000e-01 : f32
    %9 = vector.broadcast %cst_7 : f32 to vector<32x128xf32>
    %10 = arith.mulf %9, %8 : vector<32x128xf32>
    %11 = arith.maximumf %8, %10 : vector<32x128xf32>
    %12 = arith.truncf %11 : vector<32x128xf32> to vector<32x128xbf16>
    %c0_8 = arith.constant 0 : index
    %c0_9 = arith.constant 0 : index
    %13 = vector.load %arg5[%c0_8, %c0_9] : memref<32x128xbf16, #tpu.memory_space<vmem>>, vector<32x128xbf16>
    tpu.vector_store %arg5[%c0_8, %c0_9], %12 {strides = array<i32>} : memref<32x128xbf16, #tpu.memory_space<vmem>>, vector<32x128xbf16>,
    return
  }
  func.func @transform_0(%arg0: i32) -> (i32, i32) {
    %c0_i32 = arith.constant 0 : i32
    %c0_i32_0 = arith.constant 0 : i32
    return %arg0, %c0_i32 : i32, i32
  }
  func.func @transform_1(%arg0: i32) -> (i32, i32) {
    %c0_i32 = arith.constant 0 : i32
    %c0_i32_0 = arith.constant 0 : i32
    %c0_i32_1 = arith.constant 0 : i32
    return %c0_i32, %c0_i32_0 : i32, i32
  }
  func.func @transform_2(%arg0: i32) -> (i32, i32) {
    %c0_i32 = arith.constant 0 : i32
    %c0_i32_0 = arith.constant 0 : i32
    %c0_i32_1 = arith.constant 0 : i32
    return %c0_i32, %c0_i32_0 : i32, i32
  }
  func.func @transform_3(%arg0: i32) -> (i32, i32) {
    %c0_i32 = arith.constant 0 : i32
    %c0_i32_0 = arith.constant 0 : i32
    %c0_i32_1 = arith.constant 0 : i32
    return %c0_i32, %c0_i32_0 : i32, i32
  }
  func.func @transform_4(%arg0: i32) -> (i32, i32) {
    %c0_i32 = arith.constant 0 : i32
    %c0_i32_0 = arith.constant 0 : i32
    return %arg0, %c0_i32 : i32, i32
  }
}

module attributes {stable_mosaic.version = 11 : i64} {
  func.func @_fused_conv_matmul_kernel(%arg0: i32, %arg1: memref<8x2048xbf16, #tpu.memory_space<vmem>>, %arg2: memref<2048x256xbf16, #tpu.memory_space<vmem>>, %arg3: memref<1x256xf32, #tpu.memory_space<vmem>>, %arg4: memref<1x256xf32, #tpu.memory_space<vmem>>, %arg5: memref<8x256xbf16, #tpu.memory_space<vmem>>) attributes {dimension_semantics = [#tpu.dimension_semantics<parallel>], iteration_bounds = array<i64: 1>, scalar_prefetch = 0 : i64, scratch_operands = 0 : i64, tpu.core_type = #tpu.core_type<tc>, window_params = [{transform_indices = @transform_0, window_bounds = array<i64: 8, 2048>}, {pipeline_mode = #tpu.pipeline_mode<synchronous>, transform_indices = @transform_1, window_bounds = array<i64: 2048, 256>}, {pipeline_mode = #tpu.pipeline_mode<synchronous>, transform_indices = @transform_2, window_bounds = array<i64: 1, 256>}, {pipeline_mode = #tpu.pipeline_mode<synchronous>, transform_indices = @transform_3, window_bounds = array<i64: 1, 256>}, {transform_indices = @transform_4, window_bounds = array<i64: 8, 256>}]} {
    %c0 = arith.constant 0 : index
    %c0_0 = arith.constant 0 : index
    %0 = vector.load %arg1[%c0, %c0_0] : memref<8x2048xbf16, #tpu.memory_space<vmem>>, vector<8x2048xbf16>
    %c0_1 = arith.constant 0 : index
    %c0_2 = arith.constant 0 : index
    %1 = vector.load %arg2[%c0_1, %c0_2] : memref<2048x256xbf16, #tpu.memory_space<vmem>>, vector<2048x256xbf16>
    %cst = arith.constant dense<0.000000e+00> : vector<8x256xf32>
    %2 = tpu.matmul %0, %1, %cst {dimension_numbers = #tpu.dot_dimension_numbers<[1], [0], [0], [1], [0, 0, 1, 1], [], []>} : vector<8x2048xbf16>, vector<2048x256xbf16>, vector<8x256xf32> -> vector<8x256xf32>
    %c0_3 = arith.constant 0 : index
    %c0_4 = arith.constant 0 : index
    %3 = vector.load %arg3[%c0_3, %c0_4] : memref<1x256xf32, #tpu.memory_space<vmem>>, vector<1x256xf32>
    %4 = vector.broadcast %3 : vector<1x256xf32> to vector<8x256xf32>
    %5 = arith.mulf %2, %4 : vector<8x256xf32>
    %c0_5 = arith.constant 0 : index
    %c0_6 = arith.constant 0 : index
    %6 = vector.load %arg4[%c0_5, %c0_6] : memref<1x256xf32, #tpu.memory_space<vmem>>, vector<1x256xf32>
    %7 = vector.broadcast %6 : vector<1x256xf32> to vector<8x256xf32>
    %8 = arith.addf %5, %7 : vector<8x256xf32>
    %cst_7 = arith.constant 2.000000e-01 : f32
    %9 = vector.broadcast %cst_7 : f32 to vector<8x256xf32>
    %10 = arith.mulf %9, %8 : vector<8x256xf32>
    %11 = arith.maximumf %8, %10 : vector<8x256xf32>
    %12 = arith.truncf %11 : vector<8x256xf32> to vector<8x256xbf16>
    %c0_8 = arith.constant 0 : index
    %c0_9 = arith.constant 0 : index
    %13 = vector.load %arg5[%c0_8, %c0_9] : memref<8x256xbf16, #tpu.memory_space<vmem>>, vector<8x256xbf16>
    tpu.vector_store %arg5[%c0_8, %c0_9], %12 {strides = array<i32>} : memref<8x256xbf16, #tpu.memory_space<vmem>>, vector<8x256xbf16>,
    return
  }
  func.func @transform_0(%arg0: i32) -> (i32, i32) {
    %c0_i32 = arith.constant 0 : i32
    %c0_i32_0 = arith.constant 0 : i32
    return %arg0, %c0_i32 : i32, i32
  }
  func.func @transform_1(%arg0: i32) -> (i32, i32) {
    %c0_i32 = arith.constant 0 : i32
    %c0_i32_0 = arith.constant 0 : i32
    %c0_i32_1 = arith.constant 0 : i32
    return %c0_i32, %c0_i32_0 : i32, i32
  }
  func.func @transform_2(%arg0: i32) -> (i32, i32) {
    %c0_i32 = arith.constant 0 : i32
    %c0_i32_0 = arith.constant 0 : i32
    %c0_i32_1 = arith.constant 0 : i32
    return %c0_i32, %c0_i32_0 : i32, i32
  }
  func.func @transform_3(%arg0: i32) -> (i32, i32) {
    %c0_i32 = arith.constant 0 : i32
    %c0_i32_0 = arith.constant 0 : i32
    %c0_i32_1 = arith.constant 0 : i32
    return %c0_i32, %c0_i32_0 : i32, i32
  }
  func.func @transform_4(%arg0: i32) -> (i32, i32) {
    %c0_i32 = arith.constant 0 : i32
    %c0_i32_0 = arith.constant 0 : i32
    return %arg0, %c0_i32 : i32, i32
  }
}

module attributes {stable_mosaic.version = 11 : i64} {
  func.func @_fused_conv_matmul_kernel(%arg0: i32, %arg1: memref<8x4096xbf16, #tpu.memory_space<vmem>>, %arg2: memref<4096x128xbf16, #tpu.memory_space<vmem>>, %arg3: memref<1x128xf32, #tpu.memory_space<vmem>>, %arg4: memref<1x128xf32, #tpu.memory_space<vmem>>, %arg5: memref<8x128xf32, #tpu.memory_space<vmem>>) attributes {dimension_semantics = [#tpu.dimension_semantics<parallel>], iteration_bounds = array<i64: 1>, scalar_prefetch = 0 : i64, scratch_operands = 0 : i64, tpu.core_type = #tpu.core_type<tc>, window_params = [{transform_indices = @transform_0, window_bounds = array<i64: 8, 4096>}, {pipeline_mode = #tpu.pipeline_mode<synchronous>, transform_indices = @transform_1, window_bounds = array<i64: 4096, 128>}, {pipeline_mode = #tpu.pipeline_mode<synchronous>, transform_indices = @transform_2, window_bounds = array<i64: 1, 128>}, {pipeline_mode = #tpu.pipeline_mode<synchronous>, transform_indices = @transform_3, window_bounds = array<i64: 1, 128>}, {transform_indices = @transform_4, window_bounds = array<i64: 8, 128>}]} {
    %c0 = arith.constant 0 : index
    %c0_0 = arith.constant 0 : index
    %0 = vector.load %arg1[%c0, %c0_0] : memref<8x4096xbf16, #tpu.memory_space<vmem>>, vector<8x4096xbf16>
    %c0_1 = arith.constant 0 : index
    %c0_2 = arith.constant 0 : index
    %1 = vector.load %arg2[%c0_1, %c0_2] : memref<4096x128xbf16, #tpu.memory_space<vmem>>, vector<4096x128xbf16>
    %cst = arith.constant dense<0.000000e+00> : vector<8x128xf32>
    %2 = tpu.matmul %0, %1, %cst {dimension_numbers = #tpu.dot_dimension_numbers<[1], [0], [0], [1], [0, 0, 1, 1], [], []>} : vector<8x4096xbf16>, vector<4096x128xbf16>, vector<8x128xf32> -> vector<8x128xf32>
    %c0_3 = arith.constant 0 : index
    %c0_4 = arith.constant 0 : index
    %3 = vector.load %arg3[%c0_3, %c0_4] : memref<1x128xf32, #tpu.memory_space<vmem>>, vector<1x128xf32>
    %4 = vector.broadcast %3 : vector<1x128xf32> to vector<8x128xf32>
    %5 = arith.mulf %2, %4 : vector<8x128xf32>
    %c0_5 = arith.constant 0 : index
    %c0_6 = arith.constant 0 : index
    %6 = vector.load %arg4[%c0_5, %c0_6] : memref<1x128xf32, #tpu.memory_space<vmem>>, vector<1x128xf32>
    %7 = vector.broadcast %6 : vector<1x128xf32> to vector<8x128xf32>
    %8 = arith.addf %5, %7 : vector<8x128xf32>
    %cst_7 = arith.constant 0.000000e+00 : f32
    %9 = vector.broadcast %cst_7 : f32 to vector<8x128xf32>
    %10 = arith.subf %9, %8 : vector<8x128xf32>
    %11 = math.exp %10 : vector<8x128xf32>
    %cst_8 = arith.constant 1.000000e+00 : f32
    %12 = vector.broadcast %cst_8 : f32 to vector<8x128xf32>
    %13 = arith.addf %12, %11 : vector<8x128xf32>
    %14 = tpu.reciprocal %13 {approx = true} : vector<8x128xf32> -> vector<8x128xf32>
    %cst_9 = arith.constant 0.000000e+00 : f32
    %cst_10 = arith.constant 1.000000e+00 : f32
    %15 = vector.broadcast %cst_9 : f32 to vector<8x128xf32>
    %16 = arith.maximumf %15, %14 : vector<8x128xf32>
    %17 = vector.broadcast %cst_10 : f32 to vector<8x128xf32>
    %18 = arith.minimumf %17, %16 : vector<8x128xf32>
    %c0_11 = arith.constant 0 : index
    %c0_12 = arith.constant 0 : index
    %19 = vector.load %arg5[%c0_11, %c0_12] : memref<8x128xf32, #tpu.memory_space<vmem>>, vector<8x128xf32>
    tpu.vector_store %arg5[%c0_11, %c0_12], %18 {strides = array<i32>} : memref<8x128xf32, #tpu.memory_space<vmem>>, vector<8x128xf32>,
    return
  }
  func.func @transform_0(%arg0: i32) -> (i32, i32) {
    %c0_i32 = arith.constant 0 : i32
    %c0_i32_0 = arith.constant 0 : i32
    return %arg0, %c0_i32 : i32, i32
  }
  func.func @transform_1(%arg0: i32) -> (i32, i32) {
    %c0_i32 = arith.constant 0 : i32
    %c0_i32_0 = arith.constant 0 : i32
    %c0_i32_1 = arith.constant 0 : i32
    return %c0_i32, %c0_i32_0 : i32, i32
  }
  func.func @transform_2(%arg0: i32) -> (i32, i32) {
    %c0_i32 = arith.constant 0 : i32
    %c0_i32_0 = arith.constant 0 : i32
    %c0_i32_1 = arith.constant 0 : i32
    return %c0_i32, %c0_i32_0 : i32, i32
  }
  func.func @transform_3(%arg0: i32) -> (i32, i32) {
    %c0_i32 = arith.constant 0 : i32
    %c0_i32_0 = arith.constant 0 : i32
    %c0_i32_1 = arith.constant 0 : i32
    return %c0_i32, %c0_i32_0 : i32, i32
  }
  func.func @transform_4(%arg0: i32) -> (i32, i32) {
    %c0_i32 = arith.constant 0 : i32
    %c0_i32_0 = arith.constant 0 : i32
    return %arg0, %c0_i32 : i32, i32
  }
}

</mosaic_0001>

<bundles_post_ra>
// kernel: discriminator_forward.4
= control target key start
LH: loop header
LB: loop body
LE: loop exit
PB: predicated region body
PF: predicated region fallthrough
CT: control target
= control target key end

     0   :  { %9 = vsyncpa [#allocation3], 0  ;;  %s846_s0 = inlined_call_operand.hbm [shape: bf16[128,16], index: 0, kind: input, shape index: {}]   ;;  %s847_s1 = inlined_call_operand.hbm [shape: bf16[16,128], index: 1, kind: input, shape index: {}]   ;;  %s848_s2 = inlined_call_operand.hbm [shape: f32[1,128], index: 2, kind: input, shape index: {}]   ;;  %s849_s3 = inlined_call_operand.hbm [shape: f32[1,128], index: 3, kind: input, shape index: {}]   ;;  %s850_s4 = inlined_call_operand.hbm [shape: bf16[128,128], index: 4, kind: output, shape index: {}]  }
   0x1   :  { %10 = vsyncpa [#allocation6], 0 }
   0x2   :  { %11 = vsyncpa [#allocation9], 0 }
   0x3   :  { %12 = vsyncpa [#allocation4], 0  ;;  %s694_s15 = smov [#allocation5]   ;;  %s695_s17 = smov [#allocation2]  }
   0x4   :  { %s30_s16 = sshll.u32 %s694_s15, 4  ;;  %s18_s18 = sshll.u32 %s695_s17, 4  ;;  %s31_s16 = int_to_ptr.vmem [resolvable:$true] %s30_s16  ;;  %s726_s18 = int_to_ptr.vmem [resolvable:$true] %s18_s18 }
   0x5   :  { %s576_s21 = scalar_lea.hbm %s847_s1, 128 }
   0x6   :  { %p577_p0 = scmp.ne.s32.totalorder %s847_s1, %s576_s21  ;;  %p580_p1 = scmp.lt.u32.totalorder %s576_s21, %s847_s1 }
   0x8   :  { %p582_p2 = pnand %p580_p1, %p577_p0 }
   0xa   :  { %585 = shalt.err (!%p582_p2)
}
   0xb   :  { %s586_s26 = scalar_lea.vmem %s31_s16, 128  ;;  %p591_p4 = scmp.lt.s32.totalorder %s31_s16, %s31_s16 }
   0xc   :  { %p587_p3 = scmp.ne.s32.totalorder %s31_s16, %s586_s26  ;;  %p592_p5 = scmp.lt.s32.totalorder %s586_s26, %s586_s26 }
   0xe   :  { %p593_p6 = por %p592_p5, %p591_p4 }
  0x10   :  { %p594_p7 = pnand %p593_p6, %p587_p3 }
  0x12   :  { %597 = shalt.err (!%p594_p7)
}
  0x13   :  { %s696_s27 = smov 64   ;;  %s697_s28 = smov 4  }
  0x14   :  { %36 = dma.hbm_to_vmem [thread:$0]  %s847_s1, 128, %s31_s16, [#allocation6], %s696_s27, %s696_s27, %s697_s28  }
  0x15   :  { %s598_s7 = scalar_lea.hbm %s846_s0, 1024 }
  0x16   :  { %p599_p8 = scmp.ne.s32.totalorder %s846_s0, %s598_s7  ;;  %p602_p9 = scmp.lt.u32.totalorder %s598_s7, %s846_s0 }
  0x18   :  { %p604_p10 = pnand %p602_p9, %p599_p8 }
  0x1a   :  { %607 = shalt.err (!%p604_p10)
}
  0x1b   :  { %s608_s12 = scalar_lea.vmem %s726_s18, 1024  ;;  %p613_p12 = scmp.lt.s32.totalorder %s726_s18, %s726_s18 }
  0x1c   :  { %p609_p11 = scmp.ne.s32.totalorder %s726_s18, %s608_s12  ;;  %p614_p13 = scmp.lt.s32.totalorder %s608_s12, %s608_s12 }
  0x1e   :  { %p615_p0 = por %p614_p13, %p613_p12 }
  0x20   :  { %p616_p1 = pnand %p615_p0, %p609_p11 }
  0x22   :  { %619 = shalt.err (!%p616_p1)
}
  0x23   :  { %24 = dma.hbm_to_vmem [thread:$0]  %s846_s0, 1024, %s726_s18, [#allocation3], %s696_s27, %s696_s27, %s697_s28  }
  0x24   :  { %s698_s14 = smov [#allocation7]   ;;  %s699_s16 = smov [#allocation8]  }
  0x25   :  { %s43_s15 = sshll.u32 %s698_s14, 4  ;;  %s53_s17 = sshll.u32 %s699_s16, 4  ;;  %s44_s15 = int_to_ptr.vmem [resolvable:$true] %s43_s15  ;;  %s54_s17 = int_to_ptr.vmem [resolvable:$true] %s53_s17 }
  0x26   :  { %s620_s21 = scalar_lea.hbm %s848_s2, 16 }
  0x27   :  { %p621_p2 = scmp.ne.s32.totalorder %s848_s2, %s620_s21  ;;  %p624_p3 = scmp.lt.u32.totalorder %s620_s21, %s848_s2 }
  0x29   :  { %p626_p4 = pnand %p624_p3, %p621_p2 }
  0x2b   :  { %629 = shalt.err (!%p626_p4)
}
  0x2c   :  { %s630_s0 = scalar_lea.vmem %s44_s15, 16  ;;  %s634_s18 = scalar_lea.vmem %s44_s15, 32 }
  0x2d   :  { %p631_p5 = scmp.ne.s32.totalorder %s44_s15, %s630_s0  ;;  %p635_p6 = scmp.lt.s32.totalorder %s44_s15, %s44_s15 }
  0x2e   :  { %p636_p7 = scmp.lt.s32.totalorder %s634_s18, %s630_s0 }
  0x30   :  { %p637_p8 = por %p636_p7, %p635_p6 }
  0x32   :  { %p638_p9 = pnand %p637_p8, %p631_p5 }
  0x34   :  { %641 = shalt.err (!%p638_p9)
}
  0x35   :  { %46 = dma.hbm_to_vmem [thread:$0]  %s848_s2, 16, %s44_s15, [#allocation6]  }
  0x36   :  { %s642_s6 = scalar_lea.hbm %s849_s3, 16 }
  0x37   :  { %p643_p10 = scmp.ne.s32.totalorder %s849_s3, %s642_s6  ;;  %p646_p11 = scmp.lt.u32.totalorder %s642_s6, %s849_s3 }
  0x39   :  { %p648_p12 = pnand %p646_p11, %p643_p10 }
  0x3b   :  { %651 = shalt.err (!%p648_p12)
}
  0x3c   :  { %s652_s11 = scalar_lea.vmem %s54_s17, 16  ;;  %s656_s12 = scalar_lea.vmem %s54_s17, 32 }
  0x3d   :  { %p653_p13 = scmp.ne.s32.totalorder %s54_s17, %s652_s11  ;;  %p657_p0 = scmp.lt.s32.totalorder %s54_s17, %s54_s17 }
  0x3e   :  { %p658_p1 = scmp.lt.s32.totalorder %s656_s12, %s652_s11 }
  0x40   :  { %p659_p2 = por %p658_p1, %p657_p0 }
  0x42   :  { %p660_p3 = pnand %p659_p2, %p653_p13 }
  0x44   :  { %663 = shalt.err (!%p660_p3)
}
  0x45   :  { %56 = dma.hbm_to_vmem [thread:$0]  %s849_s3, 16, %s54_s17, [#allocation9]  }
  0x46   :  { %686 = dma.done.wait [#allocation3], 1024  }
  0x47   :  { %687 = vsyncadd [#allocation3], 4294966272 }
  0x48   :  { %688 = dma.done.wait [#allocation6], 144  }
  0x49   :  { %689 = vsyncadd [#allocation6], 4294967152 }
  0x4a   :  { %690 = dma.done.wait [#allocation9], 16  }
  0x4b   :  { %691 = vsyncadd [#allocation9], 4294967280  ;;  %v567_v0 = vld [vmem:[#allocation5] sm:$0xff]   ;;  %vm134_vm0 = vcmask 130048   ;;  %v570_v3 = vld [vmem:[#allocation2 + $0x8] sm:$0xff]   ;;  %s700_s3 = smov [#allocation10]  }
  0x4c   :  { %v568_v1 = vld [vmem:[#allocation2] sm:$0xff]   ;;  %540 = vmatprep.subr.bf16.mxu0 %v567_v0  ;;  %558 = vmatprep.subr.bf16.mxu1 %v567_v0  ;;  %v571_v4 = vld [vmem:[#allocation2 + $0x28] sm:$0xff]   ;;  %v572_v5 = vld [vmem:[#allocation2 + $0x10] sm:$0xff]   ;;  %s419_s13 = sshll.u32 %s700_s3, 4  ;;  %s420_s13 = int_to_ptr.vmem [resolvable:$true] %s419_s13 }
  0x4d   :  { %v569_v2 = vld [vmem:[#allocation2 + $0x20] sm:$0xff]   ;;  %541 = vmatpush3.bf16.msra.mxu0 %v567_v0  ;;  %559 = vmatpush3.bf16.msra.mxu1 %v567_v0  ;;  %v573_v6 = vld [vmem:[#allocation2 + $0x30] sm:$0xff]   ;;  %v574_v7 = vld [vmem:[#allocation2 + $0x18] sm:$0xff]   ;;  %s664_s14 = scalar_lea.vmem %s420_s13, 1024  ;;  %p669_p5 = scmp.lt.s32.totalorder %s420_s13, %s420_s13 }
  0x4e   :  { %542 = vmatprep.mubr.msk.bf16.mxu0 %vm134_vm0, %v568_v1  ;;  %550 = vmatprep.mubr.msk.bf16.mxu1 %vm134_vm0, %v569_v2  ;;  %v575_v8 = vld [vmem:[#allocation2 + $0x38] sm:$0xff]   ;;  %v795_v9 = vld [vmem:[#allocation7] ss:$0 sm:$0xff]  ;;  %v797_v11 = vld [vmem:[#allocation8] ss:$0 sm:$0xff]  ;;  %p665_p4 = scmp.ne.s32.totalorder %s420_s13, %s664_s14  ;;  %p670_p6 = scmp.lt.s32.totalorder %s664_s14, %s664_s14 }
  0x50   :  { %543 = vmatmul.mubr.msk.bf16.vlgmr.msra.gmra.mrb[0].mxu0 %vm134_vm0, %v570_v3  ;;  %551 = vmatmul.mubr.msk.bf16.vlgmr.msra.gmra.mrb[0].mxu1 %vm134_vm0, %v571_v4  ;;  %p671_p7 = por %p670_p6, %p669_p5 }
  0x51   :  { %546 = vmatprep.mubr.msk.bf16.mxu0 %vm134_vm0, %v572_v5  ;;  %554 = vmatprep.mubr.msk.bf16.mxu1 %vm134_vm0, %v573_v6 }
  0x52   :  { %p672_p8 = pnand %p671_p7, %p665_p4 }
  0x58   :  { %547 = vmatmul.mubr.msk.bf16.gmra.mrb[4].mxu0 %vm134_vm0, %v574_v7  ;;  %555 = vmatmul.mubr.msk.bf16.gmra.mrb[4].mxu1 %vm134_vm0, %v575_v8 }
 0x123   :  { %v544_v10 = vpop.f32.mrb[0].mxu0  ;;  %v552_v12 = vpop.f32.mrb[0].mxu1 }
 0x124   :  { %v265_v13 = vmul.f32 %v544_v10, %v795_v9  ;;  %v273_v14 = vmul.f32 %v552_v12, %v795_v9  ;;  %v193_v15 = vpop.f32.mrb[1].mxu0  ;;  %v225_v16 = vpop.f32.mrb[1].mxu1 }
 0x125   :  { %v263_v17 = vmul.f32 %v795_v9, %v193_v15  ;;  %v271_v18 = vmul.f32 %v795_v9, %v225_v16  ;;  %v545_v19 = vpop.f32.mrb[2].mxu0  ;;  %v553_v20 = vpop.f32.mrb[2].mxu1 }
 0x126   :  { %v288_v21 = vadd.f32 %v797_v11, %v265_v13  ;;  %v296_v22 = vadd.f32 %v797_v11, %v273_v14  ;;  %v266_v23 = vmul.f32 %v545_v19, %v795_v9  ;;  %v274_v24 = vmul.f32 %v553_v20, %v795_v9  ;;  %v196_v25 = vpop.f32.mrb[3].mxu0  ;;  %v228_v26 = vpop.f32.mrb[3].mxu1 }
 0x127   :  { %v286_v27 = vadd.f32 %v797_v11, %v263_v17  ;;  %v294_v28 = vadd.f32 %v797_v11, %v271_v18  ;;  %v264_v29 = vmul.f32 %v795_v9, %v196_v25  ;;  %v272_v30 = vmul.f32 %v795_v9, %v228_v26 }
 0x128   :  { %v304_v31 = vmul.f32 0.2, %v288_v21  ;;  %v312_v32 = vmul.f32 0.2, %v296_v22  ;;  %v289_v33 = vadd.f32 %v797_v11, %v266_v23  ;;  %v297_v34 = vadd.f32 %v797_v11, %v274_v24 }
 0x129   :  { %v302_v35 = vmul.f32 0.2, %v286_v27  ;;  %v310_v36 = vmul.f32 0.2, %v294_v28  ;;  %v287_v37 = vadd.f32 %v797_v11, %v264_v29  ;;  %v295_v38 = vadd.f32 %v797_v11, %v272_v30 }
 0x12a   :  { %v320_v39 = vmax.f32 %v288_v21, %v304_v31  ;;  %v328_v40 = vmax.f32 %v296_v22, %v312_v32  ;;  %v305_v41 = vmul.f32 0.2, %v289_v33  ;;  %v313_v42 = vmul.f32 0.2, %v297_v34 }
 0x12b   :  { %v318_v43 = vmax.f32 %v286_v27, %v302_v35  ;;  %v326_v44 = vmax.f32 %v294_v28, %v310_v36  ;;  %v303_v45 = vmul.f32 0.2, %v287_v37  ;;  %v311_v46 = vmul.f32 0.2, %v295_v38  ;;  %v548_v47 = vpop.f32.mrb[4].mxu0  ;;  %v556_v48 = vpop.f32.mrb[4].mxu1 }
 0x12c   :  { %v321_v49 = vmax.f32 %v289_v33, %v305_v41  ;;  %v329_v50 = vmax.f32 %v297_v34, %v313_v42  ;;  %v269_v51 = vmul.f32 %v548_v47, %v795_v9  ;;  %v277_v52 = vmul.f32 %v556_v48, %v795_v9  ;;  %v209_v53 = vpop.f32.mrb[5].mxu0  ;;  %v241_v54 = vpop.f32.mrb[5].mxu1 }
 0x12d   :  { %v319_v55 = vmax.f32 %v287_v37, %v303_v45  ;;  %v327_v56 = vmax.f32 %v295_v38, %v311_v46  ;;  %v267_v57 = vmul.f32 %v795_v9, %v209_v53  ;;  %v275_v58 = vmul.f32 %v795_v9, %v241_v54  ;;  %v549_v59 = vpop.f32.mrb[6].mxu0  ;;  %v557_v60 = vpop.f32.mrb[6].mxu1 }
 0x12e   :  { %v492_v61 = vpack.c.bf16 %v321_v49, %v320_v39  ;;  %v512_v62 = vpack.c.bf16 %v329_v50, %v328_v40  ;;  %v292_v63 = vadd.f32 %v797_v11, %v269_v51  ;;  %v300_v0 = vadd.f32 %v797_v11, %v277_v52  ;;  %v212_v1 = vpop.f32.mrb[7].mxu0  ;;  %v244_v2 = vpop.f32.mrb[7].mxu1 }
 0x12f   :  { %v487_v3 = vpack.c.bf16 %v319_v55, %v318_v43  ;;  %v507_v4 = vpack.c.bf16 %v327_v56, %v326_v44  ;;  %v290_v5 = vadd.f32 %v797_v11, %v267_v57  ;;  %v298_v6 = vadd.f32 %v797_v11, %v275_v58 }
 0x130   :  { %524 = vst [vmem:[#allocation10 + $0x8] sm:$0xff] %v492_v61   ;;  %528 = vst [vmem:[#allocation10 + $0x28] sm:$0xff] %v512_v62   ;;  %v270_v7 = vmul.f32 %v549_v59, %v795_v9  ;;  %v278_v8 = vmul.f32 %v557_v60, %v795_v9  ;;  %v268_v10 = vmul.f32 %v795_v9, %v212_v1  ;;  %v308_v13 = vmul.f32 0.2, %v292_v63 }
 0x131   :  { %488 = vst [vmem:[#allocation10] sm:$0xff] %v487_v3   ;;  %527 = vst [vmem:[#allocation10 + $0x20] sm:$0xff] %v507_v4   ;;  %v276_v12 = vmul.f32 %v795_v9, %v244_v2  ;;  %v316_v14 = vmul.f32 0.2, %v300_v0  ;;  %v306_v17 = vmul.f32 0.2, %v290_v5 }
 0x132   :  { %v293_v15 = vadd.f32 %v797_v11, %v270_v7  ;;  %v301_v16 = vadd.f32 %v797_v11, %v278_v8  ;;  %v314_v18 = vmul.f32 0.2, %v298_v6  ;;  %v291_v19 = vadd.f32 %v797_v11, %v268_v10 }
 0x133   :  { %v299_v20 = vadd.f32 %v797_v11, %v276_v12  ;;  %v324_v25 = vmax.f32 %v292_v63, %v308_v13  ;;  %v332_v26 = vmax.f32 %v300_v0, %v316_v14  ;;  %v322_v28 = vmax.f32 %v290_v5, %v306_v17 }
 0x134   :  { %v309_v21 = vmul.f32 0.2, %v293_v15  ;;  %v317_v22 = vmul.f32 0.2, %v301_v16  ;;  %v307_v23 = vmul.f32 0.2, %v291_v19  ;;  %v330_v29 = vmax.f32 %v298_v6, %v314_v18 }
 0x135   :  { %v315_v24 = vmul.f32 0.2, %v299_v20 }
 0x136   :  { %v325_v27 = vmax.f32 %v293_v15, %v309_v21  ;;  %v333_v9 = vmax.f32 %v301_v16, %v317_v22  ;;  %v323_v30 = vmax.f32 %v291_v19, %v307_v23 }
 0x137   :  { %v331_v31 = vmax.f32 %v299_v20, %v315_v24 }
 0x138   :  { %v502_v32 = vpack.c.bf16 %v325_v27, %v324_v25  ;;  %v522_v33 = vpack.c.bf16 %v333_v9, %v332_v26  ;;  %v497_v34 = vpack.c.bf16 %v323_v30, %v322_v28 }
 0x139   :  { %v517_v35 = vpack.c.bf16 %v331_v31, %v330_v29 }
 0x13a   :  { %526 = vst [vmem:[#allocation10 + $0x18] sm:$0xff] %v502_v32   ;;  %530 = vst [vmem:[#allocation10 + $0x38] sm:$0xff] %v522_v33  }
 0x13b   :  { %525 = vst [vmem:[#allocation10 + $0x10] sm:$0xff] %v497_v34   ;;  %529 = vst [vmem:[#allocation10 + $0x30] sm:$0xff] %v517_v35  }
 0x13c   :  { %675 = shalt.err (!%p672_p8)
}
 0x13d   :  { %s676_s17 = scalar_lea.hbm %s850_s4, 1024 }
 0x13e   :  { %p677_p9 = scmp.ne.s32.totalorder %s850_s4, %s676_s17  ;;  %p680_p10 = scmp.lt.u32.totalorder %s676_s17, %s850_s4 }
 0x140   :  { %p682_p11 = pnand %p680_p10, %p677_p9 }
 0x142   :  { %685 = shalt.err (!%p682_p11)
}
 0x143   :  { %425 = dma.vmem_to_hbm [thread:$0]  %s420_s13, 1024, %s850_s4, [#allocation4], %s696_s27, %s696_s27, %s697_s28  }
 0x144   :  { %692 = dma.done.wait [#allocation4], 1024  }
 0x145   :  { %693 = vsyncadd [#allocation4], 4294966272 }
 0x146   :  { %429 = vsyncpa [#allocation3], 1 }
 0x147   :  { %430 = vsyncpa [#allocation6], 1 }
 0x148   :  { %431 = vsyncpa [#allocation9], 1 }
 0x149   :  { %432 = vsyncpa [#allocation4], 1 }

// kernel: discriminator_forward.5
= control target key start
LH: loop header
LB: loop body
LE: loop exit
PB: predicated region body
PF: predicated region fallthrough
CT: control target
= control target key end

     0   :  { %9 = vsyncpa [#allocation3], 0  ;;  %s2506_s0 = inlined_call_operand.hbm [shape: bf16[32,2048], index: 0, kind: input, shape index: {}]   ;;  %s2507_s1 = inlined_call_operand.hbm [shape: bf16[2048,128], index: 1, kind: input, shape index: {}]   ;;  %s2508_s2 = inlined_call_operand.hbm [shape: f32[1,128], index: 2, kind: input, shape index: {}]   ;;  %s2509_s3 = inlined_call_operand.hbm [shape: f32[1,128], index: 3, kind: input, shape index: {}]   ;;  %s2510_s4 = inlined_call_operand.hbm [shape: bf16[32,128], index: 4, kind: output, shape index: {}]  }
   0x1   :  { %10 = vsyncpa [#allocation6], 0 }
   0x2   :  { %11 = vsyncpa [#allocation9], 0 }
   0x3   :  { %12 = vsyncpa [#allocation4], 0  ;;  %s2406_s15 = smov [#allocation5]   ;;  %s2288_s19 = scalar_lea.hbm %s2507_s1, 16384 }
   0x4   :  { %s30_s16 = sshll.u32 %s2406_s15, 4  ;;  %p2289_p0 = scmp.ne.s32.totalorder %s2507_s1, %s2288_s19  ;;  %s31_s16 = int_to_ptr.vmem [resolvable:$true] %s30_s16 }
   0x5   :  { %p2292_p1 = scmp.lt.u32.totalorder %s2288_s19, %s2507_s1 }
   0x7   :  { %p2294_p2 = pnand %p2292_p1, %p2289_p0 }
   0x9   :  { %2297 = shalt.err (!%p2294_p2)
}
   0xa   :  { %s2298_s24 = scalar_lea.vmem %s31_s16, 16384  ;;  %p2303_p4 = scmp.lt.s32.totalorder %s31_s16, %s31_s16 }
   0xb   :  { %p2299_p3 = scmp.ne.s32.totalorder %s31_s16, %s2298_s24  ;;  %p2304_p5 = scmp.lt.s32.totalorder %s2298_s24, %s2298_s24 }
   0xd   :  { %p2305_p6 = por %p2304_p5, %p2303_p4 }
   0xf   :  { %p2306_p7 = pnand %p2305_p6, %p2299_p3 }
  0x11   :  { %2309 = shalt.err (!%p2306_p7)
}
  0x12   :  { %s2407_s25 = smov 64   ;;  %s2408_s26 = smov 4  }
  0x13   :  { %36 = dma.hbm_to_vmem [thread:$0]  %s2507_s1, 16384, %s31_s16, [#allocation6], %s2407_s25, %s2407_s25, %s2408_s26  }
  0x14   :  { %s2409_s29 = smov [#allocation2]   ;;  %s2310_s7 = scalar_lea.hbm %s2506_s0, 4096 }
  0x15   :  { %s18_s30 = sshll.u32 %s2409_s29, 4  ;;  %p2311_p8 = scmp.ne.s32.totalorder %s2506_s0, %s2310_s7  ;;  %s19_s30 = int_to_ptr.vmem [resolvable:$true] %s18_s30 }
  0x16   :  { %p2314_p9 = scmp.lt.u32.totalorder %s2310_s7, %s2506_s0 }
  0x18   :  { %p2316_p10 = pnand %p2314_p9, %p2311_p8 }
  0x1a   :  { %2319 = shalt.err (!%p2316_p10)
}
  0x1b   :  { %s2320_s12 = scalar_lea.vmem %s19_s30, 4096  ;;  %p2325_p12 = scmp.lt.s32.totalorder %s19_s30, %s19_s30 }
  0x1c   :  { %p2321_p11 = scmp.ne.s32.totalorder %s19_s30, %s2320_s12  ;;  %p2326_p13 = scmp.lt.s32.totalorder %s2320_s12, %s2320_s12 }
  0x1e   :  { %p2327_p0 = por %p2326_p13, %p2325_p12 }
  0x20   :  { %p2328_p1 = pnand %p2327_p0, %p2321_p11 }
  0x22   :  { %2331 = shalt.err (!%p2328_p1)
}
  0x23   :  { %s2410_s1 = smov 1024   ;;  %s2411_s15 = smov [#allocation7]  }
  0x24   :  { %24 = dma.hbm_to_vmem [thread:$0]  %s2506_s0, 4096, %s19_s30, [#allocation3], %s2410_s1, %s2410_s1, %s2407_s25  }
  0x25   :  { %s43_s16 = sshll.u32 %s2411_s15, 4  ;;  %s2412_s17 = smov [#allocation8]   ;;  %s44_s16 = int_to_ptr.vmem [resolvable:$true] %s43_s16 }
  0x26   :  { %s53_s18 = sshll.u32 %s2412_s17, 4  ;;  %s2332_s21 = scalar_lea.hbm %s2508_s2, 16  ;;  %s54_s18 = int_to_ptr.vmem [resolvable:$true] %s53_s18 }
  0x27   :  { %p2333_p2 = scmp.ne.s32.totalorder %s2508_s2, %s2332_s21  ;;  %p2336_p3 = scmp.lt.u32.totalorder %s2332_s21, %s2508_s2 }
  0x29   :  { %p2338_p4 = pnand %p2336_p3, %p2333_p2 }
  0x2b   :  { %2341 = shalt.err (!%p2338_p4)
}
  0x2c   :  { %s2342_s0 = scalar_lea.vmem %s44_s16, 16  ;;  %s2346_s28 = scalar_lea.vmem %s44_s16, 32 }
  0x2d   :  { %p2343_p5 = scmp.ne.s32.totalorder %s44_s16, %s2342_s0  ;;  %p2347_p6 = scmp.lt.s32.totalorder %s44_s16, %s44_s16 }
  0x2e   :  { %p2348_p7 = scmp.lt.s32.totalorder %s2346_s28, %s2342_s0 }
  0x30   :  { %p2349_p8 = por %p2348_p7, %p2347_p6 }
  0x32   :  { %p2350_p9 = pnand %p2349_p8, %p2343_p5 }
  0x34   :  { %2353 = shalt.err (!%p2350_p9)
}
  0x35   :  { %46 = dma.hbm_to_vmem [thread:$0]  %s2508_s2, 16, %s44_s16, [#allocation6]  }
  0x36   :  { %s2354_s7 = scalar_lea.hbm %s2509_s3, 16 }
  0x37   :  { %p2355_p10 = scmp.ne.s32.totalorder %s2509_s3, %s2354_s7  ;;  %p2358_p11 = scmp.lt.u32.totalorder %s2354_s7, %s2509_s3 }
  0x39   :  { %p2360_p12 = pnand %p2358_p11, %p2355_p10 }
  0x3b   :  { %2363 = shalt.err (!%p2360_p12)
}
  0x3c   :  { %s2364_s12 = scalar_lea.vmem %s54_s18, 16  ;;  %s2368_s1 = scalar_lea.vmem %s54_s18, 32 }
  0x3d   :  { %p2365_p13 = scmp.ne.s32.totalorder %s54_s18, %s2364_s12  ;;  %p2369_p0 = scmp.lt.s32.totalorder %s54_s18, %s54_s18 }
  0x3e   :  { %p2370_p1 = scmp.lt.s32.totalorder %s2368_s1, %s2364_s12 }
  0x40   :  { %p2371_p2 = por %p2370_p1, %p2369_p0 }
  0x42   :  { %p2372_p3 = pnand %p2371_p2, %p2365_p13 }
  0x44   :  { %2375 = shalt.err (!%p2372_p3)
}
  0x45   :  { %56 = dma.hbm_to_vmem [thread:$0]  %s2509_s3, 16, %s54_s18, [#allocation9]  }
  0x46   :  { %2398 = dma.done.wait [#allocation3], 4096  }
  0x47   :  { %2399 = vsyncadd [#allocation3], 4294963200 }
  0x48   :  { %2400 = dma.done.wait [#allocation6], 16400  }
  0x49   :  { %2401 = vsyncadd [#allocation6], 4294950896 }
  0x4a   :  { %2402 = dma.done.wait [#allocation9], 16  }
  0x4b   :  { %2403 = vsyncadd [#allocation9], 4294967280  ;;  %v2160_v0 = vld [vmem:[#allocation5 + $0x40] sm:$0xff]   ;;  %v2164_v4 = vld [vmem:[#allocation5 + $0x48] sm:$0xff]   ;;  %s2413_s3 = smov [#allocation10]  }
  0x4c   :  { %v2161_v1 = vld [vmem:[#allocation5 + $0xc0] sm:$0xff]   ;;  %1928 = vmatprep.subr.bf16.mxu0 %v2160_v0  ;;  %v2165_v5 = vld [vmem:[#allocation5 + $0xc8] sm:$0xff]   ;;  %v2168_v8 = vld [vmem:[#allocation5 + $0x50] sm:$0xff]   ;;  %s1733_s14 = sshll.u32 %s2413_s3, 4  ;;  %s1734_s14 = int_to_ptr.vmem [resolvable:$true] %s1733_s14 }
  0x4d   :  { %v2162_v2 = vld [vmem:[#allocation5] sm:$0xff]   ;;  %1956 = vmatprep.subr.bf16.mxu1 %v2161_v1  ;;  %v2166_v6 = vld [vmem:[#allocation5 + $0x8] sm:$0xff]   ;;  %v2169_v9 = vld [vmem:[#allocation5 + $0xd0] sm:$0xff]   ;;  %s2376_s15 = scalar_lea.vmem %s1734_s14, 256  ;;  %p2381_p5 = scmp.lt.s32.totalorder %s1734_s14, %s1734_s14 }
  0x4e   :  { %v2163_v3 = vld [vmem:[#allocation5 + $0x80] sm:$0xff]   ;;  %1929 = vmatpush3.bf16.msra.mxu0 %v2162_v2  ;;  %v2167_v7 = vld [vmem:[#allocation5 + $0x88] sm:$0xff]   ;;  %v2170_v10 = vld [vmem:[#allocation5 + $0x10] sm:$0xff]   ;;  %p2377_p4 = scmp.ne.s32.totalorder %s1734_s14, %s2376_s15  ;;  %p2382_p6 = scmp.lt.s32.totalorder %s2376_s15, %s2376_s15 }
  0x4f   :  { %1957 = vmatpush3.bf16.msra.mxu1 %v2163_v3  ;;  %1930 = vmatprep.subr.bf16.mxu0 %v2164_v4  ;;  %v2171_v11 = vld [vmem:[#allocation5 + $0x90] sm:$0xff]   ;;  %v2172_v12 = vld [vmem:[#allocation5 + $0x58] sm:$0xff]   ;;  %v2176_v16 = vld [vmem:[#allocation5 + $0x60] sm:$0xff]  }
  0x50   :  { %1958 = vmatprep.subr.bf16.mxu1 %v2165_v5  ;;  %v2173_v13 = vld [vmem:[#allocation5 + $0xd8] sm:$0xff]   ;;  %v2177_v17 = vld [vmem:[#allocation5 + $0xe0] sm:$0xff]   ;;  %v2180_v20 = vld [vmem:[#allocation5 + $0x68] sm:$0xff]   ;;  %p2383_p7 = por %p2382_p6, %p2381_p5 }
  0x51   :  { %v2174_v14 = vld [vmem:[#allocation5 + $0x18] sm:$0xff]   ;;  %v2178_v18 = vld [vmem:[#allocation5 + $0x20] sm:$0xff]   ;;  %v2181_v21 = vld [vmem:[#allocation5 + $0xe8] sm:$0xff]  }
  0x52   :  { %1931 = vmatpush3.bf16.msra.mxu0 %v2166_v6  ;;  %v2175_v15 = vld [vmem:[#allocation5 + $0x98] sm:$0xff]   ;;  %v2179_v19 = vld [vmem:[#allocation5 + $0xa0] sm:$0xff]   ;;  %v2182_v22 = vld [vmem:[#allocation5 + $0x28] sm:$0xff]   ;;  %p2384_p8 = pnand %p2383_p7, %p2377_p4 }
  0x53   :  { %1959 = vmatpush3.bf16.msra.mxu1 %v2167_v7  ;;  %1932 = vmatprep.subr.bf16.mxu0 %v2168_v8  ;;  %v2183_v23 = vld [vmem:[#allocation5 + $0xa8] sm:$0xff]   ;;  %v2184_v24 = vld [vmem:[#allocation5 + $0x70] sm:$0xff]   ;;  %v2188_v28 = vld [vmem:[#allocation5 + $0x78] sm:$0xff]  }
  0x54   :  { %1960 = vmatprep.subr.bf16.mxu1 %v2169_v9  ;;  %v2185_v25 = vld [vmem:[#allocation5 + $0xf0] sm:$0xff]   ;;  %v2189_v29 = vld [vmem:[#allocation5 + $0xf8] sm:$0xff]   ;;  %v70_v32 = vld [vmem:[#allocation2] sm:$0xff] }
  0x55   :  { %v2186_v26 = vld [vmem:[#allocation5 + $0x30] sm:$0xff]   ;;  %v2190_v30 = vld [vmem:[#allocation5 + $0x38] sm:$0xff]   ;;  %v78_v33 = vld [vmem:[#allocation2 + $0x40] sm:$0xff] }
  0x56   :  { %1933 = vmatpush3.bf16.msra.mxu0 %v2170_v10  ;;  %v2187_v27 = vld [vmem:[#allocation5 + $0xb0] sm:$0xff]   ;;  %v2191_v31 = vld [vmem:[#allocation5 + $0xb8] sm:$0xff]   ;;  %v71_v34 = vld [vmem:[#allocation2 + $0x8] sm:$0xff]  ;;  %v1747_v35 = vcombine.low %v70_v32, %v78_v33  ;;  %v1748_v36 = vcombine.high %v70_v32, %v78_v33 }
  0x57   :  { %1961 = vmatpush3.bf16.msra.mxu1 %v2171_v11  ;;  %1934 = vmatprep.subr.bf16.mxu0 %v2172_v12  ;;  %v79_v37 = vld [vmem:[#allocation2 + $0x48] sm:$0xff]  ;;  %v2192_v40 = vld [vmem:[#allocation5 + $0x140] sm:$0xff]   ;;  %v2200_v48 = vld [vmem:[#allocation5 + $0x150] sm:$0xff]  }
  0x58   :  { %1962 = vmatprep.subr.bf16.mxu1 %v2173_v13  ;;  %v1749_v38 = vcombine.low %v71_v34, %v79_v37  ;;  %v1750_v39 = vcombine.high %v71_v34, %v79_v37  ;;  %1318 = vmatprep.mubr.bf16.mxu0 %v1748_v36  ;;  %v2193_v41 = vld [vmem:[#allocation5 + $0x1c0] sm:$0xff]   ;;  %v2196_v44 = vld [vmem:[#allocation5 + $0x148] sm:$0xff]   ;;  %v2201_v49 = vld [vmem:[#allocation5 + $0x1d0] sm:$0xff]  }
  0x59   :  { %v2194_v42 = vld [vmem:[#allocation5 + $0x100] sm:$0xff]   ;;  %v2197_v45 = vld [vmem:[#allocation5 + $0x1c8] sm:$0xff]   ;;  %v2202_v50 = vld [vmem:[#allocation5 + $0x110] sm:$0xff]  }
  0x5a   :  { %1935 = vmatpush3.bf16.msra.mxu0 %v2174_v14  ;;  %1367 = vmatprep.mubr.bf16.mxu1 %v1750_v39  ;;  %v2195_v43 = vld [vmem:[#allocation5 + $0x180] sm:$0xff]   ;;  %v2198_v46 = vld [vmem:[#allocation5 + $0x108] sm:$0xff]   ;;  %v2203_v51 = vld [vmem:[#allocation5 + $0x190] sm:$0xff]  }
  0x5b   :  { %1963 = vmatpush3.bf16.msra.mxu1 %v2175_v15  ;;  %1936 = vmatprep.subr.bf16.mxu0 %v2176_v16  ;;  %v2199_v47 = vld [vmem:[#allocation5 + $0x188] sm:$0xff]   ;;  %v2204_v52 = vld [vmem:[#allocation5 + $0x158] sm:$0xff]   ;;  %v2208_v56 = vld [vmem:[#allocation5 + $0x160] sm:$0xff]  }
  0x5c   :  { %1964 = vmatprep.subr.bf16.mxu1 %v2177_v17  ;;  %v2205_v53 = vld [vmem:[#allocation5 + $0x1d8] sm:$0xff]   ;;  %v2209_v57 = vld [vmem:[#allocation5 + $0x1e0] sm:$0xff]   ;;  %v2212_v60 = vld [vmem:[#allocation5 + $0x168] sm:$0xff]  }
  0x5d   :  { %v2206_v54 = vld [vmem:[#allocation5 + $0x118] sm:$0xff]   ;;  %v2210_v58 = vld [vmem:[#allocation5 + $0x120] sm:$0xff]   ;;  %v2213_v61 = vld [vmem:[#allocation5 + $0x1e8] sm:$0xff]  }
  0x5e   :  { %1937 = vmatpush3.bf16.msra.mxu0 %v2178_v18  ;;  %v2207_v55 = vld [vmem:[#allocation5 + $0x198] sm:$0xff]   ;;  %v2211_v59 = vld [vmem:[#allocation5 + $0x1a0] sm:$0xff]   ;;  %v87_v1 = vld [vmem:[#allocation2 + $0x88] sm:$0xff] }
  0x5f   :  { %1965 = vmatpush3.bf16.msra.mxu1 %v2179_v19  ;;  %1938 = vmatprep.subr.bf16.mxu0 %v2180_v20  ;;  %v86_v62 = vld [vmem:[#allocation2 + $0x80] sm:$0xff]  ;;  %v95_v2 = vld [vmem:[#allocation2 + $0xc8] sm:$0xff]  ;;  %v2216_v8 = vld [vmem:[#allocation5 + $0x170] sm:$0xff]  }
  0x60   :  { %1966 = vmatprep.subr.bf16.mxu1 %v2181_v21  ;;  %v94_v63 = vld [vmem:[#allocation2 + $0xc0] sm:$0xff]  ;;  %v1766_v4 = vcombine.high %v87_v1, %v95_v2  ;;  %v2214_v5 = vld [vmem:[#allocation5 + $0x128] sm:$0xff]   ;;  %v1765_v6 = vcombine.low %v87_v1, %v95_v2  ;;  %v2217_v9 = vld [vmem:[#allocation5 + $0x1f0] sm:$0xff]  }
  0x61   :  { %v1764_v0 = vcombine.high %v86_v62, %v94_v63  ;;  %v1763_v3 = vcombine.low %v86_v62, %v94_v63  ;;  %v2215_v7 = vld [vmem:[#allocation5 + $0x1a8] sm:$0xff]   ;;  %v2218_v10 = vld [vmem:[#allocation5 + $0x130] sm:$0xff]   ;;  %v2220_v12 = vld [vmem:[#allocation5 + $0x178] sm:$0xff]  }
  0x62   :  { %1939 = vmatpush3.bf16.msra.mxu0 %v2182_v22  ;;  %v2219_v11 = vld [vmem:[#allocation5 + $0x1b0] sm:$0xff]   ;;  %v2221_v13 = vld [vmem:[#allocation5 + $0x1f8] sm:$0xff]   ;;  %v82_v1 = vld [vmem:[#allocation2 + $0x60] sm:$0xff] }
  0x63   :  { %1967 = vmatpush3.bf16.msra.mxu1 %v2183_v23  ;;  %1940 = vmatprep.subr.bf16.mxu0 %v2184_v24  ;;  %v2222_v14 = vld [vmem:[#allocation5 + $0x138] sm:$0xff]   ;;  %v72_v16 = vld [vmem:[#allocation2 + $0x10] sm:$0xff]  ;;  %v2224_v24 = vld [vmem:[#allocation5 + $0x240] sm:$0xff]  }
  0x64   :  { %1968 = vmatprep.subr.bf16.mxu1 %v2185_v25  ;;  %v2223_v15 = vld [vmem:[#allocation5 + $0x1b8] sm:$0xff]   ;;  %v80_v17 = vld [vmem:[#allocation2 + $0x50] sm:$0xff]  ;;  %v2225_v25 = vld [vmem:[#allocation5 + $0x2c0] sm:$0xff]  }
  0x65   :  { %v73_v18 = vld [vmem:[#allocation2 + $0x18] sm:$0xff]  ;;  %v1751_v20 = vcombine.low %v72_v16, %v80_v17  ;;  %v1752_v21 = vcombine.high %v72_v16, %v80_v17  ;;  %v88_v32 = vld [vmem:[#allocation2 + $0x90] sm:$0xff]  ;;  %v90_v16 = vld [vmem:[#allocation2 + $0xa0] sm:$0xff] }
  0x66   :  { %1941 = vmatpush3.bf16.msra.mxu0 %v2186_v26  ;;  %v81_v19 = vld [vmem:[#allocation2 + $0x58] sm:$0xff]  ;;  %v2226_v26 = vld [vmem:[#allocation5 + $0x200] sm:$0xff]   ;;  %v96_v33 = vld [vmem:[#allocation2 + $0xd0] sm:$0xff] }
  0x67   :  { %1969 = vmatpush3.bf16.msra.mxu1 %v2187_v27  ;;  %1942 = vmatprep.subr.bf16.mxu0 %v2188_v28  ;;  %v1753_v22 = vcombine.low %v73_v18, %v81_v19  ;;  %v1754_v23 = vcombine.high %v73_v18, %v81_v19  ;;  %v2227_v27 = vld [vmem:[#allocation5 + $0x280] sm:$0xff]   ;;  %v2228_v28 = vld [vmem:[#allocation5 + $0x248] sm:$0xff]   ;;  %v1768_v34 = vcombine.high %v88_v32, %v96_v33  ;;  %v2232_v36 = vld [vmem:[#allocation5 + $0x250] sm:$0xff]  }
  0x68   :  { %1970 = vmatprep.subr.bf16.mxu1 %v2189_v29  ;;  %v2229_v29 = vld [vmem:[#allocation5 + $0x2c8] sm:$0xff]   ;;  %v2233_v37 = vld [vmem:[#allocation5 + $0x2d0] sm:$0xff]   ;;  %v97_v39 = vld [vmem:[#allocation2 + $0xd8] sm:$0xff] }
  0x69   :  { %v2254_v62 = vld [vmem:[#allocation5 + $0x238] sm:$0xff]   ;;  %v98_v17 = vld [vmem:[#allocation2 + $0xe0] sm:$0xff] }
  0x6a   :  { %1943 = vmatpush3.bf16.msra.mxu0 %v2190_v30  ;;  %v2230_v30 = vld [vmem:[#allocation5 + $0x208] sm:$0xff]   ;;  %v2255_v63 = vld [vmem:[#allocation5 + $0x2b8] sm:$0xff]   ;;  %v1772_v18 = vcombine.high %v90_v16, %v98_v17  ;;  %v1771_v19 = vcombine.low %v90_v16, %v98_v17 }
  0x6b   :  { %1971 = vmatpush3.bf16.msra.mxu1 %v2191_v31  ;;  %1984 = vmatprep.subr.bf16.mxu0 %v2192_v40  ;;  %v2231_v31 = vld [vmem:[#allocation5 + $0x288] sm:$0xff]  }
  0x6c   :  { %2012 = vmatprep.subr.bf16.mxu1 %v2193_v41  ;;  %v2234_v41 = vld [vmem:[#allocation5 + $0x210] sm:$0xff]  }
  0x6d   :  { %1319 = vmatmul.mubr.bf16.vlgmr.msra.gmra.mrb[0].mxu0 %v1747_v35  ;;  %v1767_v35 = vcombine.low %v88_v32, %v96_v33  ;;  %v2272_v32 = vld [vmem:[#allocation5 + $0x360] sm:$0xff]  }
  0x6e   :  { %1368 = vmatmul.mubr.bf16.vlgmr.msra.gmra.mrb[0].mxu1 %v1749_v38  ;;  %1985 = vmatpush3.bf16.msra.mxu0 %v2194_v42  ;;  %v89_v38 = vld [vmem:[#allocation2 + $0x98] sm:$0xff]  ;;  %v2273_v33 = vld [vmem:[#allocation5 + $0x3e0] sm:$0xff]  }
  0x6f   :  { %2013 = vmatpush3.bf16.msra.mxu1 %v2195_v43  ;;  %1986 = vmatprep.subr.bf16.mxu0 %v2196_v44  ;;  %v1770_v40 = vcombine.high %v89_v38, %v97_v39  ;;  %v1769_v42 = vcombine.low %v89_v38, %v97_v39  ;;  %v2235_v43 = vld [vmem:[#allocation5 + $0x290] sm:$0xff]   ;;  %v2236_v44 = vld [vmem:[#allocation5 + $0x258] sm:$0xff]   ;;  %v2278_v38 = vld [vmem:[#allocation5 + $0x328] sm:$0xff]  }
  0x70   :  { %2014 = vmatprep.subr.bf16.mxu1 %v2197_v45  ;;  %1326 = vmatprep.mubr.bf16.mxu0 %v1764_v0  ;;  %v2237_v45 = vld [vmem:[#allocation5 + $0x2d8] sm:$0xff]   ;;  %v74_v0 = vld [vmem:[#allocation2 + $0x20] sm:$0xff]  ;;  %v2279_v39 = vld [vmem:[#allocation5 + $0x3a8] sm:$0xff]  }
  0x71   :  { %1375 = vmatprep.mubr.bf16.mxu1 %v1766_v4  ;;  %v1755_v2 = vcombine.low %v74_v0, %v82_v1  ;;  %v75_v4 = vld [vmem:[#allocation2 + $0x28] sm:$0xff] }
  0x72   :  { %1987 = vmatpush3.bf16.msra.mxu0 %v2198_v46  ;;  %v2238_v46 = vld [vmem:[#allocation5 + $0x218] sm:$0xff]  }
  0x73   :  { %2015 = vmatpush3.bf16.msra.mxu1 %v2199_v47  ;;  %1988 = vmatprep.subr.bf16.mxu0 %v2200_v48  ;;  %v2239_v47 = vld [vmem:[#allocation5 + $0x298] sm:$0xff]   ;;  %v2240_v48 = vld [vmem:[#allocation5 + $0x260] sm:$0xff]  }
  0x74   :  { %2016 = vmatprep.subr.bf16.mxu1 %v2201_v49  ;;  %v2241_v49 = vld [vmem:[#allocation5 + $0x2e0] sm:$0xff]  }
  0x75   :  { %1327 = vmatmul.mubr.bf16.gmra.mrb[4].mxu0 %v1763_v3  ;;  %v1756_v3 = vcombine.high %v74_v0, %v82_v1 }
  0x76   :  { %1989 = vmatpush3.bf16.msra.mxu0 %v2202_v50  ;;  %1376 = vmatmul.mubr.bf16.gmra.mrb[4].mxu1 %v1765_v6  ;;  %v2242_v50 = vld [vmem:[#allocation5 + $0x220] sm:$0xff]  }
  0x77   :  { %2017 = vmatpush3.bf16.msra.mxu1 %v2203_v51  ;;  %1990 = vmatprep.subr.bf16.mxu0 %v2204_v52  ;;  %v2243_v51 = vld [vmem:[#allocation5 + $0x2a0] sm:$0xff]   ;;  %v2244_v52 = vld [vmem:[#allocation5 + $0x268] sm:$0xff]  }
  0x78   :  { %2018 = vmatprep.subr.bf16.mxu1 %v2205_v53  ;;  %1416 = vmatprep.mubr.bf16.mxu0 %v1752_v21  ;;  %v2245_v53 = vld [vmem:[#allocation5 + $0x2e8] sm:$0xff]   ;;  %v2265_v21 = vld [vmem:[#allocation5 + $0x3d0] sm:$0xff]  }
  0x79   :  { %1465 = vmatprep.mubr.bf16.mxu1 %v1754_v23  ;;  %v99_v23 = vld [vmem:[#allocation2 + $0xe8] sm:$0xff] }
  0x7a   :  { %1991 = vmatpush3.bf16.msra.mxu0 %v2206_v54  ;;  %v2246_v54 = vld [vmem:[#allocation5 + $0x228] sm:$0xff]  }
  0x7b   :  { %2019 = vmatpush3.bf16.msra.mxu1 %v2207_v55  ;;  %1992 = vmatprep.subr.bf16.mxu0 %v2208_v56  ;;  %v2247_v55 = vld [vmem:[#allocation5 + $0x2a8] sm:$0xff]   ;;  %v2248_v56 = vld [vmem:[#allocation5 + $0x270] sm:$0xff]  }
  0x7c   :  { %2020 = vmatprep.subr.bf16.mxu1 %v2209_v57  ;;  %v2249_v57 = vld [vmem:[#allocation5 + $0x2f0] sm:$0xff]  }
  0x7e   :  { %1993 = vmatpush3.bf16.msra.mxu0 %v2210_v58  ;;  %v2250_v58 = vld [vmem:[#allocation5 + $0x230] sm:$0xff]  }
  0x7f   :  { %2021 = vmatpush3.bf16.msra.mxu1 %v2211_v59  ;;  %1994 = vmatprep.subr.bf16.mxu0 %v2212_v60  ;;  %v2251_v59 = vld [vmem:[#allocation5 + $0x2b0] sm:$0xff]   ;;  %v2252_v60 = vld [vmem:[#allocation5 + $0x278] sm:$0xff]  }
  0x80   :  { %2022 = vmatprep.subr.bf16.mxu1 %v2213_v61  ;;  %v2253_v61 = vld [vmem:[#allocation5 + $0x2f8] sm:$0xff]  }
  0x82   :  { %1995 = vmatpush3.bf16.msra.mxu0 %v2214_v5  ;;  %v83_v5 = vld [vmem:[#allocation2 + $0x68] sm:$0xff] }
  0x83   :  { %2023 = vmatpush3.bf16.msra.mxu1 %v2215_v7  ;;  %1996 = vmatprep.subr.bf16.mxu0 %v2216_v8  ;;  %v1757_v6 = vcombine.low %v75_v4, %v83_v5  ;;  %v1758_v7 = vcombine.high %v75_v4, %v83_v5  ;;  %v2256_v8 = vld [vmem:[#allocation5 + $0x340] sm:$0xff]  }
  0x84   :  { %2024 = vmatprep.subr.bf16.mxu1 %v2217_v9  ;;  %v2257_v9 = vld [vmem:[#allocation5 + $0x3c0] sm:$0xff]  }
  0x86   :  { %1997 = vmatpush3.bf16.msra.mxu0 %v2218_v10  ;;  %v2258_v10 = vld [vmem:[#allocation5 + $0x300] sm:$0xff]  }
  0x87   :  { %2025 = vmatpush3.bf16.msra.mxu1 %v2219_v11  ;;  %1998 = vmatprep.subr.bf16.mxu0 %v2220_v12  ;;  %v2259_v11 = vld [vmem:[#allocation5 + $0x380] sm:$0xff]   ;;  %v2260_v12 = vld [vmem:[#allocation5 + $0x348] sm:$0xff]  }
  0x88   :  { %2026 = vmatprep.subr.bf16.mxu1 %v2221_v13  ;;  %v2261_v13 = vld [vmem:[#allocation5 + $0x3c8] sm:$0xff]  }
  0x8a   :  { %1999 = vmatpush3.bf16.msra.mxu0 %v2222_v14  ;;  %v2262_v14 = vld [vmem:[#allocation5 + $0x308] sm:$0xff]  }
  0x8b   :  { %2027 = vmatpush3.bf16.msra.mxu1 %v2223_v15  ;;  %2040 = vmatprep.subr.bf16.mxu0 %v2224_v24  ;;  %v2263_v15 = vld [vmem:[#allocation5 + $0x388] sm:$0xff]  }
  0x8c   :  { %2068 = vmatprep.subr.bf16.mxu1 %v2225_v25  ;;  %v2266_v25 = vld [vmem:[#allocation5 + $0x310] sm:$0xff]  }
  0x8d   :  { %1417 = vmatmul.mubr.bf16.vlgmr.msra.gmra.mrb[8].mxu0 %v1751_v20  ;;  %v2264_v20 = vld [vmem:[#allocation5 + $0x350] sm:$0xff]  }
  0x8e   :  { %1466 = vmatmul.mubr.bf16.vlgmr.msra.gmra.mrb[8].mxu1 %v1753_v22  ;;  %2041 = vmatpush3.bf16.msra.mxu0 %v2226_v26  ;;  %v91_v22 = vld [vmem:[#allocation2 + $0xa8] sm:$0xff] }
  0x8f   :  { %2069 = vmatpush3.bf16.msra.mxu1 %v2227_v27  ;;  %2042 = vmatprep.subr.bf16.mxu0 %v2228_v28  ;;  %v1774_v24 = vcombine.high %v91_v22, %v99_v23  ;;  %v1773_v26 = vcombine.low %v91_v22, %v99_v23  ;;  %v2267_v27 = vld [vmem:[#allocation5 + $0x390] sm:$0xff]   ;;  %v2268_v28 = vld [vmem:[#allocation5 + $0x358] sm:$0xff]  }
  0x90   :  { %2070 = vmatprep.subr.bf16.mxu1 %v2229_v29  ;;  %1424 = vmatprep.mubr.bf16.mxu0 %v1768_v34  ;;  %v2269_v29 = vld [vmem:[#allocation5 + $0x3d8] sm:$0xff]   ;;  %v2274_v34 = vld [vmem:[#allocation5 + $0x320] sm:$0xff]  }
  0x91   :  { %1473 = vmatprep.mubr.bf16.mxu1 %v1770_v40  ;;  %v2280_v40 = vld [vmem:[#allocation5 + $0x370] sm:$0xff]  }
  0x92   :  { %2043 = vmatpush3.bf16.msra.mxu0 %v2230_v30  ;;  %v2270_v30 = vld [vmem:[#allocation5 + $0x318] sm:$0xff]  }
  0x93   :  { %2071 = vmatpush3.bf16.msra.mxu1 %v2231_v31  ;;  %2044 = vmatprep.subr.bf16.mxu0 %v2232_v36  ;;  %v2271_v31 = vld [vmem:[#allocation5 + $0x398] sm:$0xff]   ;;  %v2276_v36 = vld [vmem:[#allocation5 + $0x368] sm:$0xff]  }
  0x94   :  { %2072 = vmatprep.subr.bf16.mxu1 %v2233_v37  ;;  %v2277_v37 = vld [vmem:[#allocation5 + $0x3e8] sm:$0xff]  }
  0x95   :  { %1425 = vmatmul.mubr.bf16.gmra.mrb[12].mxu0 %v1767_v35  ;;  %v2275_v35 = vld [vmem:[#allocation5 + $0x3a0] sm:$0xff]  }
  0x96   :  { %2045 = vmatpush3.bf16.msra.mxu0 %v2234_v41  ;;  %1474 = vmatmul.mubr.bf16.gmra.mrb[12].mxu1 %v1769_v42  ;;  %v2281_v41 = vld [vmem:[#allocation5 + $0x3f0] sm:$0xff]  }
  0x97   :  { %2073 = vmatpush3.bf16.msra.mxu1 %v2235_v43  ;;  %2046 = vmatprep.subr.bf16.mxu0 %v2236_v44  ;;  %v2282_v42 = vld [vmem:[#allocation5 + $0x330] sm:$0xff]   ;;  %v2284_v44 = vld [vmem:[#allocation5 + $0x378] sm:$0xff]  }
  0x98   :  { %2074 = vmatprep.subr.bf16.mxu1 %v2237_v45  ;;  %1514 = vmatprep.mubr.bf16.mxu0 %v1756_v3  ;;  %v2283_v43 = vld [vmem:[#allocation5 + $0x3b0] sm:$0xff]   ;;  %v2285_v45 = vld [vmem:[#allocation5 + $0x3f8] sm:$0xff]  }
  0x99   :  { %1563 = vmatprep.mubr.bf16.mxu1 %v1758_v7 }
  0x9a   :  { %2047 = vmatpush3.bf16.msra.mxu0 %v2238_v46  ;;  %v2286_v46 = vld [vmem:[#allocation5 + $0x338] sm:$0xff]  }
  0x9b   :  { %2075 = vmatpush3.bf16.msra.mxu1 %v2239_v47  ;;  %2048 = vmatprep.subr.bf16.mxu0 %v2240_v48  ;;  %v2287_v47 = vld [vmem:[#allocation5 + $0x3b8] sm:$0xff]   ;;  %v76_v48 = vld [vmem:[#allocation2 + $0x30] sm:$0xff] }
  0x9c   :  { %2076 = vmatprep.subr.bf16.mxu1 %v2241_v49  ;;  %v84_v49 = vld [vmem:[#allocation2 + $0x70] sm:$0xff] }
  0x9e   :  { %2049 = vmatpush3.bf16.msra.mxu0 %v2242_v50  ;;  %v77_v50 = vld [vmem:[#allocation2 + $0x38] sm:$0xff] }
  0x9f   :  { %2077 = vmatpush3.bf16.msra.mxu1 %v2243_v51  ;;  %2050 = vmatprep.subr.bf16.mxu0 %v2244_v52  ;;  %v1759_v51 = vcombine.low %v76_v48, %v84_v49  ;;  %v1760_v52 = vcombine.high %v76_v48, %v84_v49 }
  0xa0   :  { %2078 = vmatprep.subr.bf16.mxu1 %v2245_v53  ;;  %v85_v53 = vld [vmem:[#allocation2 + $0x78] sm:$0xff] }
  0xa2   :  { %2051 = vmatpush3.bf16.msra.mxu0 %v2246_v54  ;;  %v92_v54 = vld [vmem:[#allocation2 + $0xb0] sm:$0xff] }
  0xa3   :  { %2079 = vmatpush3.bf16.msra.mxu1 %v2247_v55  ;;  %2052 = vmatprep.subr.bf16.mxu0 %v2248_v56  ;;  %v100_v55 = vld [vmem:[#allocation2 + $0xf0] sm:$0xff]  ;;  %v1761_v56 = vcombine.low %v77_v50, %v85_v53 }
  0xa4   :  { %2080 = vmatprep.subr.bf16.mxu1 %v2249_v57  ;;  %v1762_v57 = vcombine.high %v77_v50, %v85_v53 }
  0xa6   :  { %2053 = vmatpush3.bf16.msra.mxu0 %v2250_v58  ;;  %v1776_v58 = vcombine.high %v92_v54, %v100_v55 }
  0xa7   :  { %2081 = vmatpush3.bf16.msra.mxu1 %v2251_v59  ;;  %2054 = vmatprep.subr.bf16.mxu0 %v2252_v60  ;;  %v93_v59 = vld [vmem:[#allocation2 + $0xb8] sm:$0xff] }
  0xa8   :  { %2082 = vmatprep.subr.bf16.mxu1 %v2253_v61  ;;  %v101_v60 = vld [vmem:[#allocation2 + $0xf8] sm:$0xff] }
  0xa9   :  { %v1778_v61 = vcombine.high %v93_v59, %v101_v60 }
  0xaa   :  { %2055 = vmatpush3.bf16.msra.mxu0 %v2254_v62  ;;  %v1775_v62 = vcombine.low %v92_v54, %v100_v55 }
  0xab   :  { %2083 = vmatpush3.bf16.msra.mxu1 %v2255_v63  ;;  %2096 = vmatprep.subr.bf16.mxu0 %v2256_v8  ;;  %v1777_v63 = vcombine.low %v93_v59, %v101_v60 }
  0xac   :  { %2124 = vmatprep.subr.bf16.mxu1 %v2257_v9 }
  0xad   :  { %1515 = vmatmul.mubr.bf16.vlgmr.msra.gmra.mrb[16].mxu0 %v1755_v2 }
  0xae   :  { %1564 = vmatmul.mubr.bf16.vlgmr.msra.gmra.mrb[16].mxu1 %v1757_v6  ;;  %2097 = vmatpush3.bf16.msra.mxu0 %v2258_v10 }
  0xaf   :  { %2125 = vmatpush3.bf16.msra.mxu1 %v2259_v11  ;;  %2098 = vmatprep.subr.bf16.mxu0 %v2260_v12 }
  0xb0   :  { %2126 = vmatprep.subr.bf16.mxu1 %v2261_v13  ;;  %1522 = vmatprep.mubr.bf16.mxu0 %v1772_v18 }
  0xb1   :  { %1571 = vmatprep.mubr.bf16.mxu1 %v1774_v24 }
  0xb2   :  { %2099 = vmatpush3.bf16.msra.mxu0 %v2262_v14 }
  0xb3   :  { %2127 = vmatpush3.bf16.msra.mxu1 %v2263_v15  ;;  %2100 = vmatprep.subr.bf16.mxu0 %v2264_v20 }
  0xb4   :  { %2128 = vmatprep.subr.bf16.mxu1 %v2265_v21 }
  0xb5   :  { %1523 = vmatmul.mubr.bf16.gmra.mrb[20].mxu0 %v1771_v19 }
  0xb6   :  { %2101 = vmatpush3.bf16.msra.mxu0 %v2266_v25  ;;  %1572 = vmatmul.mubr.bf16.gmra.mrb[20].mxu1 %v1773_v26 }
  0xb7   :  { %2129 = vmatpush3.bf16.msra.mxu1 %v2267_v27  ;;  %2102 = vmatprep.subr.bf16.mxu0 %v2268_v28 }
  0xb8   :  { %2130 = vmatprep.subr.bf16.mxu1 %v2269_v29  ;;  %1612 = vmatprep.mubr.bf16.mxu0 %v1760_v52 }
  0xb9   :  { %1661 = vmatprep.mubr.bf16.mxu1 %v1762_v57 }
  0xba   :  { %2103 = vmatpush3.bf16.msra.mxu0 %v2270_v30 }
  0xbb   :  { %2131 = vmatpush3.bf16.msra.mxu1 %v2271_v31  ;;  %2104 = vmatprep.subr.bf16.mxu0 %v2272_v32 }
  0xbc   :  { %2132 = vmatprep.subr.bf16.mxu1 %v2273_v33 }
  0xbe   :  { %2105 = vmatpush3.bf16.msra.mxu0 %v2274_v34 }
  0xbf   :  { %2133 = vmatpush3.bf16.msra.mxu1 %v2275_v35  ;;  %2106 = vmatprep.subr.bf16.mxu0 %v2276_v36 }
  0xc0   :  { %2134 = vmatprep.subr.bf16.mxu1 %v2277_v37 }
  0xc2   :  { %2107 = vmatpush3.bf16.msra.mxu0 %v2278_v38 }
  0xc3   :  { %2135 = vmatpush3.bf16.msra.mxu1 %v2279_v39  ;;  %2108 = vmatprep.subr.bf16.mxu0 %v2280_v40 }
  0xc4   :  { %2136 = vmatprep.subr.bf16.mxu1 %v2281_v41 }
  0xc6   :  { %2109 = vmatpush3.bf16.msra.mxu0 %v2282_v42 }
  0xc7   :  { %2137 = vmatpush3.bf16.msra.mxu1 %v2283_v43  ;;  %2110 = vmatprep.subr.bf16.mxu0 %v2284_v44 }
  0xc8   :  { %2138 = vmatprep.subr.bf16.mxu1 %v2285_v45 }
  0xca   :  { %2111 = vmatpush3.bf16.msra.mxu0 %v2286_v46 }
  0xcb   :  { %2139 = vmatpush3.bf16.msra.mxu1 %v2287_v47 }
  0xcd   :  { %1613 = vmatmul.mubr.bf16.vlgmr.msra.gmra.mrb[24].mxu0 %v1759_v51 }
  0xce   :  { %1662 = vmatmul.mubr.bf16.vlgmr.msra.gmra.mrb[24].mxu1 %v1761_v56  ;;  %1620 = vmatprep.mubr.bf16.mxu0 %v1776_v58 }
  0xcf   :  { %1669 = vmatprep.mubr.bf16.mxu1 %v1778_v61 }
  0xd5   :  { %1621 = vmatmul.mubr.bf16.gmra.mrb[28].mxu0 %v1775_v62 }
  0xd6   :  { %1670 = vmatmul.mubr.bf16.gmra.mrb[28].mxu1 %v1777_v63 }
 0x140   :  { %v1944_v0 = vpop.f32.mrb[0].mxu0 }
 0x141   :  { %v1972_v1 = vpop.f32.mrb[0].mxu1  ;;  %v1945_v2 = vpop.f32.mrb[1].mxu0 }
 0x142   :  { %v1946_v3 = vadd.f32 %v1945_v2, %v1944_v0  ;;  %v1973_v4 = vpop.f32.mrb[1].mxu1  ;;  %v1947_v5 = vpop.f32.mrb[2].mxu0 }
 0x143   :  { %v1974_v6 = vadd.f32 %v1973_v4, %v1972_v1  ;;  %v1975_v7 = vpop.f32.mrb[2].mxu1  ;;  %v1948_v8 = vpop.f32.mrb[3].mxu0 }
 0x144   :  { %v1949_v9 = vadd.f32 %v1948_v8, %v1947_v5  ;;  %v1976_v10 = vpop.f32.mrb[3].mxu1 }
 0x145   :  { %v1370_v11 = vadd.f32 %v1974_v6, %v1946_v3  ;;  %v1977_v12 = vadd.f32 %v1976_v10, %v1975_v7 }
 0x147   :  { %v1373_v13 = vadd.f32 %v1977_v12, %v1949_v9 }
 0x148   :  { %v1950_v14 = vpop.f32.mrb[4].mxu0 }
 0x149   :  { %v1978_v15 = vpop.f32.mrb[4].mxu1  ;;  %v1951_v16 = vpop.f32.mrb[5].mxu0 }
 0x14a   :  { %v1952_v17 = vadd.f32 %v1951_v16, %v1950_v14  ;;  %v1979_v18 = vpop.f32.mrb[5].mxu1  ;;  %v1953_v19 = vpop.f32.mrb[6].mxu0 }
 0x14b   :  { %v1980_v20 = vadd.f32 %v1979_v18, %v1978_v15  ;;  %v1981_v21 = vpop.f32.mrb[6].mxu1  ;;  %v1954_v22 = vpop.f32.mrb[7].mxu0 }
 0x14c   :  { %v1955_v23 = vadd.f32 %v1954_v22, %v1953_v19  ;;  %v1982_v24 = vpop.f32.mrb[7].mxu1 }
 0x14d   :  { %v1378_v25 = vadd.f32 %v1980_v20, %v1952_v17  ;;  %v1983_v26 = vadd.f32 %v1982_v24, %v1981_v21 }
 0x14f   :  { %v1381_v27 = vadd.f32 %v1983_v26, %v1955_v23 }
 0x160   :  { %v2000_v28 = vpop.f32.mrb[8].mxu0 }
 0x161   :  { %v2028_v29 = vpop.f32.mrb[8].mxu1  ;;  %v2001_v30 = vpop.f32.mrb[9].mxu0 }
 0x162   :  { %v2029_v31 = vpop.f32.mrb[9].mxu1  ;;  %v2002_v32 = vadd.f32 %v2001_v30, %v2000_v28  ;;  %v2003_v34 = vpop.f32.mrb[10].mxu0 }
 0x163   :  { %v2030_v33 = vadd.f32 %v2029_v31, %v2028_v29  ;;  %v2031_v35 = vpop.f32.mrb[10].mxu1  ;;  %v2004_v36 = vpop.f32.mrb[11].mxu0 }
 0x164   :  { %v2032_v37 = vpop.f32.mrb[11].mxu1  ;;  %v1419_v38 = vadd.f32 %v2002_v32, %v1370_v11  ;;  %v2005_v39 = vadd.f32 %v2004_v36, %v2003_v34 }
 0x165   :  { %v2033_v40 = vadd.f32 %v2032_v37, %v2031_v35 }
 0x166   :  { %v1468_v41 = vadd.f32 %v2030_v33, %v1419_v38  ;;  %v1422_v42 = vadd.f32 %v2005_v39, %v1373_v13 }
 0x168   :  { %v1471_v43 = vadd.f32 %v2033_v40, %v1422_v42  ;;  %v2006_v44 = vpop.f32.mrb[12].mxu0  ;;  %v1907_v40 = vld [vmem:[#allocation7] ss:$0 sm:$0xff] }
 0x169   :  { %v2007_v45 = vpop.f32.mrb[13].mxu0  ;;  %v2034_v50 = vpop.f32.mrb[12].mxu1 }
 0x16a   :  { %v2008_v46 = vadd.f32 %v2007_v45, %v2006_v44  ;;  %v2009_v47 = vpop.f32.mrb[14].mxu0  ;;  %v2035_v52 = vpop.f32.mrb[13].mxu1  ;;  %v1908_v44 = vld [vmem:[#allocation8] ss:$0 sm:$0xff] }
 0x16b   :  { %v2010_v48 = vpop.f32.mrb[15].mxu0  ;;  %v2036_v54 = vadd.f32 %v2035_v52, %v2034_v50  ;;  %v2037_v55 = vpop.f32.mrb[14].mxu1 }
 0x16c   :  { %v1427_v49 = vadd.f32 %v2008_v46, %v1378_v25  ;;  %v2011_v51 = vadd.f32 %v2010_v48, %v2009_v47  ;;  %v2038_v56 = vpop.f32.mrb[15].mxu1 }
 0x16d   :  { %v2039_v58 = vadd.f32 %v2038_v56, %v2037_v55 }
 0x16e   :  { %v1430_v53 = vadd.f32 %v2011_v51, %v1381_v27  ;;  %v1476_v57 = vadd.f32 %v2036_v54, %v1427_v49 }
 0x170   :  { %v1479_v59 = vadd.f32 %v2039_v58, %v1430_v53 }
 0x180   :  { %v2056_v60 = vpop.f32.mrb[16].mxu0 }
 0x181   :  { %v2084_v61 = vpop.f32.mrb[16].mxu1  ;;  %v2057_v62 = vpop.f32.mrb[17].mxu0 }
 0x182   :  { %v2058_v63 = vadd.f32 %v2057_v62, %v2056_v60  ;;  %v2085_v0 = vpop.f32.mrb[17].mxu1  ;;  %v2059_v1 = vpop.f32.mrb[18].mxu0 }
 0x183   :  { %v2086_v2 = vadd.f32 %v2085_v0, %v2084_v61  ;;  %v2087_v3 = vpop.f32.mrb[18].mxu1  ;;  %v2060_v4 = vpop.f32.mrb[19].mxu0 }
 0x184   :  { %v1517_v5 = vadd.f32 %v2058_v63, %v1468_v41  ;;  %v2061_v6 = vadd.f32 %v2060_v4, %v2059_v1  ;;  %v2088_v7 = vpop.f32.mrb[19].mxu1 }
 0x185   :  { %v2089_v8 = vadd.f32 %v2088_v7, %v2087_v3 }
 0x186   :  { %v1566_v9 = vadd.f32 %v2086_v2, %v1517_v5  ;;  %v1520_v10 = vadd.f32 %v2061_v6, %v1471_v43 }
 0x188   :  { %v1569_v11 = vadd.f32 %v2089_v8, %v1520_v10  ;;  %v2062_v12 = vpop.f32.mrb[20].mxu0 }
 0x189   :  { %v2063_v13 = vpop.f32.mrb[21].mxu0  ;;  %v2090_v16 = vpop.f32.mrb[20].mxu1 }
 0x18a   :  { %v2064_v14 = vadd.f32 %v2063_v13, %v2062_v12  ;;  %v2065_v15 = vpop.f32.mrb[22].mxu0  ;;  %v2091_v20 = vpop.f32.mrb[21].mxu1 }
 0x18b   :  { %v2066_v17 = vpop.f32.mrb[23].mxu0  ;;  %v2092_v21 = vadd.f32 %v2091_v20, %v2090_v16  ;;  %v2093_v22 = vpop.f32.mrb[22].mxu1 }
 0x18c   :  { %v1525_v18 = vadd.f32 %v2064_v14, %v1476_v57  ;;  %v2067_v19 = vadd.f32 %v2066_v17, %v2065_v15  ;;  %v2094_v24 = vpop.f32.mrb[23].mxu1 }
 0x18d   :  { %v2095_v26 = vadd.f32 %v2094_v24, %v2093_v22 }
 0x18e   :  { %v1528_v23 = vadd.f32 %v2067_v19, %v1479_v59  ;;  %v1574_v25 = vadd.f32 %v2092_v21, %v1525_v18 }
 0x190   :  { %v1577_v27 = vadd.f32 %v2095_v26, %v1528_v23 }
 0x1a0   :  { %v2112_v28 = vpop.f32.mrb[24].mxu0 }
 0x1a1   :  { %v2140_v29 = vpop.f32.mrb[24].mxu1  ;;  %v2113_v30 = vpop.f32.mrb[25].mxu0 }
 0x1a2   :  { %v2114_v31 = vadd.f32 %v2113_v30, %v2112_v28  ;;  %v2141_v32 = vpop.f32.mrb[25].mxu1  ;;  %v2115_v33 = vpop.f32.mrb[26].mxu0 }
 0x1a3   :  { %v2142_v34 = vadd.f32 %v2141_v32, %v2140_v29  ;;  %v2143_v35 = vpop.f32.mrb[26].mxu1  ;;  %v2116_v36 = vpop.f32.mrb[27].mxu0 }
 0x1a4   :  { %v1615_v37 = vadd.f32 %v2114_v31, %v1566_v9  ;;  %v2117_v38 = vadd.f32 %v2116_v36, %v2115_v33  ;;  %v2144_v39 = vpop.f32.mrb[27].mxu1 }
 0x1a5   :  { %v2145_v41 = vadd.f32 %v2144_v39, %v2143_v35 }
 0x1a6   :  { %v1664_v42 = vadd.f32 %v2142_v34, %v1615_v37  ;;  %v1618_v43 = vadd.f32 %v2117_v38, %v1569_v11 }
 0x1a8   :  { %v1685_v45 = vmul.f32 %v1907_v40, %v1664_v42  ;;  %v1667_v46 = vadd.f32 %v2145_v41, %v1618_v43  ;;  %v2118_v47 = vpop.f32.mrb[28].mxu0 }
 0x1a9   :  { %v2146_v48 = vpop.f32.mrb[28].mxu1  ;;  %v2119_v49 = vpop.f32.mrb[29].mxu0 }
 0x1aa   :  { %v1696_v50 = vadd.f32 %v1908_v44, %v1685_v45  ;;  %v1686_v51 = vmul.f32 %v1907_v40, %v1667_v46  ;;  %v2120_v52 = vadd.f32 %v2119_v49, %v2118_v47  ;;  %v2147_v53 = vpop.f32.mrb[29].mxu1  ;;  %v2121_v54 = vpop.f32.mrb[30].mxu0 }
 0x1ab   :  { %v2148_v55 = vadd.f32 %v2147_v53, %v2146_v48  ;;  %v2149_v56 = vpop.f32.mrb[30].mxu1  ;;  %v2122_v57 = vpop.f32.mrb[31].mxu0 }
 0x1ac   :  { %v1700_v58 = vmul.f32 0.2, %v1696_v50  ;;  %v1697_v59 = vadd.f32 %v1908_v44, %v1686_v51  ;;  %v1623_v60 = vadd.f32 %v2120_v52, %v1574_v25  ;;  %v2123_v61 = vadd.f32 %v2122_v57, %v2121_v54  ;;  %v2150_v62 = vpop.f32.mrb[31].mxu1 }
 0x1ad   :  { %v2151_v63 = vadd.f32 %v2150_v62, %v2149_v56 }
 0x1ae   :  { %v1701_v0 = vmul.f32 0.2, %v1697_v59  ;;  %v1672_v1 = vadd.f32 %v2148_v55, %v1623_v60  ;;  %v1626_v2 = vadd.f32 %v2123_v61, %v1577_v27  ;;  %v1704_v5 = vmax.f32 %v1696_v50, %v1700_v58 }
 0x1b0   :  { %v1687_v3 = vmul.f32 %v1907_v40, %v1672_v1  ;;  %v1675_v4 = vadd.f32 %v2151_v63, %v1626_v2  ;;  %v1705_v6 = vmax.f32 %v1697_v59, %v1701_v0 }
 0x1b2   :  { %v1698_v7 = vadd.f32 %v1908_v44, %v1687_v3  ;;  %v1688_v8 = vmul.f32 %v1907_v40, %v1675_v4  ;;  %v1920_v9 = vpack.c.bf16 %v1705_v6, %v1704_v5 }
 0x1b4   :  { %v1702_v10 = vmul.f32 0.2, %v1698_v7  ;;  %v1699_v11 = vadd.f32 %v1908_v44, %v1688_v8  ;;  %1921 = vst [vmem:[#allocation10] sm:$0xff] %v1920_v9  }
 0x1b6   :  { %v1703_v12 = vmul.f32 0.2, %v1699_v11  ;;  %v1706_v13 = vmax.f32 %v1698_v7, %v1702_v10 }
 0x1b8   :  { %v1707_v14 = vmax.f32 %v1699_v11, %v1703_v12 }
 0x1ba   :  { %v1925_v15 = vpack.c.bf16 %v1707_v14, %v1706_v13 }
 0x1bc   :  { %1927 = vst [vmem:[#allocation10 + $0x8] sm:$0xff] %v1925_v15  }
 0x1bd   :  { %2387 = shalt.err (!%p2384_p8)
}
 0x1be   :  { %s2388_s18 = scalar_lea.hbm %s2510_s4, 256 }
 0x1bf   :  { %p2389_p9 = scmp.ne.s32.totalorder %s2510_s4, %s2388_s18  ;;  %p2392_p10 = scmp.lt.u32.totalorder %s2388_s18, %s2510_s4 }
 0x1c1   :  { %p2394_p11 = pnand %p2392_p10, %p2389_p9 }
 0x1c3   :  { %2397 = shalt.err (!%p2394_p11)
}
 0x1c4   :  { %1739 = dma.vmem_to_hbm [thread:$0]  %s1734_s14, 256, %s2510_s4, [#allocation4], %s2407_s25, %s2407_s25, %s2408_s26  }
 0x1c5   :  { %2404 = dma.done.wait [#allocation4], 256  }
 0x1c6   :  { %2405 = vsyncadd [#allocation4], 4294967040 }
 0x1c7   :  { %1743 = vsyncpa [#allocation3], 1 }
 0x1c8   :  { %1744 = vsyncpa [#allocation6], 1 }
 0x1c9   :  { %1745 = vsyncpa [#allocation9], 1 }
 0x1ca   :  { %1746 = vsyncpa [#allocation4], 1 }

// kernel: discriminator_forward.6
= control target key start
LH: loop header
LB: loop body
LE: loop exit
PB: predicated region body
PF: predicated region fallthrough
CT: control target
= control target key end

     0   :  { %9 = vsyncpa [#allocation3], 0  ;;  %s3006_s0 = inlined_call_operand.hbm [shape: bf16[8,2048], index: 0, kind: input, shape index: {}]   ;;  %s3007_s1 = inlined_call_operand.hbm [shape: bf16[2048,256], index: 1, kind: input, shape index: {}]   ;;  %s3008_s2 = inlined_call_operand.hbm [shape: f32[1,256], index: 2, kind: input, shape index: {}]   ;;  %s3009_s3 = inlined_call_operand.hbm [shape: f32[1,256], index: 3, kind: input, shape index: {}]   ;;  %s3010_s4 = inlined_call_operand.hbm [shape: bf16[8,256], index: 4, kind: output, shape index: {}]  }
   0x1   :  { %10 = vsyncpa [#allocation6], 0 }
   0x2   :  { %11 = vsyncpa [#allocation9], 0 }
   0x3   :  { %12 = vsyncpa [#allocation4], 0  ;;  %s2878_s15 = smov [#allocation5]   ;;  %s2760_s19 = scalar_lea.hbm %s3007_s1, 32768 }
   0x4   :  { %s28_s16 = sshll.u32 %s2878_s15, 4  ;;  %p2761_p0 = scmp.ne.s32.totalorder %s3007_s1, %s2760_s19  ;;  %s29_s16 = int_to_ptr.vmem [resolvable:$true] %s28_s16 }
   0x5   :  { %p2764_p1 = scmp.lt.u32.totalorder %s2760_s19, %s3007_s1 }
   0x7   :  { %p2766_p2 = pnand %p2764_p1, %p2761_p0 }
   0x9   :  { %2769 = shalt.err (!%p2766_p2)
}
   0xa   :  { %s2770_s24 = scalar_lea.vmem %s29_s16, 32768  ;;  %p2775_p4 = scmp.lt.s32.totalorder %s29_s16, %s29_s16 }
   0xb   :  { %p2771_p3 = scmp.ne.s32.totalorder %s29_s16, %s2770_s24  ;;  %p2776_p5 = scmp.lt.s32.totalorder %s2770_s24, %s2770_s24 }
   0xd   :  { %p2777_p6 = por %p2776_p5, %p2775_p4 }
   0xf   :  { %p2778_p7 = pnand %p2777_p6, %p2771_p3 }
  0x11   :  { %2781 = shalt.err (!%p2778_p7)
}
  0x12   :  { %s2879_s25 = smov 128   ;;  %s2880_s26 = smov 8  }
  0x13   :  { %34 = dma.hbm_to_vmem [thread:$0]  %s3007_s1, 32768, %s29_s16, [#allocation6], %s2879_s25, %s2879_s25, %s2880_s26  }
  0x14   :  { %s2881_s29 = smov [#allocation2]   ;;  %s2882_s5 = smov [#allocation7]  }
  0x15   :  { %s19_s30 = sshll.u32 %s2881_s29, 4  ;;  %s41_s6 = sshll.u32 %s2882_s5, 4  ;;  %s20_s30 = int_to_ptr.vmem [resolvable:$true] %s19_s30  ;;  %s42_s6 = int_to_ptr.vmem [resolvable:$true] %s41_s6 }
  0x16   :  { %s2782_s9 = scalar_lea.hbm %s3006_s0, 1024 }
  0x17   :  { %p2783_p8 = scmp.ne.s32.totalorder %s3006_s0, %s2782_s9  ;;  %p2786_p9 = scmp.lt.u32.totalorder %s2782_s9, %s3006_s0 }
  0x19   :  { %p2788_p10 = pnand %p2786_p9, %p2783_p8 }
  0x1b   :  { %2791 = shalt.err (!%p2788_p10)
}
  0x1c   :  { %s2792_s1 = scalar_lea.vmem %s20_s30, 1024  ;;  %p2797_p12 = scmp.lt.s32.totalorder %s20_s30, %s20_s30 }
  0x1d   :  { %p2793_p11 = scmp.ne.s32.totalorder %s20_s30, %s2792_s1  ;;  %p2798_p13 = scmp.lt.s32.totalorder %s2792_s1, %s2792_s1 }
  0x1f   :  { %p2799_p0 = por %p2798_p13, %p2797_p12 }
  0x21   :  { %p2800_p1 = pnand %p2799_p0, %p2793_p11 }
  0x23   :  { %2803 = shalt.err (!%p2800_p1)
}
  0x24   :  { %22 = dma.hbm_to_vmem [thread:$0]  %s3006_s0, 1024, %s20_s30, [#allocation3]  }
  0x25   :  { %s2804_s18 = scalar_lea.hbm %s3008_s2, 32 }
  0x26   :  { %p2805_p2 = scmp.ne.s32.totalorder %s3008_s2, %s2804_s18  ;;  %p2808_p3 = scmp.lt.u32.totalorder %s2804_s18, %s3008_s2 }
  0x28   :  { %p2810_p4 = pnand %p2808_p3, %p2805_p2 }
  0x2a   :  { %2813 = shalt.err (!%p2810_p4)
}
  0x2b   :  { %s2814_s23 = scalar_lea.vmem %s42_s6, 32  ;;  %p2819_p6 = scmp.lt.s32.totalorder %s42_s6, %s42_s6 }
  0x2c   :  { %p2815_p5 = scmp.ne.s32.totalorder %s42_s6, %s2814_s23  ;;  %p2820_p7 = scmp.lt.s32.totalorder %s2814_s23, %s2814_s23 }
  0x2e   :  { %p2821_p8 = por %p2820_p7, %p2819_p6 }
  0x30   :  { %p2822_p9 = pnand %p2821_p8, %p2815_p5 }
  0x32   :  { %2825 = shalt.err (!%p2822_p9)
}
  0x33   :  { %44 = dma.hbm_to_vmem [thread:$0]  %s3008_s2, 32, %s42_s6, [#allocation6]  }
  0x34   :  { %s2883_s25 = smov [#allocation8]   ;;  %s2826_s29 = scalar_lea.hbm %s3009_s3, 32 }
  0x35   :  { %s51_s26 = sshll.u32 %s2883_s25, 4  ;;  %p2827_p10 = scmp.ne.s32.totalorder %s3009_s3, %s2826_s29  ;;  %s52_s26 = int_to_ptr.vmem [resolvable:$true] %s51_s26 }
  0x36   :  { %p2830_p11 = scmp.lt.u32.totalorder %s2826_s29, %s3009_s3 }
  0x38   :  { %p2832_p12 = pnand %p2830_p11, %p2827_p10 }
  0x3a   :  { %2835 = shalt.err (!%p2832_p12)
}
  0x3b   :  { %s2836_s9 = scalar_lea.vmem %s52_s26, 32  ;;  %p2841_p0 = scmp.lt.s32.totalorder %s52_s26, %s52_s26 }
  0x3c   :  { %p2837_p13 = scmp.ne.s32.totalorder %s52_s26, %s2836_s9  ;;  %p2842_p1 = scmp.lt.s32.totalorder %s2836_s9, %s2836_s9 }
  0x3e   :  { %p2843_p2 = por %p2842_p1, %p2841_p0 }
  0x40   :  { %p2844_p3 = pnand %p2843_p2, %p2837_p13 }
  0x42   :  { %2847 = shalt.err (!%p2844_p3)
}
  0x43   :  { %54 = dma.hbm_to_vmem [thread:$0]  %s3009_s3, 32, %s52_s26, [#allocation9]  }
  0x44   :  { %2870 = dma.done.wait [#allocation3], 1024  }
  0x45   :  { %2871 = vsyncadd [#allocation3], 4294966272 }
  0x46   :  { %2872 = dma.done.wait [#allocation6], 32800  }
  0x47   :  { %2873 = vsyncadd [#allocation6], 4294934496 }
  0x48   :  { %2874 = dma.done.wait [#allocation9], 32  }
  0x49   :  { %2875 = vsyncadd [#allocation9], 4294967264  ;;  %v2360_v0 = vld [vmem:[#allocation5 + $0x4] ss:$8 sps:$4 sm:$0xff]   ;;  %v2364_v2 = vld [vmem:[#allocation5] ss:$8 sps:$4 sm:$0xff]  }
  0x4a   :  { %v2362_v1 = vld [vmem:[#allocation5 + $0x404] ss:$8 sps:$4 sm:$0xff]   ;;  %1667 = vmatprep.subr.bf16.mxu1 %v2360_v0  ;;  %v2365_v3 = vld [vmem:[#allocation5 + $0x400] ss:$8 sps:$4 sm:$0xff]   ;;  %v2366_v4 = vld [vmem:[#allocation5 + $0x14] ss:$8 sps:$4 sm:$0xff]  }
  0x4b   :  { %1831 = vmatprep.subr.bf16.mxu0 %v2362_v1  ;;  %1668 = vmatpush1.bf16.msra.mxu1 %v2364_v2  ;;  %v2368_v5 = vld [vmem:[#allocation5 + $0x414] ss:$8 sps:$4 sm:$0xff]   ;;  %v2370_v6 = vld [vmem:[#allocation5 + $0x10] ss:$8 sps:$4 sm:$0xff]   ;;  %v2372_v8 = vld [vmem:[#allocation5 + $0x24] ss:$8 sps:$4 sm:$0xff]  }
  0x4c   :  { %1832 = vmatpush1.bf16.msra.mxu0 %v2365_v3  ;;  %1669 = vmatprep.subr.bf16.mxu1 %v2366_v4  ;;  %v2371_v7 = vld [vmem:[#allocation5 + $0x410] ss:$8 sps:$4 sm:$0xff]   ;;  %v2374_v9 = vld [vmem:[#allocation5 + $0x424] ss:$8 sps:$4 sm:$0xff]   ;;  %v2376_v10 = vld [vmem:[#allocation5 + $0x20] ss:$8 sps:$4 sm:$0xff]  }
  0x4d   :  { %1833 = vmatprep.subr.bf16.mxu0 %v2368_v5  ;;  %v2377_v11 = vld [vmem:[#allocation5 + $0x420] ss:$8 sps:$4 sm:$0xff]   ;;  %v2378_v12 = vld [vmem:[#allocation5 + $0x34] ss:$8 sps:$4 sm:$0xff]   ;;  %v2382_v14 = vld [vmem:[#allocation5 + $0x30] ss:$8 sps:$4 sm:$0xff]  }
  0x4e   :  { %v2380_v13 = vld [vmem:[#allocation5 + $0x434] ss:$8 sps:$4 sm:$0xff]   ;;  %v2383_v15 = vld [vmem:[#allocation5 + $0x430] ss:$8 sps:$4 sm:$0xff]   ;;  %v2384_v16 = vld [vmem:[#allocation5 + $0x44] ss:$8 sps:$4 sm:$0xff]  }
  0x4f   :  { %1670 = vmatpush1.bf16.msra.mxu1 %v2370_v6  ;;  %v2386_v17 = vld [vmem:[#allocation5 + $0x444] ss:$8 sps:$4 sm:$0xff]   ;;  %v2388_v18 = vld [vmem:[#allocation5 + $0x40] ss:$8 sps:$4 sm:$0xff]   ;;  %v2390_v20 = vld [vmem:[#allocation5 + $0x54] ss:$8 sps:$4 sm:$0xff]  }
  0x50   :  { %1834 = vmatpush1.bf16.msra.mxu0 %v2371_v7  ;;  %1671 = vmatprep.subr.bf16.mxu1 %v2372_v8  ;;  %v2389_v19 = vld [vmem:[#allocation5 + $0x440] ss:$8 sps:$4 sm:$0xff]   ;;  %v2392_v21 = vld [vmem:[#allocation5 + $0x454] ss:$8 sps:$4 sm:$0xff]   ;;  %v2394_v22 = vld [vmem:[#allocation5 + $0x50] ss:$8 sps:$4 sm:$0xff]  }
  0x51   :  { %1835 = vmatprep.subr.bf16.mxu0 %v2374_v9  ;;  %v2395_v23 = vld [vmem:[#allocation5 + $0x450] ss:$8 sps:$4 sm:$0xff]   ;;  %v2396_v24 = vld [vmem:[#allocation5 + $0x64] ss:$8 sps:$4 sm:$0xff]   ;;  %v2400_v26 = vld [vmem:[#allocation5 + $0x60] ss:$8 sps:$4 sm:$0xff]  }
  0x52   :  { %v2398_v25 = vld [vmem:[#allocation5 + $0x464] ss:$8 sps:$4 sm:$0xff]   ;;  %v2401_v27 = vld [vmem:[#allocation5 + $0x460] ss:$8 sps:$4 sm:$0xff]   ;;  %v2402_v28 = vld [vmem:[#allocation5 + $0x74] ss:$8 sps:$4 sm:$0xff]  }
  0x53   :  { %1672 = vmatpush1.bf16.msra.mxu1 %v2376_v10  ;;  %v2404_v29 = vld [vmem:[#allocation5 + $0x474] ss:$8 sps:$4 sm:$0xff]   ;;  %v2406_v30 = vld [vmem:[#allocation5 + $0x70] ss:$8 sps:$4 sm:$0xff]   ;;  %v2408_v32 = vld [vmem:[#allocation5 + $0x84] ss:$8 sps:$4 sm:$0xff]  }
  0x54   :  { %1836 = vmatpush1.bf16.msra.mxu0 %v2377_v11  ;;  %1673 = vmatprep.subr.bf16.mxu1 %v2378_v12  ;;  %v2407_v31 = vld [vmem:[#allocation5 + $0x470] ss:$8 sps:$4 sm:$0xff]   ;;  %v2410_v33 = vld [vmem:[#allocation5 + $0x484] ss:$8 sps:$4 sm:$0xff]   ;;  %v2412_v34 = vld [vmem:[#allocation5 + $0x80] ss:$8 sps:$4 sm:$0xff]  }
  0x55   :  { %1837 = vmatprep.subr.bf16.mxu0 %v2380_v13  ;;  %v2413_v35 = vld [vmem:[#allocation5 + $0x480] ss:$8 sps:$4 sm:$0xff]   ;;  %v2414_v36 = vld [vmem:[#allocation5 + $0x94] ss:$8 sps:$4 sm:$0xff]   ;;  %v2418_v38 = vld [vmem:[#allocation5 + $0x90] ss:$8 sps:$4 sm:$0xff]  }
  0x56   :  { %v2416_v37 = vld [vmem:[#allocation5 + $0x494] ss:$8 sps:$4 sm:$0xff]   ;;  %v2419_v39 = vld [vmem:[#allocation5 + $0x490] ss:$8 sps:$4 sm:$0xff]   ;;  %v2420_v40 = vld [vmem:[#allocation5 + $0xa4] ss:$8 sps:$4 sm:$0xff]  }
  0x57   :  { %1674 = vmatpush1.bf16.msra.mxu1 %v2382_v14  ;;  %v2422_v41 = vld [vmem:[#allocation5 + $0x4a4] ss:$8 sps:$4 sm:$0xff]   ;;  %v2424_v42 = vld [vmem:[#allocation5 + $0xa0] ss:$8 sps:$4 sm:$0xff]   ;;  %v2426_v44 = vld [vmem:[#allocation5 + $0xb4] ss:$8 sps:$4 sm:$0xff]  }
  0x58   :  { %1838 = vmatpush1.bf16.msra.mxu0 %v2383_v15  ;;  %1675 = vmatprep.subr.bf16.mxu1 %v2384_v16  ;;  %v2425_v43 = vld [vmem:[#allocation5 + $0x4a0] ss:$8 sps:$4 sm:$0xff]   ;;  %v2428_v45 = vld [vmem:[#allocation5 + $0x4b4] ss:$8 sps:$4 sm:$0xff]   ;;  %v2430_v47 = vld [vmem:[#allocation5 + $0xb0] ss:$8 sps:$4 sm:$0xff]  }
  0x59   :  { %1839 = vmatprep.subr.bf16.mxu0 %v2386_v17  ;;  %v67_v46 = vld [vmem:[#allocation2] sm:$0xff]  ;;  %v2431_v49 = vld [vmem:[#allocation5 + $0x4b0] ss:$8 sps:$4 sm:$0xff]   ;;  %v2438_v56 = vld [vmem:[#allocation5 + $0xd4] ss:$8 sps:$4 sm:$0xff]   ;;  %s2884_s3 = smov [#allocation10]  }
  0x5a   :  { %v2054_v48 = vcombine.high %v67_v46, %v67_v46  ;;  %v71_v50 = vld [vmem:[#allocation2 + $0x20] sm:$0xff]  ;;  %v2440_v57 = vld [vmem:[#allocation5 + $0x4d4] ss:$8 sps:$4 sm:$0xff]   ;;  %v2442_v58 = vld [vmem:[#allocation5 + $0xd0] ss:$8 sps:$4 sm:$0xff]   ;;  %v2053_v6 = vcombine.low %v67_v46, %v67_v46  ;;  %s2042_s10 = sshll.u32 %s2884_s3, 4  ;;  %s2043_s10 = int_to_ptr.vmem [resolvable:$true] %s2042_s10 }
  0x5b   :  { %1676 = vmatpush1.bf16.msra.mxu1 %v2388_v18  ;;  %v2432_v51 = vld [vmem:[#allocation5 + $0xc4] ss:$8 sps:$4 sm:$0xff]   ;;  %v2062_v53 = vcombine.high %v71_v50, %v71_v50  ;;  %v2436_v54 = vld [vmem:[#allocation5 + $0xc0] ss:$8 sps:$4 sm:$0xff]   ;;  %v2443_v59 = vld [vmem:[#allocation5 + $0x4d0] ss:$8 sps:$4 sm:$0xff]   ;;  %v2061_v7 = vcombine.low %v71_v50, %v71_v50  ;;  %p2853_p5 = scmp.lt.s32.totalorder %s2043_s10, %s2043_s10 }
  0x5c   :  { %1840 = vmatpush1.bf16.msra.mxu0 %v2389_v19  ;;  %1677 = vmatprep.subr.bf16.mxu1 %v2390_v20  ;;  %v2434_v52 = vld [vmem:[#allocation5 + $0x4c4] ss:$8 sps:$4 sm:$0xff]   ;;  %v2437_v55 = vld [vmem:[#allocation5 + $0x4c0] ss:$8 sps:$4 sm:$0xff]   ;;  %v2450_v0 = vld [vmem:[#allocation5 + $0xf4] ss:$8 sps:$4 sm:$0xff]  }
  0x5d   :  { %1841 = vmatprep.subr.bf16.mxu0 %v2392_v21  ;;  %1699 = vmatprep.mubr.bf16.mxu1 %v2054_v48  ;;  %v2444_v60 = vld [vmem:[#allocation5 + $0xe4] ss:$8 sps:$4 sm:$0xff]   ;;  %v2448_v62 = vld [vmem:[#allocation5 + $0xe0] ss:$8 sps:$4 sm:$0xff]   ;;  %v2452_v1 = vld [vmem:[#allocation5 + $0x4f4] ss:$8 sps:$4 sm:$0xff]  }
  0x5e   :  { %1863 = vmatprep.mubr.bf16.mxu0 %v2062_v53  ;;  %v2446_v61 = vld [vmem:[#allocation5 + $0x4e4] ss:$8 sps:$4 sm:$0xff]   ;;  %v2449_v63 = vld [vmem:[#allocation5 + $0x4e0] ss:$8 sps:$4 sm:$0xff]   ;;  %v2454_v2 = vld [vmem:[#allocation5 + $0xf0] ss:$8 sps:$4 sm:$0xff]  }
  0x5f   :  { %1678 = vmatpush1.bf16.msra.mxu1 %v2394_v22  ;;  %v2455_v3 = vld [vmem:[#allocation5 + $0x4f0] ss:$8 sps:$4 sm:$0xff]   ;;  %v2460_v4 = vld [vmem:[#allocation5 + $0x104] ss:$8 sps:$4 sm:$0xff]   ;;  %v2458_v8 = vld [vmem:[#allocation5 + $0x100] ss:$8 sps:$4 sm:$0xff]  }
  0x60   :  { %1842 = vmatpush1.bf16.msra.mxu0 %v2395_v23  ;;  %1679 = vmatprep.subr.bf16.mxu1 %v2396_v24  ;;  %v2465_v5 = vld [vmem:[#allocation5 + $0x504] ss:$8 sps:$4 sm:$0xff]   ;;  %v2463_v9 = vld [vmem:[#allocation5 + $0x500] ss:$8 sps:$4 sm:$0xff]   ;;  %v2468_v10 = vld [vmem:[#allocation5 + $0x114] ss:$8 sps:$4 sm:$0xff]  }
  0x61   :  { %1843 = vmatprep.subr.bf16.mxu0 %v2398_v25  ;;  %v2471_v11 = vld [vmem:[#allocation5 + $0x514] ss:$8 sps:$4 sm:$0xff]   ;;  %v2466_v12 = vld [vmem:[#allocation5 + $0x110] ss:$8 sps:$4 sm:$0xff]   ;;  %v2474_v14 = vld [vmem:[#allocation5 + $0x124] ss:$8 sps:$4 sm:$0xff]  }
  0x62   :  { %v2469_v13 = vld [vmem:[#allocation5 + $0x510] ss:$8 sps:$4 sm:$0xff]   ;;  %v2477_v15 = vld [vmem:[#allocation5 + $0x524] ss:$8 sps:$4 sm:$0xff]   ;;  %v2472_v16 = vld [vmem:[#allocation5 + $0x120] ss:$8 sps:$4 sm:$0xff]  }
  0x63   :  { %1680 = vmatpush1.bf16.msra.mxu1 %v2400_v26  ;;  %v2475_v17 = vld [vmem:[#allocation5 + $0x520] ss:$8 sps:$4 sm:$0xff]   ;;  %v2480_v18 = vld [vmem:[#allocation5 + $0x134] ss:$8 sps:$4 sm:$0xff]   ;;  %v2478_v20 = vld [vmem:[#allocation5 + $0x130] ss:$8 sps:$4 sm:$0xff]  }
  0x64   :  { %1844 = vmatpush1.bf16.msra.mxu0 %v2401_v27  ;;  %1681 = vmatprep.subr.bf16.mxu1 %v2402_v28  ;;  %v2483_v19 = vld [vmem:[#allocation5 + $0x534] ss:$8 sps:$4 sm:$0xff]   ;;  %v2481_v21 = vld [vmem:[#allocation5 + $0x530] ss:$8 sps:$4 sm:$0xff]   ;;  %v2486_v22 = vld [vmem:[#allocation5 + $0x144] ss:$8 sps:$4 sm:$0xff]  }
  0x65   :  { %1845 = vmatprep.subr.bf16.mxu0 %v2404_v29  ;;  %v2489_v23 = vld [vmem:[#allocation5 + $0x544] ss:$8 sps:$4 sm:$0xff]   ;;  %v2484_v24 = vld [vmem:[#allocation5 + $0x140] ss:$8 sps:$4 sm:$0xff]   ;;  %v2492_v26 = vld [vmem:[#allocation5 + $0x154] ss:$8 sps:$4 sm:$0xff]  }
  0x66   :  { %v2487_v25 = vld [vmem:[#allocation5 + $0x540] ss:$8 sps:$4 sm:$0xff]   ;;  %v2495_v27 = vld [vmem:[#allocation5 + $0x554] ss:$8 sps:$4 sm:$0xff]   ;;  %v2490_v28 = vld [vmem:[#allocation5 + $0x150] ss:$8 sps:$4 sm:$0xff]  }
  0x67   :  { %1682 = vmatpush1.bf16.msra.mxu1 %v2406_v30  ;;  %v2493_v29 = vld [vmem:[#allocation5 + $0x550] ss:$8 sps:$4 sm:$0xff]   ;;  %v2498_v30 = vld [vmem:[#allocation5 + $0x164] ss:$8 sps:$4 sm:$0xff]   ;;  %v2516_v46 = vld [vmem:[#allocation5 + $0x194] ss:$8 sps:$4 sm:$0xff]  }
  0x68   :  { %1846 = vmatpush1.bf16.msra.mxu0 %v2407_v31  ;;  %1683 = vmatprep.subr.bf16.mxu1 %v2408_v32  ;;  %v2501_v31 = vld [vmem:[#allocation5 + $0x564] ss:$8 sps:$4 sm:$0xff]   ;;  %v2514_v48 = vld [vmem:[#allocation5 + $0x190] ss:$8 sps:$4 sm:$0xff]   ;;  %v2523_v53 = vld [vmem:[#allocation5 + $0x5a0] ss:$8 sps:$4 sm:$0xff]  }
  0x69   :  { %1847 = vmatprep.subr.bf16.mxu0 %v2410_v33  ;;  %v2958_v32 = vld [vmem:[#allocation2 + $0x8] sm:$0xff]  ;;  %s2848_s11 = scalar_lea.vmem %s2043_s10, 128 }
  0x6a   :  { %v2496_v33 = vld [vmem:[#allocation5 + $0x160] ss:$8 sps:$4 sm:$0xff]   ;;  %v2522_v50 = vld [vmem:[#allocation5 + $0x1a4] ss:$8 sps:$4 sm:$0xff]   ;;  %p2849_p4 = scmp.ne.s32.totalorder %s2043_s10, %s2848_s11  ;;  %p2854_p6 = scmp.lt.s32.totalorder %s2848_s11, %s2848_s11 }
  0x6b   :  { %1684 = vmatpush1.bf16.msra.mxu1 %v2412_v34  ;;  %v2499_v34 = vld [vmem:[#allocation5 + $0x560] ss:$8 sps:$4 sm:$0xff]  }
  0x6c   :  { %1848 = vmatpush1.bf16.msra.mxu0 %v2413_v35  ;;  %1685 = vmatprep.subr.bf16.mxu1 %v2414_v36  ;;  %v2056_v35 = vcombine.high %v2958_v32, %v2958_v32  ;;  %v2962_v36 = vld [vmem:[#allocation2 + $0x28] sm:$0xff]  ;;  %p2855_p7 = por %p2854_p6, %p2853_p5 }
  0x6d   :  { %1849 = vmatprep.subr.bf16.mxu0 %v2416_v37  ;;  %v2504_v37 = vld [vmem:[#allocation5 + $0x174] ss:$8 sps:$4 sm:$0xff]  }
  0x6e   :  { %p2856_p8 = pnand %p2855_p7, %p2849_p4 }
  0x6f   :  { %1686 = vmatpush1.bf16.msra.mxu1 %v2418_v38  ;;  %v2064_v38 = vcombine.high %v2962_v36, %v2962_v36 }
  0x70   :  { %1850 = vmatpush1.bf16.msra.mxu0 %v2419_v39  ;;  %1687 = vmatprep.subr.bf16.mxu1 %v2420_v40  ;;  %v2507_v39 = vld [vmem:[#allocation5 + $0x574] ss:$8 sps:$4 sm:$0xff]   ;;  %v2502_v40 = vld [vmem:[#allocation5 + $0x170] ss:$8 sps:$4 sm:$0xff]  }
  0x71   :  { %1851 = vmatprep.subr.bf16.mxu0 %v2422_v41  ;;  %v2505_v41 = vld [vmem:[#allocation5 + $0x570] ss:$8 sps:$4 sm:$0xff]  }
  0x73   :  { %1688 = vmatpush1.bf16.msra.mxu1 %v2424_v42  ;;  %v2510_v42 = vld [vmem:[#allocation5 + $0x184] ss:$8 sps:$4 sm:$0xff]  }
  0x74   :  { %1852 = vmatpush1.bf16.msra.mxu0 %v2425_v43  ;;  %1689 = vmatprep.subr.bf16.mxu1 %v2426_v44  ;;  %v2513_v43 = vld [vmem:[#allocation5 + $0x584] ss:$8 sps:$4 sm:$0xff]   ;;  %v2508_v44 = vld [vmem:[#allocation5 + $0x180] ss:$8 sps:$4 sm:$0xff]  }
  0x75   :  { %1853 = vmatprep.subr.bf16.mxu0 %v2428_v45  ;;  %v2511_v45 = vld [vmem:[#allocation5 + $0x580] ss:$8 sps:$4 sm:$0xff]  }
  0x77   :  { %1690 = vmatpush1.bf16.msra.mxu1 %v2430_v47  ;;  %v2519_v47 = vld [vmem:[#allocation5 + $0x594] ss:$8 sps:$4 sm:$0xff]  }
  0x78   :  { %1854 = vmatpush1.bf16.msra.mxu0 %v2431_v49  ;;  %1691 = vmatprep.subr.bf16.mxu1 %v2432_v51  ;;  %v2517_v49 = vld [vmem:[#allocation5 + $0x590] ss:$8 sps:$4 sm:$0xff]   ;;  %v2525_v51 = vld [vmem:[#allocation5 + $0x5a4] ss:$8 sps:$4 sm:$0xff]  }
  0x79   :  { %1855 = vmatprep.subr.bf16.mxu0 %v2434_v52  ;;  %v2520_v52 = vld [vmem:[#allocation5 + $0x1a0] ss:$8 sps:$4 sm:$0xff]  }
  0x7b   :  { %1692 = vmatpush1.bf16.msra.mxu1 %v2436_v54  ;;  %v2528_v54 = vld [vmem:[#allocation5 + $0x1b4] ss:$8 sps:$4 sm:$0xff]  }
  0x7c   :  { %1856 = vmatpush1.bf16.msra.mxu0 %v2437_v55  ;;  %1693 = vmatprep.subr.bf16.mxu1 %v2438_v56  ;;  %v2531_v55 = vld [vmem:[#allocation5 + $0x5b4] ss:$8 sps:$4 sm:$0xff]   ;;  %v2526_v56 = vld [vmem:[#allocation5 + $0x1b0] ss:$8 sps:$4 sm:$0xff]  }
  0x7d   :  { %1857 = vmatprep.subr.bf16.mxu0 %v2440_v57  ;;  %v2529_v57 = vld [vmem:[#allocation5 + $0x5b0] ss:$8 sps:$4 sm:$0xff]  }
  0x7f   :  { %1694 = vmatpush1.bf16.msra.mxu1 %v2442_v58  ;;  %v2534_v58 = vld [vmem:[#allocation5 + $0x1c4] ss:$8 sps:$4 sm:$0xff]  }
  0x80   :  { %1858 = vmatpush1.bf16.msra.mxu0 %v2443_v59  ;;  %1695 = vmatprep.subr.bf16.mxu1 %v2444_v60  ;;  %v2537_v59 = vld [vmem:[#allocation5 + $0x5c4] ss:$8 sps:$4 sm:$0xff]   ;;  %v2532_v60 = vld [vmem:[#allocation5 + $0x1c0] ss:$8 sps:$4 sm:$0xff]  }
  0x81   :  { %1859 = vmatprep.subr.bf16.mxu0 %v2446_v61  ;;  %v2535_v61 = vld [vmem:[#allocation5 + $0x5c0] ss:$8 sps:$4 sm:$0xff]  }
  0x83   :  { %1696 = vmatpush1.bf16.msra.mxu1 %v2448_v62  ;;  %v2540_v62 = vld [vmem:[#allocation5 + $0x1d4] ss:$8 sps:$4 sm:$0xff]  }
  0x84   :  { %1860 = vmatpush1.bf16.msra.mxu0 %v2449_v63  ;;  %1697 = vmatprep.subr.bf16.mxu1 %v2450_v0  ;;  %v2543_v63 = vld [vmem:[#allocation5 + $0x5d4] ss:$8 sps:$4 sm:$0xff]   ;;  %v2538_v0 = vld [vmem:[#allocation5 + $0x1d0] ss:$8 sps:$4 sm:$0xff]  }
  0x85   :  { %1861 = vmatprep.subr.bf16.mxu0 %v2452_v1  ;;  %v2541_v1 = vld [vmem:[#allocation5 + $0x5d0] ss:$8 sps:$4 sm:$0xff]  }
  0x87   :  { %1698 = vmatpush1.bf16.msra.mxu1 %v2454_v2  ;;  %v2546_v2 = vld [vmem:[#allocation5 + $0x1e4] ss:$8 sps:$4 sm:$0xff]  }
  0x88   :  { %1862 = vmatpush1.bf16.msra.mxu0 %v2455_v3  ;;  %1708 = vmatprep.subr.bf16.mxu1 %v2460_v4  ;;  %v2549_v3 = vld [vmem:[#allocation5 + $0x5e4] ss:$8 sps:$4 sm:$0xff]   ;;  %v2544_v4 = vld [vmem:[#allocation5 + $0x1e0] ss:$8 sps:$4 sm:$0xff]  }
  0x89   :  { %1872 = vmatprep.subr.bf16.mxu0 %v2465_v5  ;;  %v2547_v5 = vld [vmem:[#allocation5 + $0x5e0] ss:$8 sps:$4 sm:$0xff]  }
  0x8a   :  { %1700 = vmatmul.mubr.bf16.vlgmr.msra.gmra.mrb[0].mxu1 %v2053_v6  ;;  %v2552_v6 = vld [vmem:[#allocation5 + $0x1f4] ss:$8 sps:$4 sm:$0xff]  }
  0x8b   :  { %1864 = vmatmul.mubr.bf16.vlgmr.msra.gmra.mrb[0].mxu0 %v2061_v7  ;;  %1709 = vmatpush1.bf16.msra.mxu1 %v2458_v8  ;;  %v2555_v7 = vld [vmem:[#allocation5 + $0x5f4] ss:$8 sps:$4 sm:$0xff]   ;;  %v2550_v8 = vld [vmem:[#allocation5 + $0x1f0] ss:$8 sps:$4 sm:$0xff]  }
  0x8c   :  { %1873 = vmatpush1.bf16.msra.mxu0 %v2463_v9  ;;  %1710 = vmatprep.subr.bf16.mxu1 %v2468_v10  ;;  %v2553_v9 = vld [vmem:[#allocation5 + $0x5f0] ss:$8 sps:$4 sm:$0xff]   ;;  %v2560_v10 = vld [vmem:[#allocation5 + $0x204] ss:$8 sps:$4 sm:$0xff]  }
  0x8d   :  { %1874 = vmatprep.subr.bf16.mxu0 %v2471_v11  ;;  %1740 = vmatprep.mubr.bf16.mxu1 %v2056_v35  ;;  %v2565_v11 = vld [vmem:[#allocation5 + $0x604] ss:$8 sps:$4 sm:$0xff]   ;;  %v2587_v35 = vld [vmem:[#allocation5 + $0x640] ss:$8 sps:$4 sm:$0xff]  }
  0x8e   :  { %1904 = vmatprep.mubr.bf16.mxu0 %v2064_v38  ;;  %v2590_v38 = vld [vmem:[#allocation5 + $0x250] ss:$8 sps:$4 sm:$0xff]  }
  0x8f   :  { %1711 = vmatpush1.bf16.msra.mxu1 %v2466_v12  ;;  %v2055_v12 = vcombine.low %v2958_v32, %v2958_v32  ;;  %v2586_v32 = vld [vmem:[#allocation5 + $0x244] ss:$8 sps:$4 sm:$0xff]  }
  0x90   :  { %1875 = vmatpush1.bf16.msra.mxu0 %v2469_v13  ;;  %1712 = vmatprep.subr.bf16.mxu1 %v2474_v14  ;;  %v2558_v13 = vld [vmem:[#allocation5 + $0x200] ss:$8 sps:$4 sm:$0xff]   ;;  %v2063_v14 = vcombine.low %v2962_v36, %v2962_v36  ;;  %v2592_v36 = vld [vmem:[#allocation5 + $0x254] ss:$8 sps:$4 sm:$0xff]  }
  0x91   :  { %1876 = vmatprep.subr.bf16.mxu0 %v2477_v15  ;;  %v2563_v15 = vld [vmem:[#allocation5 + $0x600] ss:$8 sps:$4 sm:$0xff]  }
  0x93   :  { %1713 = vmatpush1.bf16.msra.mxu1 %v2472_v16  ;;  %v2568_v16 = vld [vmem:[#allocation5 + $0x214] ss:$8 sps:$4 sm:$0xff]  }
  0x94   :  { %1877 = vmatpush1.bf16.msra.mxu0 %v2475_v17  ;;  %1714 = vmatprep.subr.bf16.mxu1 %v2480_v18  ;;  %v2571_v17 = vld [vmem:[#allocation5 + $0x614] ss:$8 sps:$4 sm:$0xff]  }
  0x95   :  { %1878 = vmatprep.subr.bf16.mxu0 %v2483_v19  ;;  %v2970_v18 = vld [vmem:[#allocation2 + $0x10] sm:$0xff] }
  0x96   :  { %v2058_v19 = vcombine.high %v2970_v18, %v2970_v18 }
  0x97   :  { %1715 = vmatpush1.bf16.msra.mxu1 %v2478_v20  ;;  %v2974_v20 = vld [vmem:[#allocation2 + $0x30] sm:$0xff] }
  0x98   :  { %1879 = vmatpush1.bf16.msra.mxu0 %v2481_v21  ;;  %1716 = vmatprep.subr.bf16.mxu1 %v2486_v22  ;;  %v2566_v21 = vld [vmem:[#allocation5 + $0x210] ss:$8 sps:$4 sm:$0xff]  }
  0x99   :  { %1880 = vmatprep.subr.bf16.mxu0 %v2489_v23  ;;  %v2569_v22 = vld [vmem:[#allocation5 + $0x610] ss:$8 sps:$4 sm:$0xff]   ;;  %v2066_v23 = vcombine.high %v2974_v20, %v2974_v20 }
  0x9b   :  { %1717 = vmatpush1.bf16.msra.mxu1 %v2484_v24  ;;  %v2574_v24 = vld [vmem:[#allocation5 + $0x224] ss:$8 sps:$4 sm:$0xff]  }
  0x9c   :  { %1881 = vmatpush1.bf16.msra.mxu0 %v2487_v25  ;;  %1718 = vmatprep.subr.bf16.mxu1 %v2492_v26  ;;  %v2577_v25 = vld [vmem:[#allocation5 + $0x624] ss:$8 sps:$4 sm:$0xff]   ;;  %v2572_v26 = vld [vmem:[#allocation5 + $0x220] ss:$8 sps:$4 sm:$0xff]  }
  0x9d   :  { %1882 = vmatprep.subr.bf16.mxu0 %v2495_v27  ;;  %v2575_v27 = vld [vmem:[#allocation5 + $0x620] ss:$8 sps:$4 sm:$0xff]  }
  0x9f   :  { %1719 = vmatpush1.bf16.msra.mxu1 %v2490_v28  ;;  %v2580_v28 = vld [vmem:[#allocation5 + $0x234] ss:$8 sps:$4 sm:$0xff]  }
  0xa0   :  { %1883 = vmatpush1.bf16.msra.mxu0 %v2493_v29  ;;  %1720 = vmatprep.subr.bf16.mxu1 %v2498_v30  ;;  %v2583_v29 = vld [vmem:[#allocation5 + $0x634] ss:$8 sps:$4 sm:$0xff]   ;;  %v2578_v30 = vld [vmem:[#allocation5 + $0x230] ss:$8 sps:$4 sm:$0xff]  }
  0xa1   :  { %1884 = vmatprep.subr.bf16.mxu0 %v2501_v31  ;;  %v2581_v31 = vld [vmem:[#allocation5 + $0x630] ss:$8 sps:$4 sm:$0xff]  }
  0xa3   :  { %1721 = vmatpush1.bf16.msra.mxu1 %v2496_v33  ;;  %v2589_v33 = vld [vmem:[#allocation5 + $0x644] ss:$8 sps:$4 sm:$0xff]  }
  0xa4   :  { %1885 = vmatpush1.bf16.msra.mxu0 %v2499_v34  ;;  %1722 = vmatprep.subr.bf16.mxu1 %v2504_v37  ;;  %v2584_v34 = vld [vmem:[#allocation5 + $0x240] ss:$8 sps:$4 sm:$0xff]   ;;  %v2595_v37 = vld [vmem:[#allocation5 + $0x654] ss:$8 sps:$4 sm:$0xff]  }
  0xa5   :  { %1886 = vmatprep.subr.bf16.mxu0 %v2507_v39  ;;  %v2593_v39 = vld [vmem:[#allocation5 + $0x650] ss:$8 sps:$4 sm:$0xff]  }
  0xa7   :  { %1723 = vmatpush1.bf16.msra.mxu1 %v2502_v40  ;;  %v2598_v40 = vld [vmem:[#allocation5 + $0x264] ss:$8 sps:$4 sm:$0xff]  }
  0xa8   :  { %1887 = vmatpush1.bf16.msra.mxu0 %v2505_v41  ;;  %1724 = vmatprep.subr.bf16.mxu1 %v2510_v42  ;;  %v2601_v41 = vld [vmem:[#allocation5 + $0x664] ss:$8 sps:$4 sm:$0xff]   ;;  %v2596_v42 = vld [vmem:[#allocation5 + $0x260] ss:$8 sps:$4 sm:$0xff]  }
  0xa9   :  { %1888 = vmatprep.subr.bf16.mxu0 %v2513_v43  ;;  %v2599_v43 = vld [vmem:[#allocation5 + $0x660] ss:$8 sps:$4 sm:$0xff]  }
  0xab   :  { %1725 = vmatpush1.bf16.msra.mxu1 %v2508_v44  ;;  %v2604_v44 = vld [vmem:[#allocation5 + $0x274] ss:$8 sps:$4 sm:$0xff]  }
  0xac   :  { %1889 = vmatpush1.bf16.msra.mxu0 %v2511_v45  ;;  %1726 = vmatprep.subr.bf16.mxu1 %v2516_v46  ;;  %v2607_v45 = vld [vmem:[#allocation5 + $0x674] ss:$8 sps:$4 sm:$0xff]   ;;  %v2602_v46 = vld [vmem:[#allocation5 + $0x270] ss:$8 sps:$4 sm:$0xff]  }
  0xad   :  { %1890 = vmatprep.subr.bf16.mxu0 %v2519_v47  ;;  %v2605_v47 = vld [vmem:[#allocation5 + $0x670] ss:$8 sps:$4 sm:$0xff]  }
  0xaf   :  { %1727 = vmatpush1.bf16.msra.mxu1 %v2514_v48  ;;  %v2610_v48 = vld [vmem:[#allocation5 + $0x284] ss:$8 sps:$4 sm:$0xff]  }
  0xb0   :  { %1891 = vmatpush1.bf16.msra.mxu0 %v2517_v49  ;;  %1728 = vmatprep.subr.bf16.mxu1 %v2522_v50  ;;  %v2613_v49 = vld [vmem:[#allocation5 + $0x684] ss:$8 sps:$4 sm:$0xff]   ;;  %v2608_v50 = vld [vmem:[#allocation5 + $0x280] ss:$8 sps:$4 sm:$0xff]  }
  0xb1   :  { %1892 = vmatprep.subr.bf16.mxu0 %v2525_v51  ;;  %v2611_v51 = vld [vmem:[#allocation5 + $0x680] ss:$8 sps:$4 sm:$0xff]  }
  0xb3   :  { %1729 = vmatpush1.bf16.msra.mxu1 %v2520_v52  ;;  %v2616_v52 = vld [vmem:[#allocation5 + $0x294] ss:$8 sps:$4 sm:$0xff]  }
  0xb4   :  { %1893 = vmatpush1.bf16.msra.mxu0 %v2523_v53  ;;  %1730 = vmatprep.subr.bf16.mxu1 %v2528_v54  ;;  %v2619_v53 = vld [vmem:[#allocation5 + $0x694] ss:$8 sps:$4 sm:$0xff]   ;;  %v2614_v54 = vld [vmem:[#allocation5 + $0x290] ss:$8 sps:$4 sm:$0xff]  }
  0xb5   :  { %1894 = vmatprep.subr.bf16.mxu0 %v2531_v55  ;;  %v2617_v55 = vld [vmem:[#allocation5 + $0x690] ss:$8 sps:$4 sm:$0xff]  }
  0xb7   :  { %1731 = vmatpush1.bf16.msra.mxu1 %v2526_v56  ;;  %v2622_v56 = vld [vmem:[#allocation5 + $0x2a4] ss:$8 sps:$4 sm:$0xff]  }
  0xb8   :  { %1895 = vmatpush1.bf16.msra.mxu0 %v2529_v57  ;;  %1732 = vmatprep.subr.bf16.mxu1 %v2534_v58  ;;  %v2625_v57 = vld [vmem:[#allocation5 + $0x6a4] ss:$8 sps:$4 sm:$0xff]   ;;  %v2620_v58 = vld [vmem:[#allocation5 + $0x2a0] ss:$8 sps:$4 sm:$0xff]  }
  0xb9   :  { %1896 = vmatprep.subr.bf16.mxu0 %v2537_v59  ;;  %v2623_v59 = vld [vmem:[#allocation5 + $0x6a0] ss:$8 sps:$4 sm:$0xff]  }
  0xbb   :  { %1733 = vmatpush1.bf16.msra.mxu1 %v2532_v60  ;;  %v2628_v60 = vld [vmem:[#allocation5 + $0x2b4] ss:$8 sps:$4 sm:$0xff]  }
  0xbc   :  { %1897 = vmatpush1.bf16.msra.mxu0 %v2535_v61  ;;  %1734 = vmatprep.subr.bf16.mxu1 %v2540_v62  ;;  %v2631_v61 = vld [vmem:[#allocation5 + $0x6b4] ss:$8 sps:$4 sm:$0xff]   ;;  %v2626_v62 = vld [vmem:[#allocation5 + $0x2b0] ss:$8 sps:$4 sm:$0xff]  }
  0xbd   :  { %1898 = vmatprep.subr.bf16.mxu0 %v2543_v63  ;;  %v2629_v63 = vld [vmem:[#allocation5 + $0x6b0] ss:$8 sps:$4 sm:$0xff]  }
  0xbf   :  { %1735 = vmatpush1.bf16.msra.mxu1 %v2538_v0  ;;  %v2634_v0 = vld [vmem:[#allocation5 + $0x2c4] ss:$8 sps:$4 sm:$0xff]  }
  0xc0   :  { %1899 = vmatpush1.bf16.msra.mxu0 %v2541_v1  ;;  %1736 = vmatprep.subr.bf16.mxu1 %v2546_v2  ;;  %v2637_v1 = vld [vmem:[#allocation5 + $0x6c4] ss:$8 sps:$4 sm:$0xff]   ;;  %v2632_v2 = vld [vmem:[#allocation5 + $0x2c0] ss:$8 sps:$4 sm:$0xff]  }
  0xc1   :  { %1900 = vmatprep.subr.bf16.mxu0 %v2549_v3  ;;  %v2635_v3 = vld [vmem:[#allocation5 + $0x6c0] ss:$8 sps:$4 sm:$0xff]  }
  0xc3   :  { %1737 = vmatpush1.bf16.msra.mxu1 %v2544_v4  ;;  %v2640_v4 = vld [vmem:[#allocation5 + $0x2d4] ss:$8 sps:$4 sm:$0xff]  }
  0xc4   :  { %1901 = vmatpush1.bf16.msra.mxu0 %v2547_v5  ;;  %1738 = vmatprep.subr.bf16.mxu1 %v2552_v6  ;;  %v2643_v5 = vld [vmem:[#allocation5 + $0x6d4] ss:$8 sps:$4 sm:$0xff]   ;;  %v2638_v6 = vld [vmem:[#allocation5 + $0x2d0] ss:$8 sps:$4 sm:$0xff]  }
  0xc5   :  { %1902 = vmatprep.subr.bf16.mxu0 %v2555_v7  ;;  %v2641_v7 = vld [vmem:[#allocation5 + $0x6d0] ss:$8 sps:$4 sm:$0xff]  }
  0xc7   :  { %1739 = vmatpush1.bf16.msra.mxu1 %v2550_v8  ;;  %v2646_v8 = vld [vmem:[#allocation5 + $0x2e4] ss:$8 sps:$4 sm:$0xff]  }
  0xc8   :  { %1903 = vmatpush1.bf16.msra.mxu0 %v2553_v9  ;;  %1749 = vmatprep.subr.bf16.mxu1 %v2560_v10  ;;  %v2649_v9 = vld [vmem:[#allocation5 + $0x6e4] ss:$8 sps:$4 sm:$0xff]   ;;  %v2644_v10 = vld [vmem:[#allocation5 + $0x2e0] ss:$8 sps:$4 sm:$0xff]  }
  0xc9   :  { %1913 = vmatprep.subr.bf16.mxu0 %v2565_v11  ;;  %v2647_v11 = vld [vmem:[#allocation5 + $0x6e0] ss:$8 sps:$4 sm:$0xff]  }
  0xca   :  { %1741 = vmatmul.mubr.bf16.vlgmr.msra.gmra.mrb[0].mxu1 %v2055_v12  ;;  %v2652_v12 = vld [vmem:[#allocation5 + $0x2f4] ss:$8 sps:$4 sm:$0xff]  }
  0xcb   :  { %1905 = vmatmul.mubr.bf16.vlgmr.msra.gmra.mrb[0].mxu0 %v2063_v14  ;;  %1750 = vmatpush1.bf16.msra.mxu1 %v2558_v13  ;;  %v2655_v13 = vld [vmem:[#allocation5 + $0x6f4] ss:$8 sps:$4 sm:$0xff]   ;;  %v2650_v14 = vld [vmem:[#allocation5 + $0x2f0] ss:$8 sps:$4 sm:$0xff]  }
  0xcc   :  { %1914 = vmatpush1.bf16.msra.mxu0 %v2563_v15  ;;  %1751 = vmatprep.subr.bf16.mxu1 %v2568_v16  ;;  %v2653_v15 = vld [vmem:[#allocation5 + $0x6f0] ss:$8 sps:$4 sm:$0xff]   ;;  %v2660_v16 = vld [vmem:[#allocation5 + $0x304] ss:$8 sps:$4 sm:$0xff]  }
  0xcd   :  { %1915 = vmatprep.subr.bf16.mxu0 %v2571_v17  ;;  %1781 = vmatprep.mubr.bf16.mxu1 %v2058_v19  ;;  %v2665_v17 = vld [vmem:[#allocation5 + $0x704] ss:$8 sps:$4 sm:$0xff]   ;;  %v2057_v19 = vcombine.low %v2970_v18, %v2970_v18 }
  0xce   :  { %1945 = vmatprep.mubr.bf16.mxu0 %v2066_v23  ;;  %v2984_v23 = vld [vmem:[#allocation2 + $0x38] sm:$0xff] }
  0xcf   :  { %1752 = vmatpush1.bf16.msra.mxu1 %v2566_v21  ;;  %v2065_v21 = vcombine.low %v2974_v20, %v2974_v20  ;;  %v2068_v18 = vcombine.high %v2984_v23, %v2984_v23  ;;  %v2666_v20 = vld [vmem:[#allocation5 + $0x310] ss:$8 sps:$4 sm:$0xff]  }
  0xd0   :  { %1916 = vmatpush1.bf16.msra.mxu0 %v2569_v22  ;;  %1753 = vmatprep.subr.bf16.mxu1 %v2574_v24  ;;  %v2982_v22 = vld [vmem:[#allocation2 + $0x18] sm:$0xff]  ;;  %v2658_v24 = vld [vmem:[#allocation5 + $0x300] ss:$8 sps:$4 sm:$0xff]  }
  0xd1   :  { %1917 = vmatprep.subr.bf16.mxu0 %v2577_v25  ;;  %v2663_v25 = vld [vmem:[#allocation5 + $0x700] ss:$8 sps:$4 sm:$0xff]  }
  0xd3   :  { %1754 = vmatpush1.bf16.msra.mxu1 %v2572_v26  ;;  %v2668_v26 = vld [vmem:[#allocation5 + $0x314] ss:$8 sps:$4 sm:$0xff]  }
  0xd4   :  { %1918 = vmatpush1.bf16.msra.mxu0 %v2575_v27  ;;  %1755 = vmatprep.subr.bf16.mxu1 %v2580_v28  ;;  %v2671_v27 = vld [vmem:[#allocation5 + $0x714] ss:$8 sps:$4 sm:$0xff]   ;;  %v2060_v28 = vcombine.high %v2982_v22, %v2982_v22 }
  0xd5   :  { %1919 = vmatprep.subr.bf16.mxu0 %v2583_v29  ;;  %v2669_v29 = vld [vmem:[#allocation5 + $0x710] ss:$8 sps:$4 sm:$0xff]  }
  0xd7   :  { %1756 = vmatpush1.bf16.msra.mxu1 %v2578_v30  ;;  %v2674_v30 = vld [vmem:[#allocation5 + $0x324] ss:$8 sps:$4 sm:$0xff]  }
  0xd8   :  { %1920 = vmatpush1.bf16.msra.mxu0 %v2581_v31  ;;  %1757 = vmatprep.subr.bf16.mxu1 %v2586_v32  ;;  %v2677_v31 = vld [vmem:[#allocation5 + $0x724] ss:$8 sps:$4 sm:$0xff]   ;;  %v2672_v32 = vld [vmem:[#allocation5 + $0x320] ss:$8 sps:$4 sm:$0xff]  }
  0xd9   :  { %1921 = vmatprep.subr.bf16.mxu0 %v2589_v33  ;;  %v2675_v33 = vld [vmem:[#allocation5 + $0x720] ss:$8 sps:$4 sm:$0xff]  }
  0xdb   :  { %1758 = vmatpush1.bf16.msra.mxu1 %v2584_v34  ;;  %v2680_v34 = vld [vmem:[#allocation5 + $0x334] ss:$8 sps:$4 sm:$0xff]  }
  0xdc   :  { %1922 = vmatpush1.bf16.msra.mxu0 %v2587_v35  ;;  %1759 = vmatprep.subr.bf16.mxu1 %v2592_v36  ;;  %v2683_v35 = vld [vmem:[#allocation5 + $0x734] ss:$8 sps:$4 sm:$0xff]   ;;  %v2678_v36 = vld [vmem:[#allocation5 + $0x330] ss:$8 sps:$4 sm:$0xff]  }
  0xdd   :  { %1923 = vmatprep.subr.bf16.mxu0 %v2595_v37  ;;  %v2681_v37 = vld [vmem:[#allocation5 + $0x730] ss:$8 sps:$4 sm:$0xff]  }
  0xdf   :  { %1760 = vmatpush1.bf16.msra.mxu1 %v2590_v38  ;;  %v2686_v38 = vld [vmem:[#allocation5 + $0x344] ss:$8 sps:$4 sm:$0xff]  }
  0xe0   :  { %1924 = vmatpush1.bf16.msra.mxu0 %v2593_v39  ;;  %1761 = vmatprep.subr.bf16.mxu1 %v2598_v40  ;;  %v2689_v39 = vld [vmem:[#allocation5 + $0x744] ss:$8 sps:$4 sm:$0xff]   ;;  %v2684_v40 = vld [vmem:[#allocation5 + $0x340] ss:$8 sps:$4 sm:$0xff]  }
  0xe1   :  { %1925 = vmatprep.subr.bf16.mxu0 %v2601_v41  ;;  %v2687_v41 = vld [vmem:[#allocation5 + $0x740] ss:$8 sps:$4 sm:$0xff]  }
  0xe3   :  { %1762 = vmatpush1.bf16.msra.mxu1 %v2596_v42  ;;  %v2692_v42 = vld [vmem:[#allocation5 + $0x354] ss:$8 sps:$4 sm:$0xff]  }
  0xe4   :  { %1926 = vmatpush1.bf16.msra.mxu0 %v2599_v43  ;;  %1763 = vmatprep.subr.bf16.mxu1 %v2604_v44  ;;  %v2695_v43 = vld [vmem:[#allocation5 + $0x754] ss:$8 sps:$4 sm:$0xff]   ;;  %v2690_v44 = vld [vmem:[#allocation5 + $0x350] ss:$8 sps:$4 sm:$0xff]  }
  0xe5   :  { %1927 = vmatprep.subr.bf16.mxu0 %v2607_v45  ;;  %v2693_v45 = vld [vmem:[#allocation5 + $0x750] ss:$8 sps:$4 sm:$0xff]  }
  0xe7   :  { %1764 = vmatpush1.bf16.msra.mxu1 %v2602_v46  ;;  %v2698_v46 = vld [vmem:[#allocation5 + $0x364] ss:$8 sps:$4 sm:$0xff]  }
  0xe8   :  { %1928 = vmatpush1.bf16.msra.mxu0 %v2605_v47  ;;  %1765 = vmatprep.subr.bf16.mxu1 %v2610_v48  ;;  %v2701_v47 = vld [vmem:[#allocation5 + $0x764] ss:$8 sps:$4 sm:$0xff]   ;;  %v2696_v48 = vld [vmem:[#allocation5 + $0x360] ss:$8 sps:$4 sm:$0xff]  }
  0xe9   :  { %1929 = vmatprep.subr.bf16.mxu0 %v2613_v49  ;;  %v2699_v49 = vld [vmem:[#allocation5 + $0x760] ss:$8 sps:$4 sm:$0xff]  }
  0xeb   :  { %1766 = vmatpush1.bf16.msra.mxu1 %v2608_v50  ;;  %v2704_v50 = vld [vmem:[#allocation5 + $0x374] ss:$8 sps:$4 sm:$0xff]  }
  0xec   :  { %1930 = vmatpush1.bf16.msra.mxu0 %v2611_v51  ;;  %1767 = vmatprep.subr.bf16.mxu1 %v2616_v52  ;;  %v2707_v51 = vld [vmem:[#allocation5 + $0x774] ss:$8 sps:$4 sm:$0xff]   ;;  %v2702_v52 = vld [vmem:[#allocation5 + $0x370] ss:$8 sps:$4 sm:$0xff]  }
  0xed   :  { %1931 = vmatprep.subr.bf16.mxu0 %v2619_v53  ;;  %v2705_v53 = vld [vmem:[#allocation5 + $0x770] ss:$8 sps:$4 sm:$0xff]  }
  0xef   :  { %1768 = vmatpush1.bf16.msra.mxu1 %v2614_v54  ;;  %v2710_v54 = vld [vmem:[#allocation5 + $0x384] ss:$8 sps:$4 sm:$0xff]  }
  0xf0   :  { %1932 = vmatpush1.bf16.msra.mxu0 %v2617_v55  ;;  %1769 = vmatprep.subr.bf16.mxu1 %v2622_v56  ;;  %v2713_v55 = vld [vmem:[#allocation5 + $0x784] ss:$8 sps:$4 sm:$0xff]   ;;  %v2708_v56 = vld [vmem:[#allocation5 + $0x380] ss:$8 sps:$4 sm:$0xff]  }
  0xf1   :  { %1933 = vmatprep.subr.bf16.mxu0 %v2625_v57  ;;  %v2711_v57 = vld [vmem:[#allocation5 + $0x780] ss:$8 sps:$4 sm:$0xff]  }
  0xf3   :  { %1770 = vmatpush1.bf16.msra.mxu1 %v2620_v58  ;;  %v2716_v58 = vld [vmem:[#allocation5 + $0x394] ss:$8 sps:$4 sm:$0xff]  }
  0xf4   :  { %1934 = vmatpush1.bf16.msra.mxu0 %v2623_v59  ;;  %1771 = vmatprep.subr.bf16.mxu1 %v2628_v60  ;;  %v2719_v59 = vld [vmem:[#allocation5 + $0x794] ss:$8 sps:$4 sm:$0xff]   ;;  %v2714_v60 = vld [vmem:[#allocation5 + $0x390] ss:$8 sps:$4 sm:$0xff]  }
  0xf5   :  { %1935 = vmatprep.subr.bf16.mxu0 %v2631_v61  ;;  %v2717_v61 = vld [vmem:[#allocation5 + $0x790] ss:$8 sps:$4 sm:$0xff]  }
  0xf7   :  { %1772 = vmatpush1.bf16.msra.mxu1 %v2626_v62  ;;  %v2722_v62 = vld [vmem:[#allocation5 + $0x3a4] ss:$8 sps:$4 sm:$0xff]  }
  0xf8   :  { %1936 = vmatpush1.bf16.msra.mxu0 %v2629_v63  ;;  %1773 = vmatprep.subr.bf16.mxu1 %v2634_v0  ;;  %v2725_v63 = vld [vmem:[#allocation5 + $0x7a4] ss:$8 sps:$4 sm:$0xff]   ;;  %v2720_v0 = vld [vmem:[#allocation5 + $0x3a0] ss:$8 sps:$4 sm:$0xff]  }
  0xf9   :  { %1937 = vmatprep.subr.bf16.mxu0 %v2637_v1  ;;  %v2723_v1 = vld [vmem:[#allocation5 + $0x7a0] ss:$8 sps:$4 sm:$0xff]  }
  0xfb   :  { %1774 = vmatpush1.bf16.msra.mxu1 %v2632_v2  ;;  %v2728_v2 = vld [vmem:[#allocation5 + $0x3b4] ss:$8 sps:$4 sm:$0xff]  }
  0xfc   :  { %1938 = vmatpush1.bf16.msra.mxu0 %v2635_v3  ;;  %1775 = vmatprep.subr.bf16.mxu1 %v2640_v4  ;;  %v2731_v3 = vld [vmem:[#allocation5 + $0x7b4] ss:$8 sps:$4 sm:$0xff]   ;;  %v2726_v4 = vld [vmem:[#allocation5 + $0x3b0] ss:$8 sps:$4 sm:$0xff]  }
  0xfd   :  { %1939 = vmatprep.subr.bf16.mxu0 %v2643_v5  ;;  %v2729_v5 = vld [vmem:[#allocation5 + $0x7b0] ss:$8 sps:$4 sm:$0xff]  }
  0xff   :  { %1776 = vmatpush1.bf16.msra.mxu1 %v2638_v6  ;;  %v2734_v6 = vld [vmem:[#allocation5 + $0x3c4] ss:$8 sps:$4 sm:$0xff]  }
 0x100   :  { %1940 = vmatpush1.bf16.msra.mxu0 %v2641_v7  ;;  %1777 = vmatprep.subr.bf16.mxu1 %v2646_v8  ;;  %v2737_v7 = vld [vmem:[#allocation5 + $0x7c4] ss:$8 sps:$4 sm:$0xff]   ;;  %v2732_v8 = vld [vmem:[#allocation5 + $0x3c0] ss:$8 sps:$4 sm:$0xff]  }
 0x101   :  { %1941 = vmatprep.subr.bf16.mxu0 %v2649_v9  ;;  %v2735_v9 = vld [vmem:[#allocation5 + $0x7c0] ss:$8 sps:$4 sm:$0xff]  }
 0x103   :  { %1778 = vmatpush1.bf16.msra.mxu1 %v2644_v10  ;;  %v2740_v10 = vld [vmem:[#allocation5 + $0x3d4] ss:$8 sps:$4 sm:$0xff]  }
 0x104   :  { %1942 = vmatpush1.bf16.msra.mxu0 %v2647_v11  ;;  %1779 = vmatprep.subr.bf16.mxu1 %v2652_v12  ;;  %v2743_v11 = vld [vmem:[#allocation5 + $0x7d4] ss:$8 sps:$4 sm:$0xff]   ;;  %v2738_v12 = vld [vmem:[#allocation5 + $0x3d0] ss:$8 sps:$4 sm:$0xff]  }
 0x105   :  { %1943 = vmatprep.subr.bf16.mxu0 %v2655_v13  ;;  %v2741_v13 = vld [vmem:[#allocation5 + $0x7d0] ss:$8 sps:$4 sm:$0xff]  }
 0x107   :  { %1780 = vmatpush1.bf16.msra.mxu1 %v2650_v14  ;;  %v2746_v14 = vld [vmem:[#allocation5 + $0x3e4] ss:$8 sps:$4 sm:$0xff]  }
 0x108   :  { %1944 = vmatpush1.bf16.msra.mxu0 %v2653_v15  ;;  %1790 = vmatprep.subr.bf16.mxu1 %v2660_v16  ;;  %v2749_v15 = vld [vmem:[#allocation5 + $0x7e4] ss:$8 sps:$4 sm:$0xff]   ;;  %v2744_v16 = vld [vmem:[#allocation5 + $0x3e0] ss:$8 sps:$4 sm:$0xff]  }
 0x109   :  { %1954 = vmatprep.subr.bf16.mxu0 %v2665_v17  ;;  %v2747_v17 = vld [vmem:[#allocation5 + $0x7e0] ss:$8 sps:$4 sm:$0xff]  }
 0x10a   :  { %1782 = vmatmul.mubr.bf16.vlgmr.msra.gmra.mrb[0].mxu1 %v2057_v19  ;;  %v2752_v19 = vld [vmem:[#allocation5 + $0x3f4] ss:$8 sps:$4 sm:$0xff]  }
 0x10b   :  { %1946 = vmatmul.mubr.bf16.vlgmr.msra.gmra.mrb[0].mxu0 %v2065_v21  ;;  %1791 = vmatpush1.bf16.msra.mxu1 %v2658_v24  ;;  %v2755_v21 = vld [vmem:[#allocation5 + $0x7f4] ss:$8 sps:$4 sm:$0xff]   ;;  %v2750_v24 = vld [vmem:[#allocation5 + $0x3f0] ss:$8 sps:$4 sm:$0xff]  }
 0x10c   :  { %1955 = vmatpush1.bf16.msra.mxu0 %v2663_v25  ;;  %1792 = vmatprep.subr.bf16.mxu1 %v2668_v26  ;;  %v2753_v25 = vld [vmem:[#allocation5 + $0x7f0] ss:$8 sps:$4 sm:$0xff]   ;;  %v2059_v26 = vcombine.low %v2982_v22, %v2982_v22 }
 0x10d   :  { %1956 = vmatprep.subr.bf16.mxu0 %v2671_v27  ;;  %1822 = vmatprep.mubr.bf16.mxu1 %v2060_v28  ;;  %v2067_v27 = vcombine.low %v2984_v23, %v2984_v23  ;;  %v1997_v28 = vlaneseq }
 0x10e   :  { %1986 = vmatprep.mubr.bf16.mxu0 %v2068_v18 }
 0x10f   :  { %1793 = vmatpush1.bf16.msra.mxu1 %v2666_v20  ;;  %v1998_v18 = vshrl.u32 %v1997_v28, 7 }
 0x110   :  { %1957 = vmatpush1.bf16.msra.mxu0 %v2669_v29  ;;  %1794 = vmatprep.subr.bf16.mxu1 %v2674_v30  ;;  %v1995_v29 = vld [vmem:[#allocation7] sm:$0x3] }
 0x111   :  { %1958 = vmatprep.subr.bf16.mxu0 %v2677_v31  ;;  %v1999_v20 = vsub.s32 0, %v1998_v18  ;;  %v2003_v30 = vsub.s32 1, %v1998_v18  ;;  %v2009_v31 = vld [vmem:[#allocation8] sm:$0x3] }
 0x113   :  { %1795 = vmatpush1.bf16.msra.mxu1 %v2672_v32  ;;  %v2000_v32 = vrot.slane %v1995_v29, %v1999_v20  ;;  %v2018_v23 = vrot.slane %v2009_v31, %v2003_v30 }
 0x114   :  { %1959 = vmatpush1.bf16.msra.mxu0 %v2675_v33  ;;  %1796 = vmatprep.subr.bf16.mxu1 %v2680_v34 }
 0x115   :  { %1960 = vmatprep.subr.bf16.mxu0 %v2683_v35  ;;  %v2004_v35 = vrot.slane %v1995_v29, %v2003_v30 }
 0x117   :  { %1797 = vmatpush1.bf16.msra.mxu1 %v2678_v36 }
 0x118   :  { %1961 = vmatpush1.bf16.msra.mxu0 %v2681_v37  ;;  %1798 = vmatprep.subr.bf16.mxu1 %v2686_v38  ;;  %v2014_v37 = vrot.slane %v2009_v31, %v1999_v20 }
 0x119   :  { %1962 = vmatprep.subr.bf16.mxu0 %v2689_v39 }
 0x11b   :  { %1799 = vmatpush1.bf16.msra.mxu1 %v2684_v40 }
 0x11c   :  { %1963 = vmatpush1.bf16.msra.mxu0 %v2687_v41  ;;  %1800 = vmatprep.subr.bf16.mxu1 %v2692_v42 }
 0x11d   :  { %1964 = vmatprep.subr.bf16.mxu0 %v2695_v43 }
 0x11f   :  { %1801 = vmatpush1.bf16.msra.mxu1 %v2690_v44 }
 0x120   :  { %1965 = vmatpush1.bf16.msra.mxu0 %v2693_v45  ;;  %1802 = vmatprep.subr.bf16.mxu1 %v2698_v46 }
 0x121   :  { %1966 = vmatprep.subr.bf16.mxu0 %v2701_v47 }
 0x123   :  { %1803 = vmatpush1.bf16.msra.mxu1 %v2696_v48 }
 0x124   :  { %1967 = vmatpush1.bf16.msra.mxu0 %v2699_v49  ;;  %1804 = vmatprep.subr.bf16.mxu1 %v2704_v50 }
 0x125   :  { %1968 = vmatprep.subr.bf16.mxu0 %v2707_v51 }
 0x127   :  { %1805 = vmatpush1.bf16.msra.mxu1 %v2702_v52 }
 0x128   :  { %1969 = vmatpush1.bf16.msra.mxu0 %v2705_v53  ;;  %1806 = vmatprep.subr.bf16.mxu1 %v2710_v54 }
 0x129   :  { %1970 = vmatprep.subr.bf16.mxu0 %v2713_v55 }
 0x12b   :  { %1807 = vmatpush1.bf16.msra.mxu1 %v2708_v56 }
 0x12c   :  { %1971 = vmatpush1.bf16.msra.mxu0 %v2711_v57  ;;  %1808 = vmatprep.subr.bf16.mxu1 %v2716_v58 }
 0x12d   :  { %1972 = vmatprep.subr.bf16.mxu0 %v2719_v59 }
 0x12f   :  { %1809 = vmatpush1.bf16.msra.mxu1 %v2714_v60 }
 0x130   :  { %1973 = vmatpush1.bf16.msra.mxu0 %v2717_v61  ;;  %1810 = vmatprep.subr.bf16.mxu1 %v2722_v62 }
 0x131   :  { %1974 = vmatprep.subr.bf16.mxu0 %v2725_v63 }
 0x133   :  { %1811 = vmatpush1.bf16.msra.mxu1 %v2720_v0 }
 0x134   :  { %1975 = vmatpush1.bf16.msra.mxu0 %v2723_v1  ;;  %1812 = vmatprep.subr.bf16.mxu1 %v2728_v2 }
 0x135   :  { %1976 = vmatprep.subr.bf16.mxu0 %v2731_v3 }
 0x137   :  { %1813 = vmatpush1.bf16.msra.mxu1 %v2726_v4 }
 0x138   :  { %1977 = vmatpush1.bf16.msra.mxu0 %v2729_v5  ;;  %1814 = vmatprep.subr.bf16.mxu1 %v2734_v6 }
 0x139   :  { %1978 = vmatprep.subr.bf16.mxu0 %v2737_v7 }
 0x13b   :  { %1815 = vmatpush1.bf16.msra.mxu1 %v2732_v8 }
 0x13c   :  { %1979 = vmatpush1.bf16.msra.mxu0 %v2735_v9  ;;  %1816 = vmatprep.subr.bf16.mxu1 %v2740_v10 }
 0x13d   :  { %1980 = vmatprep.subr.bf16.mxu0 %v2743_v11 }
 0x13f   :  { %1817 = vmatpush1.bf16.msra.mxu1 %v2738_v12 }
 0x140   :  { %1981 = vmatpush1.bf16.msra.mxu0 %v2741_v13  ;;  %1818 = vmatprep.subr.bf16.mxu1 %v2746_v14 }
 0x141   :  { %1982 = vmatprep.subr.bf16.mxu0 %v2749_v15 }
 0x143   :  { %1819 = vmatpush1.bf16.msra.mxu1 %v2744_v16 }
 0x144   :  { %1983 = vmatpush1.bf16.msra.mxu0 %v2747_v17  ;;  %1820 = vmatprep.subr.bf16.mxu1 %v2752_v19 }
 0x145   :  { %1984 = vmatprep.subr.bf16.mxu0 %v2755_v21 }
 0x147   :  { %1821 = vmatpush1.bf16.msra.mxu1 %v2750_v24 }
 0x148   :  { %1985 = vmatpush1.bf16.msra.mxu0 %v2753_v25 }
 0x14a   :  { %1823 = vmatmul.mubr.bf16.vlgmr.msra.gmra.mrb[0].mxu1 %v2059_v26 }
 0x14b   :  { %1987 = vmatmul.mubr.bf16.vlgmr.msra.gmra.mrb[0].mxu0 %v2067_v27 }
 0x21d   :  { %v1824_v33 = vpop.f32.mrb[0].mxu1 }
 0x21e   :  { %v1988_v34 = vpop.f32.mrb[0].mxu0  ;;  %v1826_v22 = vpop.f32.mrb[1].mxu1 }
 0x21f   :  { %v2327_v36 = vadd.f32 %v1988_v34, %v1824_v33  ;;  %v1990_v38 = vpop.f32.mrb[1].mxu0  ;;  %v1828_v40 = vpop.f32.mrb[2].mxu1 }
 0x220   :  { %v2328_v39 = vadd.f32 %v1990_v38, %v1826_v22  ;;  %v1992_v41 = vpop.f32.mrb[2].mxu0  ;;  %v1829_v43 = vpop.f32.mrb[3].mxu1 }
 0x221   :  { %v2007_v42 = vmul.f32 %v2327_v36, %v2000_v32  ;;  %v1993_v44 = vpop.f32.mrb[3].mxu0 }
 0x222   :  { %v2008_v45 = vmul.f32 %v2328_v39, %v2004_v35 }
 0x223   :  { %v2021_v46 = vadd.f32 %v2014_v37, %v2007_v42 }
 0x224   :  { %v2022_v47 = vadd.f32 %v2018_v23, %v2008_v45 }
 0x225   :  { %v2023_v48 = vmul.f32 0.2, %v2021_v46 }
 0x226   :  { %v2024_v49 = vmul.f32 0.2, %v2022_v47 }
 0x227   :  { %v2025_v50 = vmax.f32 %v2021_v46, %v2023_v48 }
 0x228   :  { %v2026_v51 = vmax.f32 %v2022_v47, %v2024_v49 }
 0x22a   :  { %v2326_v52 = vpack.c.bf16 %v2026_v51, %v2025_v50 }
 0x22c   :  { %2035 = vst [vmem:[#allocation10] sm:$0xff] %v2326_v52 }
 0x22d   :  { %2859 = shalt.err (!%p2856_p8)
}
 0x22e   :  { %s2860_s1 = scalar_lea.hbm %s3010_s4, 128 }
 0x22f   :  { %p2861_p9 = scmp.ne.s32.totalorder %s3010_s4, %s2860_s1  ;;  %p2864_p10 = scmp.lt.u32.totalorder %s2860_s1, %s3010_s4 }
 0x231   :  { %p2866_p11 = pnand %p2864_p10, %p2861_p9 }
 0x233   :  { %2869 = shalt.err (!%p2866_p11)
}
 0x234   :  { %2045 = dma.vmem_to_hbm [thread:$0]  %s2043_s10, 128, %s3010_s4, [#allocation4]  }
 0x235   :  { %2876 = dma.done.wait [#allocation4], 128  }
 0x236   :  { %2877 = vsyncadd [#allocation4], 4294967168 }
 0x237   :  { %2049 = vsyncpa [#allocation3], 1 }
 0x238   :  { %2050 = vsyncpa [#allocation6], 1 }
 0x239   :  { %2051 = vsyncpa [#allocation9], 1 }
 0x23a   :  { %2052 = vsyncpa [#allocation4], 1 }

// kernel: discriminator_forward.7
= control target key start
LH: loop header
LB: loop body
LE: loop exit
PB: predicated region body
PF: predicated region fallthrough
CT: control target
= control target key end

     0   :  { %9 = vsyncpa [#allocation3], 0  ;;  %s4076_s0 = inlined_call_operand.hbm [shape: bf16[8,4096], index: 0, kind: input, shape index: {}]   ;;  %s4077_s1 = inlined_call_operand.hbm [shape: bf16[4096,128], index: 1, kind: input, shape index: {}]   ;;  %s4078_s2 = inlined_call_operand.hbm [shape: f32[1,128], index: 2, kind: input, shape index: {}]   ;;  %s4079_s3 = inlined_call_operand.hbm [shape: f32[1,128], index: 3, kind: input, shape index: {}]   ;;  %s4080_s4 = inlined_call_operand.hbm [shape: f32[8,128], index: 4, kind: output, shape index: {}]  }
   0x1   :  { %10 = vsyncpa [#allocation6], 0 }
   0x2   :  { %11 = vsyncpa [#allocation9], 0 }
   0x3   :  { %12 = vsyncpa [#allocation4], 0  ;;  %s3984_s15 = smov [#allocation5]   ;;  %s3866_s19 = scalar_lea.hbm %s4077_s1, 32768 }
   0x4   :  { %s28_s16 = sshll.u32 %s3984_s15, 4  ;;  %p3867_p0 = scmp.ne.s32.totalorder %s4077_s1, %s3866_s19  ;;  %s29_s16 = int_to_ptr.vmem [resolvable:$true] %s28_s16 }
   0x5   :  { %p3870_p1 = scmp.lt.u32.totalorder %s3866_s19, %s4077_s1 }
   0x7   :  { %p3872_p2 = pnand %p3870_p1, %p3867_p0 }
   0x9   :  { %3875 = shalt.err (!%p3872_p2)
}
   0xa   :  { %s3876_s24 = scalar_lea.vmem %s29_s16, 32768  ;;  %p3881_p4 = scmp.lt.s32.totalorder %s29_s16, %s29_s16 }
   0xb   :  { %p3877_p3 = scmp.ne.s32.totalorder %s29_s16, %s3876_s24  ;;  %p3882_p5 = scmp.lt.s32.totalorder %s3876_s24, %s3876_s24 }
   0xd   :  { %p3883_p6 = por %p3882_p5, %p3881_p4 }
   0xf   :  { %p3884_p7 = pnand %p3883_p6, %p3877_p3 }
  0x11   :  { %3887 = shalt.err (!%p3884_p7)
}
  0x12   :  { %s3985_s25 = smov 64   ;;  %s3986_s26 = smov 4  }
  0x13   :  { %34 = dma.hbm_to_vmem [thread:$0]  %s4077_s1, 32768, %s29_s16, [#allocation6], %s3985_s25, %s3985_s25, %s3986_s26  }
  0x14   :  { %s3987_s29 = smov [#allocation2]   ;;  %s3988_s5 = smov [#allocation7]  }
  0x15   :  { %s19_s30 = sshll.u32 %s3987_s29, 4  ;;  %s41_s6 = sshll.u32 %s3988_s5, 4  ;;  %s20_s30 = int_to_ptr.vmem [resolvable:$true] %s19_s30  ;;  %s42_s6 = int_to_ptr.vmem [resolvable:$true] %s41_s6 }
  0x16   :  { %s3888_s9 = scalar_lea.hbm %s4076_s0, 2048 }
  0x17   :  { %p3889_p8 = scmp.ne.s32.totalorder %s4076_s0, %s3888_s9  ;;  %p3892_p9 = scmp.lt.u32.totalorder %s3888_s9, %s4076_s0 }
  0x19   :  { %p3894_p10 = pnand %p3892_p9, %p3889_p8 }
  0x1b   :  { %3897 = shalt.err (!%p3894_p10)
}
  0x1c   :  { %s3898_s1 = scalar_lea.vmem %s20_s30, 2048  ;;  %p3903_p12 = scmp.lt.s32.totalorder %s20_s30, %s20_s30 }
  0x1d   :  { %p3899_p11 = scmp.ne.s32.totalorder %s20_s30, %s3898_s1  ;;  %p3904_p13 = scmp.lt.s32.totalorder %s3898_s1, %s3898_s1 }
  0x1f   :  { %p3905_p0 = por %p3904_p13, %p3903_p12 }
  0x21   :  { %p3906_p1 = pnand %p3905_p0, %p3899_p11 }
  0x23   :  { %3909 = shalt.err (!%p3906_p1)
}
  0x24   :  { %22 = dma.hbm_to_vmem [thread:$0]  %s4076_s0, 2048, %s20_s30, [#allocation3]  }
  0x25   :  { %s3910_s18 = scalar_lea.hbm %s4078_s2, 16 }
  0x26   :  { %p3911_p2 = scmp.ne.s32.totalorder %s4078_s2, %s3910_s18  ;;  %p3914_p3 = scmp.lt.u32.totalorder %s3910_s18, %s4078_s2 }
  0x28   :  { %p3916_p4 = pnand %p3914_p3, %p3911_p2 }
  0x2a   :  { %3919 = shalt.err (!%p3916_p4)
}
  0x2b   :  { %s3920_s23 = scalar_lea.vmem %s42_s6, 16  ;;  %s3924_s24 = scalar_lea.vmem %s42_s6, 32 }
  0x2c   :  { %p3921_p5 = scmp.ne.s32.totalorder %s42_s6, %s3920_s23  ;;  %p3925_p6 = scmp.lt.s32.totalorder %s42_s6, %s42_s6 }
  0x2d   :  { %p3926_p7 = scmp.lt.s32.totalorder %s3924_s24, %s3920_s23 }
  0x2f   :  { %p3927_p8 = por %p3926_p7, %p3925_p6 }
  0x31   :  { %p3928_p9 = pnand %p3927_p8, %p3921_p5 }
  0x33   :  { %3931 = shalt.err (!%p3928_p9)
}
  0x34   :  { %44 = dma.hbm_to_vmem [thread:$0]  %s4078_s2, 16, %s42_s6, [#allocation6]  }
  0x35   :  { %s3989_s26 = smov [#allocation8]   ;;  %s3932_s30 = scalar_lea.hbm %s4079_s3, 16 }
  0x36   :  { %s51_s27 = sshll.u32 %s3989_s26, 4  ;;  %p3933_p10 = scmp.ne.s32.totalorder %s4079_s3, %s3932_s30  ;;  %s52_s27 = int_to_ptr.vmem [resolvable:$true] %s51_s27 }
  0x37   :  { %p3936_p11 = scmp.lt.u32.totalorder %s3932_s30, %s4079_s3 }
  0x39   :  { %p3938_p12 = pnand %p3936_p11, %p3933_p10 }
  0x3b   :  { %3941 = shalt.err (!%p3938_p12)
}
  0x3c   :  { %s3942_s10 = scalar_lea.vmem %s52_s27, 16  ;;  %s3946_s2 = scalar_lea.vmem %s52_s27, 32 }
  0x3d   :  { %p3943_p13 = scmp.ne.s32.totalorder %s52_s27, %s3942_s10  ;;  %p3947_p0 = scmp.lt.s32.totalorder %s52_s27, %s52_s27 }
  0x3e   :  { %p3948_p1 = scmp.lt.s32.totalorder %s3946_s2, %s3942_s10 }
  0x40   :  { %p3949_p2 = por %p3948_p1, %p3947_p0 }
  0x42   :  { %p3950_p3 = pnand %p3949_p2, %p3943_p13 }
  0x44   :  { %3953 = shalt.err (!%p3950_p3)
}
  0x45   :  { %54 = dma.hbm_to_vmem [thread:$0]  %s4079_s3, 16, %s52_s27, [#allocation9]  }
  0x46   :  { %3976 = dma.done.wait [#allocation3], 2048  }
  0x47   :  { %3977 = vsyncadd [#allocation3], 4294965248 }
  0x48   :  { %3978 = dma.done.wait [#allocation6], 32784  }
  0x49   :  { %3979 = vsyncadd [#allocation6], 4294934512 }
  0x4a   :  { %3980 = dma.done.wait [#allocation9], 16  }
  0x4b   :  { %3981 = vsyncadd [#allocation9], 4294967280  ;;  %v3574_v0 = vld [vmem:[#allocation5 + $0x40] sm:$0xff]   ;;  %v3578_v4 = vld [vmem:[#allocation5 + $0x48] sm:$0xff]   ;;  %s3990_s3 = smov [#allocation10]  }
  0x4c   :  { %v3575_v1 = vld [vmem:[#allocation5 + $0xc0] sm:$0xff]   ;;  %3215 = vmatprep.subr.bf16.mxu0 %v3574_v0  ;;  %v3579_v5 = vld [vmem:[#allocation5 + $0xc8] sm:$0xff]   ;;  %v3582_v8 = vld [vmem:[#allocation5 + $0x50] sm:$0xff]   ;;  %s2914_s12 = sshll.u32 %s3990_s3, 4  ;;  %s2915_s12 = int_to_ptr.vmem [resolvable:$true] %s2914_s12 }
  0x4d   :  { %v3576_v2 = vld [vmem:[#allocation5] sm:$0xff]   ;;  %3237 = vmatprep.subr.bf16.mxu1 %v3575_v1  ;;  %v3580_v6 = vld [vmem:[#allocation5 + $0x8] sm:$0xff]   ;;  %v3583_v9 = vld [vmem:[#allocation5 + $0xd0] sm:$0xff]   ;;  %s3954_s13 = scalar_lea.vmem %s2915_s12, 128  ;;  %p3959_p5 = scmp.lt.s32.totalorder %s2915_s12, %s2915_s12 }
  0x4e   :  { %v3577_v3 = vld [vmem:[#allocation5 + $0x80] sm:$0xff]   ;;  %3216 = vmatpush3.bf16.msra.mxu0 %v3576_v2  ;;  %v3581_v7 = vld [vmem:[#allocation5 + $0x88] sm:$0xff]   ;;  %v3584_v10 = vld [vmem:[#allocation5 + $0x10] sm:$0xff]   ;;  %p3955_p4 = scmp.ne.s32.totalorder %s2915_s12, %s3954_s13  ;;  %p3960_p6 = scmp.lt.s32.totalorder %s3954_s13, %s3954_s13 }
  0x4f   :  { %3238 = vmatpush3.bf16.msra.mxu1 %v3577_v3  ;;  %3217 = vmatprep.subr.bf16.mxu0 %v3578_v4  ;;  %v3585_v11 = vld [vmem:[#allocation5 + $0x90] sm:$0xff]   ;;  %v3586_v12 = vld [vmem:[#allocation5 + $0x58] sm:$0xff]   ;;  %v3590_v16 = vld [vmem:[#allocation5 + $0x60] sm:$0xff]  }
  0x50   :  { %3239 = vmatprep.subr.bf16.mxu1 %v3579_v5  ;;  %v3587_v13 = vld [vmem:[#allocation5 + $0xd8] sm:$0xff]   ;;  %v3591_v17 = vld [vmem:[#allocation5 + $0xe0] sm:$0xff]   ;;  %v3594_v20 = vld [vmem:[#allocation5 + $0x68] sm:$0xff]   ;;  %p3961_p7 = por %p3960_p6, %p3959_p5 }
  0x51   :  { %v3588_v14 = vld [vmem:[#allocation5 + $0x18] sm:$0xff]   ;;  %v3592_v18 = vld [vmem:[#allocation5 + $0x20] sm:$0xff]   ;;  %v3595_v21 = vld [vmem:[#allocation5 + $0xe8] sm:$0xff]  }
  0x52   :  { %3218 = vmatpush3.bf16.msra.mxu0 %v3580_v6  ;;  %v3589_v15 = vld [vmem:[#allocation5 + $0x98] sm:$0xff]   ;;  %v3593_v19 = vld [vmem:[#allocation5 + $0xa0] sm:$0xff]   ;;  %v3596_v22 = vld [vmem:[#allocation5 + $0x28] sm:$0xff]   ;;  %p3962_p8 = pnand %p3961_p7, %p3955_p4 }
  0x53   :  { %3240 = vmatpush3.bf16.msra.mxu1 %v3581_v7  ;;  %3219 = vmatprep.subr.bf16.mxu0 %v3582_v8  ;;  %v3597_v23 = vld [vmem:[#allocation5 + $0xa8] sm:$0xff]   ;;  %v3598_v24 = vld [vmem:[#allocation5 + $0x70] sm:$0xff]   ;;  %v3602_v28 = vld [vmem:[#allocation5 + $0x78] sm:$0xff]  }
  0x54   :  { %3241 = vmatprep.subr.bf16.mxu1 %v3583_v9  ;;  %v3599_v25 = vld [vmem:[#allocation5 + $0xf0] sm:$0xff]   ;;  %v3603_v29 = vld [vmem:[#allocation5 + $0xf8] sm:$0xff]   ;;  %v68_v32 = vld [vmem:[#allocation2] sm:$0xff] }
  0x55   :  { %v3600_v26 = vld [vmem:[#allocation5 + $0x30] sm:$0xff]   ;;  %v3604_v30 = vld [vmem:[#allocation5 + $0x38] sm:$0xff]   ;;  %v69_v33 = vld [vmem:[#allocation2 + $0x8] sm:$0xff]  ;;  %v2925_v34 = vcombine.low %v68_v32, %v68_v32  ;;  %v2926_v35 = vcombine.high %v68_v32, %v68_v32 }
  0x56   :  { %3220 = vmatpush3.bf16.msra.mxu0 %v3584_v10  ;;  %v3601_v27 = vld [vmem:[#allocation5 + $0xb0] sm:$0xff]   ;;  %v3605_v31 = vld [vmem:[#allocation5 + $0xb8] sm:$0xff]   ;;  %v2927_v36 = vcombine.low %v69_v33, %v69_v33  ;;  %v2928_v37 = vcombine.high %v69_v33, %v69_v33  ;;  %v3610_v38 = vld [vmem:[#allocation5 + $0x140] sm:$0xff]  }
  0x57   :  { %3242 = vmatpush3.bf16.msra.mxu1 %v3585_v11  ;;  %3221 = vmatprep.subr.bf16.mxu0 %v3586_v12  ;;  %v3611_v39 = vld [vmem:[#allocation5 + $0x1c0] sm:$0xff]   ;;  %v3614_v42 = vld [vmem:[#allocation5 + $0x148] sm:$0xff]   ;;  %v3618_v46 = vld [vmem:[#allocation5 + $0x150] sm:$0xff]  }
  0x58   :  { %3243 = vmatprep.subr.bf16.mxu1 %v3587_v13  ;;  %2276 = vmatprep.mubr.bf16.mxu0 %v2926_v35  ;;  %v3612_v40 = vld [vmem:[#allocation5 + $0x100] sm:$0xff]   ;;  %v3615_v43 = vld [vmem:[#allocation5 + $0x1c8] sm:$0xff]   ;;  %v3619_v47 = vld [vmem:[#allocation5 + $0x1d0] sm:$0xff]  }
  0x59   :  { %2316 = vmatprep.mubr.bf16.mxu1 %v2928_v37  ;;  %v3613_v41 = vld [vmem:[#allocation5 + $0x180] sm:$0xff]   ;;  %v3616_v44 = vld [vmem:[#allocation5 + $0x108] sm:$0xff]   ;;  %v3620_v48 = vld [vmem:[#allocation5 + $0x110] sm:$0xff]  }
  0x5a   :  { %3222 = vmatpush3.bf16.msra.mxu0 %v3588_v14  ;;  %v3617_v45 = vld [vmem:[#allocation5 + $0x188] sm:$0xff]   ;;  %v3621_v49 = vld [vmem:[#allocation5 + $0x190] sm:$0xff]   ;;  %v3622_v50 = vld [vmem:[#allocation5 + $0x158] sm:$0xff]  }
  0x5b   :  { %3244 = vmatpush3.bf16.msra.mxu1 %v3589_v15  ;;  %3223 = vmatprep.subr.bf16.mxu0 %v3590_v16  ;;  %v3623_v51 = vld [vmem:[#allocation5 + $0x1d8] sm:$0xff]   ;;  %v3626_v54 = vld [vmem:[#allocation5 + $0x160] sm:$0xff]   ;;  %v3630_v58 = vld [vmem:[#allocation5 + $0x168] sm:$0xff]  }
  0x5c   :  { %3245 = vmatprep.subr.bf16.mxu1 %v3591_v17  ;;  %v3624_v52 = vld [vmem:[#allocation5 + $0x118] sm:$0xff]   ;;  %v3627_v55 = vld [vmem:[#allocation5 + $0x1e0] sm:$0xff]   ;;  %v3631_v59 = vld [vmem:[#allocation5 + $0x1e8] sm:$0xff]  }
  0x5d   :  { %v3625_v53 = vld [vmem:[#allocation5 + $0x198] sm:$0xff]   ;;  %v3628_v56 = vld [vmem:[#allocation5 + $0x120] sm:$0xff]   ;;  %v3632_v60 = vld [vmem:[#allocation5 + $0x128] sm:$0xff]  }
  0x5e   :  { %3224 = vmatpush3.bf16.msra.mxu0 %v3592_v18  ;;  %v3629_v57 = vld [vmem:[#allocation5 + $0x1a0] sm:$0xff]   ;;  %v3633_v61 = vld [vmem:[#allocation5 + $0x1a8] sm:$0xff]   ;;  %v3634_v62 = vld [vmem:[#allocation5 + $0x170] sm:$0xff]  }
  0x5f   :  { %3246 = vmatpush3.bf16.msra.mxu1 %v3593_v19  ;;  %3225 = vmatprep.subr.bf16.mxu0 %v3594_v20  ;;  %v3635_v63 = vld [vmem:[#allocation5 + $0x1f0] sm:$0xff]   ;;  %v3638_v2 = vld [vmem:[#allocation5 + $0x178] sm:$0xff]   ;;  %v3646_v12 = vld [vmem:[#allocation5 + $0x240] sm:$0xff]  }
  0x60   :  { %3247 = vmatprep.subr.bf16.mxu1 %v3595_v21  ;;  %v3636_v0 = vld [vmem:[#allocation5 + $0x130] sm:$0xff]   ;;  %v3639_v3 = vld [vmem:[#allocation5 + $0x1f8] sm:$0xff]   ;;  %v3647_v13 = vld [vmem:[#allocation5 + $0x2c0] sm:$0xff]  }
  0x61   :  { %v3637_v1 = vld [vmem:[#allocation5 + $0x1b0] sm:$0xff]   ;;  %v3640_v4 = vld [vmem:[#allocation5 + $0x138] sm:$0xff]   ;;  %v3648_v14 = vld [vmem:[#allocation5 + $0x200] sm:$0xff]  }
  0x62   :  { %3226 = vmatpush3.bf16.msra.mxu0 %v3596_v22  ;;  %v3641_v5 = vld [vmem:[#allocation5 + $0x1b8] sm:$0xff]   ;;  %v70_v6 = vld [vmem:[#allocation2 + $0x10] sm:$0xff]  ;;  %v3649_v15 = vld [vmem:[#allocation5 + $0x280] sm:$0xff]  }
  0x63   :  { %3248 = vmatpush3.bf16.msra.mxu1 %v3597_v23  ;;  %3227 = vmatprep.subr.bf16.mxu0 %v3598_v24  ;;  %v2929_v7 = vcombine.low %v70_v6, %v70_v6  ;;  %v2930_v8 = vcombine.high %v70_v6, %v70_v6  ;;  %v71_v9 = vld [vmem:[#allocation2 + $0x18] sm:$0xff]  ;;  %v3650_v16 = vld [vmem:[#allocation5 + $0x248] sm:$0xff]   ;;  %v3654_v20 = vld [vmem:[#allocation5 + $0x250] sm:$0xff]  }
  0x64   :  { %3249 = vmatprep.subr.bf16.mxu1 %v3599_v25  ;;  %v2931_v10 = vcombine.low %v71_v9, %v71_v9  ;;  %v2932_v11 = vcombine.high %v71_v9, %v71_v9  ;;  %v3651_v17 = vld [vmem:[#allocation5 + $0x2c8] sm:$0xff]   ;;  %v3655_v21 = vld [vmem:[#allocation5 + $0x2d0] sm:$0xff]   ;;  %v3658_v24 = vld [vmem:[#allocation5 + $0x258] sm:$0xff]  }
  0x65   :  { %v3652_v18 = vld [vmem:[#allocation5 + $0x208] sm:$0xff]   ;;  %v3656_v22 = vld [vmem:[#allocation5 + $0x210] sm:$0xff]   ;;  %v3659_v25 = vld [vmem:[#allocation5 + $0x2d8] sm:$0xff]  }
  0x66   :  { %3228 = vmatpush3.bf16.msra.mxu0 %v3600_v26  ;;  %v3653_v19 = vld [vmem:[#allocation5 + $0x288] sm:$0xff]   ;;  %v3657_v23 = vld [vmem:[#allocation5 + $0x290] sm:$0xff]   ;;  %v3660_v26 = vld [vmem:[#allocation5 + $0x218] sm:$0xff]  }
  0x67   :  { %3250 = vmatpush3.bf16.msra.mxu1 %v3601_v27  ;;  %3229 = vmatprep.subr.bf16.mxu0 %v3602_v28  ;;  %v3661_v27 = vld [vmem:[#allocation5 + $0x298] sm:$0xff]   ;;  %v3662_v28 = vld [vmem:[#allocation5 + $0x260] sm:$0xff]   ;;  %v3666_v32 = vld [vmem:[#allocation5 + $0x268] sm:$0xff]  }
  0x68   :  { %3251 = vmatprep.subr.bf16.mxu1 %v3603_v29  ;;  %v3663_v29 = vld [vmem:[#allocation5 + $0x2e0] sm:$0xff]   ;;  %v3667_v33 = vld [vmem:[#allocation5 + $0x2e8] sm:$0xff]   ;;  %v3671_v37 = vld [vmem:[#allocation5 + $0x2f0] sm:$0xff]  }
  0x69   :  { %v3669_v35 = vld [vmem:[#allocation5 + $0x2a8] sm:$0xff]  }
  0x6a   :  { %3230 = vmatpush3.bf16.msra.mxu0 %v3604_v30  ;;  %v3664_v30 = vld [vmem:[#allocation5 + $0x220] sm:$0xff]   ;;  %v3702_v6 = vld [vmem:[#allocation5 + $0x368] sm:$0xff]  }
  0x6b   :  { %3252 = vmatpush3.bf16.msra.mxu1 %v3605_v31  ;;  %3259 = vmatprep.subr.bf16.mxu0 %v3610_v38  ;;  %v3665_v31 = vld [vmem:[#allocation5 + $0x2a0] sm:$0xff]   ;;  %v3672_v38 = vld [vmem:[#allocation5 + $0x230] sm:$0xff]   ;;  %v3705_v9 = vld [vmem:[#allocation5 + $0x3a8] sm:$0xff]  }
  0x6c   :  { %3281 = vmatprep.subr.bf16.mxu1 %v3611_v39  ;;  %v3673_v39 = vld [vmem:[#allocation5 + $0x2b0] sm:$0xff]  }
  0x6d   :  { %2277 = vmatmul.mubr.bf16.vlgmr.msra.gmra.mrb[0].mxu0 %v2925_v34  ;;  %v3668_v34 = vld [vmem:[#allocation5 + $0x228] sm:$0xff]  }
  0x6e   :  { %2317 = vmatmul.mubr.bf16.vlgmr.msra.gmra.mrb[0].mxu1 %v2927_v36  ;;  %3260 = vmatpush3.bf16.msra.mxu0 %v3612_v40  ;;  %v3670_v36 = vld [vmem:[#allocation5 + $0x270] sm:$0xff]   ;;  %v3674_v40 = vld [vmem:[#allocation5 + $0x278] sm:$0xff]  }
  0x6f   :  { %3282 = vmatpush3.bf16.msra.mxu1 %v3613_v41  ;;  %3261 = vmatprep.subr.bf16.mxu0 %v3614_v42  ;;  %v3675_v41 = vld [vmem:[#allocation5 + $0x2f8] sm:$0xff]  }
  0x70   :  { %3283 = vmatprep.subr.bf16.mxu1 %v3615_v43  ;;  %2356 = vmatprep.mubr.bf16.mxu0 %v2930_v8  ;;  %v3676_v42 = vld [vmem:[#allocation5 + $0x238] sm:$0xff]   ;;  %v3704_v8 = vld [vmem:[#allocation5 + $0x328] sm:$0xff]  }
  0x71   :  { %2396 = vmatprep.mubr.bf16.mxu1 %v2932_v11  ;;  %v3677_v43 = vld [vmem:[#allocation5 + $0x2b8] sm:$0xff]   ;;  %v3707_v11 = vld [vmem:[#allocation5 + $0x3f0] sm:$0xff]  }
  0x72   :  { %3262 = vmatpush3.bf16.msra.mxu0 %v3616_v44  ;;  %v72_v44 = vld [vmem:[#allocation2 + $0x20] sm:$0xff] }
  0x73   :  { %3284 = vmatpush3.bf16.msra.mxu1 %v3617_v45  ;;  %3263 = vmatprep.subr.bf16.mxu0 %v3618_v46  ;;  %v73_v45 = vld [vmem:[#allocation2 + $0x28] sm:$0xff]  ;;  %v2933_v46 = vcombine.low %v72_v44, %v72_v44 }
  0x74   :  { %3285 = vmatprep.subr.bf16.mxu1 %v3619_v47  ;;  %v2934_v47 = vcombine.high %v72_v44, %v72_v44  ;;  %v3738_v44 = vld [vmem:[#allocation5 + $0x468] sm:$0xff]  }
  0x76   :  { %3264 = vmatpush3.bf16.msra.mxu0 %v3620_v48  ;;  %v2935_v48 = vcombine.low %v73_v45, %v73_v45 }
  0x77   :  { %3286 = vmatpush3.bf16.msra.mxu1 %v3621_v49  ;;  %3265 = vmatprep.subr.bf16.mxu0 %v3622_v50  ;;  %v2936_v49 = vcombine.high %v73_v45, %v73_v45  ;;  %v3682_v50 = vld [vmem:[#allocation5 + $0x340] sm:$0xff]   ;;  %v3739_v45 = vld [vmem:[#allocation5 + $0x4e8] sm:$0xff]  }
  0x78   :  { %3287 = vmatprep.subr.bf16.mxu1 %v3623_v51  ;;  %v3683_v51 = vld [vmem:[#allocation5 + $0x3c0] sm:$0xff]  }
  0x7a   :  { %3266 = vmatpush3.bf16.msra.mxu0 %v3624_v52  ;;  %v3684_v52 = vld [vmem:[#allocation5 + $0x300] sm:$0xff]  }
  0x7b   :  { %3288 = vmatpush3.bf16.msra.mxu1 %v3625_v53  ;;  %3267 = vmatprep.subr.bf16.mxu0 %v3626_v54  ;;  %v3685_v53 = vld [vmem:[#allocation5 + $0x380] sm:$0xff]   ;;  %v3686_v54 = vld [vmem:[#allocation5 + $0x348] sm:$0xff]  }
  0x7c   :  { %3289 = vmatprep.subr.bf16.mxu1 %v3627_v55  ;;  %v3687_v55 = vld [vmem:[#allocation5 + $0x3c8] sm:$0xff]  }
  0x7e   :  { %3268 = vmatpush3.bf16.msra.mxu0 %v3628_v56  ;;  %v3688_v56 = vld [vmem:[#allocation5 + $0x308] sm:$0xff]  }
  0x7f   :  { %3290 = vmatpush3.bf16.msra.mxu1 %v3629_v57  ;;  %3269 = vmatprep.subr.bf16.mxu0 %v3630_v58  ;;  %v3689_v57 = vld [vmem:[#allocation5 + $0x388] sm:$0xff]   ;;  %v3690_v58 = vld [vmem:[#allocation5 + $0x350] sm:$0xff]  }
  0x80   :  { %3291 = vmatprep.subr.bf16.mxu1 %v3631_v59  ;;  %v3691_v59 = vld [vmem:[#allocation5 + $0x3d0] sm:$0xff]  }
  0x82   :  { %3270 = vmatpush3.bf16.msra.mxu0 %v3632_v60  ;;  %v3692_v60 = vld [vmem:[#allocation5 + $0x310] sm:$0xff]  }
  0x83   :  { %3292 = vmatpush3.bf16.msra.mxu1 %v3633_v61  ;;  %3271 = vmatprep.subr.bf16.mxu0 %v3634_v62  ;;  %v3693_v61 = vld [vmem:[#allocation5 + $0x390] sm:$0xff]   ;;  %v3694_v62 = vld [vmem:[#allocation5 + $0x358] sm:$0xff]  }
  0x84   :  { %3293 = vmatprep.subr.bf16.mxu1 %v3635_v63  ;;  %v3695_v63 = vld [vmem:[#allocation5 + $0x3d8] sm:$0xff]  }
  0x86   :  { %3272 = vmatpush3.bf16.msra.mxu0 %v3636_v0  ;;  %v3696_v0 = vld [vmem:[#allocation5 + $0x318] sm:$0xff]  }
  0x87   :  { %3294 = vmatpush3.bf16.msra.mxu1 %v3637_v1  ;;  %3273 = vmatprep.subr.bf16.mxu0 %v3638_v2  ;;  %v3697_v1 = vld [vmem:[#allocation5 + $0x398] sm:$0xff]   ;;  %v3698_v2 = vld [vmem:[#allocation5 + $0x360] sm:$0xff]  }
  0x88   :  { %3295 = vmatprep.subr.bf16.mxu1 %v3639_v3  ;;  %v3699_v3 = vld [vmem:[#allocation5 + $0x3e0] sm:$0xff]  }
  0x8a   :  { %3274 = vmatpush3.bf16.msra.mxu0 %v3640_v4  ;;  %v3700_v4 = vld [vmem:[#allocation5 + $0x320] sm:$0xff]  }
  0x8b   :  { %3296 = vmatpush3.bf16.msra.mxu1 %v3641_v5  ;;  %3303 = vmatprep.subr.bf16.mxu0 %v3646_v12  ;;  %v3701_v5 = vld [vmem:[#allocation5 + $0x3a0] sm:$0xff]   ;;  %v3708_v12 = vld [vmem:[#allocation5 + $0x330] sm:$0xff]  }
  0x8c   :  { %3325 = vmatprep.subr.bf16.mxu1 %v3647_v13  ;;  %v3709_v13 = vld [vmem:[#allocation5 + $0x3b0] sm:$0xff]  }
  0x8d   :  { %2357 = vmatmul.mubr.bf16.vlgmr.msra.gmra.mrb[4].mxu0 %v2929_v7  ;;  %v3703_v7 = vld [vmem:[#allocation5 + $0x3e8] sm:$0xff]  }
  0x8e   :  { %2397 = vmatmul.mubr.bf16.vlgmr.msra.gmra.mrb[4].mxu1 %v2931_v10  ;;  %3304 = vmatpush3.bf16.msra.mxu0 %v3648_v14  ;;  %v3706_v10 = vld [vmem:[#allocation5 + $0x370] sm:$0xff]   ;;  %v3710_v14 = vld [vmem:[#allocation5 + $0x378] sm:$0xff]  }
  0x8f   :  { %3326 = vmatpush3.bf16.msra.mxu1 %v3649_v15  ;;  %3305 = vmatprep.subr.bf16.mxu0 %v3650_v16  ;;  %v3711_v15 = vld [vmem:[#allocation5 + $0x3f8] sm:$0xff]  }
  0x90   :  { %3327 = vmatprep.subr.bf16.mxu1 %v3651_v17  ;;  %2436 = vmatprep.mubr.bf16.mxu0 %v2934_v47  ;;  %v3712_v16 = vld [vmem:[#allocation5 + $0x338] sm:$0xff]   ;;  %v3741_v47 = vld [vmem:[#allocation5 + $0x4a8] sm:$0xff]  }
  0x91   :  { %2476 = vmatprep.mubr.bf16.mxu1 %v2936_v49  ;;  %v3713_v17 = vld [vmem:[#allocation5 + $0x3b8] sm:$0xff]   ;;  %v3743_v49 = vld [vmem:[#allocation5 + $0x4f0] sm:$0xff]  }
  0x92   :  { %3306 = vmatpush3.bf16.msra.mxu0 %v3652_v18  ;;  %v74_v18 = vld [vmem:[#allocation2 + $0x30] sm:$0xff] }
  0x93   :  { %3328 = vmatpush3.bf16.msra.mxu1 %v3653_v19  ;;  %3307 = vmatprep.subr.bf16.mxu0 %v3654_v20  ;;  %v75_v19 = vld [vmem:[#allocation2 + $0x38] sm:$0xff]  ;;  %v2937_v20 = vcombine.low %v74_v18, %v74_v18 }
  0x94   :  { %3329 = vmatprep.subr.bf16.mxu1 %v3655_v21  ;;  %v2938_v21 = vcombine.high %v74_v18, %v74_v18  ;;  %v3774_v18 = vld [vmem:[#allocation5 + $0x568] sm:$0xff]  }
  0x96   :  { %3308 = vmatpush3.bf16.msra.mxu0 %v3656_v22  ;;  %v2939_v22 = vcombine.low %v75_v19, %v75_v19 }
  0x97   :  { %3330 = vmatpush3.bf16.msra.mxu1 %v3657_v23  ;;  %3309 = vmatprep.subr.bf16.mxu0 %v3658_v24  ;;  %v3718_v23 = vld [vmem:[#allocation5 + $0x440] sm:$0xff]   ;;  %v2940_v24 = vcombine.high %v75_v19, %v75_v19  ;;  %v3775_v19 = vld [vmem:[#allocation5 + $0x5e8] sm:$0xff]  }
  0x98   :  { %3331 = vmatprep.subr.bf16.mxu1 %v3659_v25  ;;  %v3719_v25 = vld [vmem:[#allocation5 + $0x4c0] sm:$0xff]  }
  0x9a   :  { %3310 = vmatpush3.bf16.msra.mxu0 %v3660_v26  ;;  %v3720_v26 = vld [vmem:[#allocation5 + $0x400] sm:$0xff]  }
  0x9b   :  { %3332 = vmatpush3.bf16.msra.mxu1 %v3661_v27  ;;  %3311 = vmatprep.subr.bf16.mxu0 %v3662_v28  ;;  %v3721_v27 = vld [vmem:[#allocation5 + $0x480] sm:$0xff]   ;;  %v3722_v28 = vld [vmem:[#allocation5 + $0x448] sm:$0xff]  }
  0x9c   :  { %3333 = vmatprep.subr.bf16.mxu1 %v3663_v29  ;;  %v3723_v29 = vld [vmem:[#allocation5 + $0x4c8] sm:$0xff]  }
  0x9e   :  { %3312 = vmatpush3.bf16.msra.mxu0 %v3664_v30  ;;  %v3724_v30 = vld [vmem:[#allocation5 + $0x408] sm:$0xff]  }
  0x9f   :  { %3334 = vmatpush3.bf16.msra.mxu1 %v3665_v31  ;;  %3313 = vmatprep.subr.bf16.mxu0 %v3666_v32  ;;  %v3725_v31 = vld [vmem:[#allocation5 + $0x488] sm:$0xff]   ;;  %v3726_v32 = vld [vmem:[#allocation5 + $0x450] sm:$0xff]  }
  0xa0   :  { %3335 = vmatprep.subr.bf16.mxu1 %v3667_v33  ;;  %v3727_v33 = vld [vmem:[#allocation5 + $0x4d0] sm:$0xff]  }
  0xa2   :  { %3314 = vmatpush3.bf16.msra.mxu0 %v3668_v34  ;;  %v3728_v34 = vld [vmem:[#allocation5 + $0x410] sm:$0xff]  }
  0xa3   :  { %3336 = vmatpush3.bf16.msra.mxu1 %v3669_v35  ;;  %3315 = vmatprep.subr.bf16.mxu0 %v3670_v36  ;;  %v3729_v35 = vld [vmem:[#allocation5 + $0x490] sm:$0xff]   ;;  %v3730_v36 = vld [vmem:[#allocation5 + $0x458] sm:$0xff]  }
  0xa4   :  { %3337 = vmatprep.subr.bf16.mxu1 %v3671_v37  ;;  %v3731_v37 = vld [vmem:[#allocation5 + $0x4d8] sm:$0xff]  }
  0xa6   :  { %3316 = vmatpush3.bf16.msra.mxu0 %v3672_v38  ;;  %v3732_v38 = vld [vmem:[#allocation5 + $0x418] sm:$0xff]  }
  0xa7   :  { %3338 = vmatpush3.bf16.msra.mxu1 %v3673_v39  ;;  %3317 = vmatprep.subr.bf16.mxu0 %v3674_v40  ;;  %v3733_v39 = vld [vmem:[#allocation5 + $0x498] sm:$0xff]   ;;  %v3734_v40 = vld [vmem:[#allocation5 + $0x460] sm:$0xff]  }
  0xa8   :  { %3339 = vmatprep.subr.bf16.mxu1 %v3675_v41  ;;  %v3735_v41 = vld [vmem:[#allocation5 + $0x4e0] sm:$0xff]  }
  0xaa   :  { %3318 = vmatpush3.bf16.msra.mxu0 %v3676_v42  ;;  %v3736_v42 = vld [vmem:[#allocation5 + $0x420] sm:$0xff]  }
  0xab   :  { %3340 = vmatpush3.bf16.msra.mxu1 %v3677_v43  ;;  %3347 = vmatprep.subr.bf16.mxu0 %v3682_v50  ;;  %v3737_v43 = vld [vmem:[#allocation5 + $0x4a0] sm:$0xff]   ;;  %v3744_v50 = vld [vmem:[#allocation5 + $0x430] sm:$0xff]  }
  0xac   :  { %3369 = vmatprep.subr.bf16.mxu1 %v3683_v51  ;;  %v3745_v51 = vld [vmem:[#allocation5 + $0x4b0] sm:$0xff]  }
  0xad   :  { %2437 = vmatmul.mubr.bf16.vlgmr.msra.gmra.mrb[8].mxu0 %v2933_v46  ;;  %v3740_v46 = vld [vmem:[#allocation5 + $0x428] sm:$0xff]  }
  0xae   :  { %2477 = vmatmul.mubr.bf16.vlgmr.msra.gmra.mrb[8].mxu1 %v2935_v48  ;;  %3348 = vmatpush3.bf16.msra.mxu0 %v3684_v52  ;;  %v3742_v48 = vld [vmem:[#allocation5 + $0x470] sm:$0xff]   ;;  %v3746_v52 = vld [vmem:[#allocation5 + $0x478] sm:$0xff]  }
  0xaf   :  { %3370 = vmatpush3.bf16.msra.mxu1 %v3685_v53  ;;  %3349 = vmatprep.subr.bf16.mxu0 %v3686_v54  ;;  %v3747_v53 = vld [vmem:[#allocation5 + $0x4f8] sm:$0xff]  }
  0xb0   :  { %3371 = vmatprep.subr.bf16.mxu1 %v3687_v55  ;;  %2516 = vmatprep.mubr.bf16.mxu0 %v2938_v21  ;;  %v3748_v54 = vld [vmem:[#allocation5 + $0x438] sm:$0xff]   ;;  %v3777_v21 = vld [vmem:[#allocation5 + $0x5a8] sm:$0xff]  }
  0xb1   :  { %2556 = vmatprep.mubr.bf16.mxu1 %v2940_v24  ;;  %v3749_v55 = vld [vmem:[#allocation5 + $0x4b8] sm:$0xff]   ;;  %v3780_v24 = vld [vmem:[#allocation5 + $0x530] sm:$0xff]  }
  0xb2   :  { %3350 = vmatpush3.bf16.msra.mxu0 %v3688_v56  ;;  %v76_v56 = vld [vmem:[#allocation2 + $0x40] sm:$0xff] }
  0xb3   :  { %3372 = vmatpush3.bf16.msra.mxu1 %v3689_v57  ;;  %3351 = vmatprep.subr.bf16.mxu0 %v3690_v58  ;;  %v2941_v57 = vcombine.low %v76_v56, %v76_v56  ;;  %v2942_v58 = vcombine.high %v76_v56, %v76_v56  ;;  %v3810_v56 = vld [vmem:[#allocation5 + $0x668] sm:$0xff]  }
  0xb4   :  { %3373 = vmatprep.subr.bf16.mxu1 %v3691_v59  ;;  %v77_v59 = vld [vmem:[#allocation2 + $0x48] sm:$0xff] }
  0xb6   :  { %3352 = vmatpush3.bf16.msra.mxu0 %v3692_v60  ;;  %v2943_v60 = vcombine.low %v77_v59, %v77_v59 }
  0xb7   :  { %3374 = vmatpush3.bf16.msra.mxu1 %v3693_v61  ;;  %3353 = vmatprep.subr.bf16.mxu0 %v3694_v62  ;;  %v2944_v61 = vcombine.high %v77_v59, %v77_v59  ;;  %v3754_v62 = vld [vmem:[#allocation5 + $0x540] sm:$0xff]   ;;  %v3813_v59 = vld [vmem:[#allocation5 + $0x6a8] sm:$0xff]  }
  0xb8   :  { %3375 = vmatprep.subr.bf16.mxu1 %v3695_v63  ;;  %v3755_v63 = vld [vmem:[#allocation5 + $0x5c0] sm:$0xff]  }
  0xba   :  { %3354 = vmatpush3.bf16.msra.mxu0 %v3696_v0  ;;  %v3756_v0 = vld [vmem:[#allocation5 + $0x500] sm:$0xff]  }
  0xbb   :  { %3376 = vmatpush3.bf16.msra.mxu1 %v3697_v1  ;;  %3355 = vmatprep.subr.bf16.mxu0 %v3698_v2  ;;  %v3757_v1 = vld [vmem:[#allocation5 + $0x580] sm:$0xff]   ;;  %v3758_v2 = vld [vmem:[#allocation5 + $0x548] sm:$0xff]  }
  0xbc   :  { %3377 = vmatprep.subr.bf16.mxu1 %v3699_v3  ;;  %v3759_v3 = vld [vmem:[#allocation5 + $0x5c8] sm:$0xff]  }
  0xbe   :  { %3356 = vmatpush3.bf16.msra.mxu0 %v3700_v4  ;;  %v3760_v4 = vld [vmem:[#allocation5 + $0x508] sm:$0xff]  }
  0xbf   :  { %3378 = vmatpush3.bf16.msra.mxu1 %v3701_v5  ;;  %3357 = vmatprep.subr.bf16.mxu0 %v3702_v6  ;;  %v3761_v5 = vld [vmem:[#allocation5 + $0x588] sm:$0xff]   ;;  %v3762_v6 = vld [vmem:[#allocation5 + $0x550] sm:$0xff]  }
  0xc0   :  { %3379 = vmatprep.subr.bf16.mxu1 %v3703_v7  ;;  %v3763_v7 = vld [vmem:[#allocation5 + $0x5d0] sm:$0xff]  }
  0xc2   :  { %3358 = vmatpush3.bf16.msra.mxu0 %v3704_v8  ;;  %v3764_v8 = vld [vmem:[#allocation5 + $0x510] sm:$0xff]  }
  0xc3   :  { %3380 = vmatpush3.bf16.msra.mxu1 %v3705_v9  ;;  %3359 = vmatprep.subr.bf16.mxu0 %v3706_v10  ;;  %v3765_v9 = vld [vmem:[#allocation5 + $0x590] sm:$0xff]   ;;  %v3766_v10 = vld [vmem:[#allocation5 + $0x558] sm:$0xff]  }
  0xc4   :  { %3381 = vmatprep.subr.bf16.mxu1 %v3707_v11  ;;  %v3767_v11 = vld [vmem:[#allocation5 + $0x5d8] sm:$0xff]  }
  0xc6   :  { %3360 = vmatpush3.bf16.msra.mxu0 %v3708_v12  ;;  %v3768_v12 = vld [vmem:[#allocation5 + $0x518] sm:$0xff]  }
  0xc7   :  { %3382 = vmatpush3.bf16.msra.mxu1 %v3709_v13  ;;  %3361 = vmatprep.subr.bf16.mxu0 %v3710_v14  ;;  %v3769_v13 = vld [vmem:[#allocation5 + $0x598] sm:$0xff]   ;;  %v3770_v14 = vld [vmem:[#allocation5 + $0x560] sm:$0xff]  }
  0xc8   :  { %3383 = vmatprep.subr.bf16.mxu1 %v3711_v15  ;;  %v3771_v15 = vld [vmem:[#allocation5 + $0x5e0] sm:$0xff]  }
  0xca   :  { %3362 = vmatpush3.bf16.msra.mxu0 %v3712_v16  ;;  %v3772_v16 = vld [vmem:[#allocation5 + $0x520] sm:$0xff]  }
  0xcb   :  { %3384 = vmatpush3.bf16.msra.mxu1 %v3713_v17  ;;  %3391 = vmatprep.subr.bf16.mxu0 %v3718_v23  ;;  %v3773_v17 = vld [vmem:[#allocation5 + $0x5a0] sm:$0xff]   ;;  %v3779_v23 = vld [vmem:[#allocation5 + $0x5f0] sm:$0xff]  }
  0xcc   :  { %3413 = vmatprep.subr.bf16.mxu1 %v3719_v25  ;;  %v3781_v25 = vld [vmem:[#allocation5 + $0x5b0] sm:$0xff]  }
  0xcd   :  { %2517 = vmatmul.mubr.bf16.vlgmr.msra.gmra.mrb[12].mxu0 %v2937_v20  ;;  %v3776_v20 = vld [vmem:[#allocation5 + $0x528] sm:$0xff]  }
  0xce   :  { %2557 = vmatmul.mubr.bf16.vlgmr.msra.gmra.mrb[12].mxu1 %v2939_v22  ;;  %3392 = vmatpush3.bf16.msra.mxu0 %v3720_v26  ;;  %v3778_v22 = vld [vmem:[#allocation5 + $0x570] sm:$0xff]   ;;  %v3782_v26 = vld [vmem:[#allocation5 + $0x578] sm:$0xff]  }
  0xcf   :  { %3414 = vmatpush3.bf16.msra.mxu1 %v3721_v27  ;;  %3393 = vmatprep.subr.bf16.mxu0 %v3722_v28  ;;  %v3783_v27 = vld [vmem:[#allocation5 + $0x5f8] sm:$0xff]  }
  0xd0   :  { %3415 = vmatprep.subr.bf16.mxu1 %v3723_v29  ;;  %2596 = vmatprep.mubr.bf16.mxu0 %v2942_v58  ;;  %v3784_v28 = vld [vmem:[#allocation5 + $0x538] sm:$0xff]   ;;  %v3812_v58 = vld [vmem:[#allocation5 + $0x628] sm:$0xff]  }
  0xd1   :  { %2636 = vmatprep.mubr.bf16.mxu1 %v2944_v61  ;;  %v3785_v29 = vld [vmem:[#allocation5 + $0x5b8] sm:$0xff]   ;;  %v3815_v61 = vld [vmem:[#allocation5 + $0x6f0] sm:$0xff]  }
  0xd2   :  { %3394 = vmatpush3.bf16.msra.mxu0 %v3724_v30  ;;  %v78_v30 = vld [vmem:[#allocation2 + $0x50] sm:$0xff] }
  0xd3   :  { %3416 = vmatpush3.bf16.msra.mxu1 %v3725_v31  ;;  %3395 = vmatprep.subr.bf16.mxu0 %v3726_v32  ;;  %v79_v31 = vld [vmem:[#allocation2 + $0x58] sm:$0xff]  ;;  %v2945_v32 = vcombine.low %v78_v30, %v78_v30 }
  0xd4   :  { %3417 = vmatprep.subr.bf16.mxu1 %v3727_v33  ;;  %v2946_v33 = vcombine.high %v78_v30, %v78_v30  ;;  %v3845_v30 = vld [vmem:[#allocation5 + $0x7a0] sm:$0xff]  }
  0xd6   :  { %3396 = vmatpush3.bf16.msra.mxu0 %v3728_v34  ;;  %v2947_v34 = vcombine.low %v79_v31, %v79_v31 }
  0xd7   :  { %3418 = vmatpush3.bf16.msra.mxu1 %v3729_v35  ;;  %3397 = vmatprep.subr.bf16.mxu0 %v3730_v36  ;;  %v2948_v35 = vcombine.high %v79_v31, %v79_v31  ;;  %v3790_v36 = vld [vmem:[#allocation5 + $0x640] sm:$0xff]  }
  0xd8   :  { %3419 = vmatprep.subr.bf16.mxu1 %v3731_v37  ;;  %v3791_v37 = vld [vmem:[#allocation5 + $0x6c0] sm:$0xff]  }
  0xda   :  { %3398 = vmatpush3.bf16.msra.mxu0 %v3732_v38  ;;  %v3792_v38 = vld [vmem:[#allocation5 + $0x600] sm:$0xff]  }
  0xdb   :  { %3420 = vmatpush3.bf16.msra.mxu1 %v3733_v39  ;;  %3399 = vmatprep.subr.bf16.mxu0 %v3734_v40  ;;  %v3793_v39 = vld [vmem:[#allocation5 + $0x680] sm:$0xff]   ;;  %v3794_v40 = vld [vmem:[#allocation5 + $0x648] sm:$0xff]  }
  0xdc   :  { %3421 = vmatprep.subr.bf16.mxu1 %v3735_v41  ;;  %v3795_v41 = vld [vmem:[#allocation5 + $0x6c8] sm:$0xff]  }
  0xde   :  { %3400 = vmatpush3.bf16.msra.mxu0 %v3736_v42  ;;  %v3796_v42 = vld [vmem:[#allocation5 + $0x608] sm:$0xff]  }
  0xdf   :  { %3422 = vmatpush3.bf16.msra.mxu1 %v3737_v43  ;;  %3401 = vmatprep.subr.bf16.mxu0 %v3738_v44  ;;  %v3797_v43 = vld [vmem:[#allocation5 + $0x688] sm:$0xff]   ;;  %v3798_v44 = vld [vmem:[#allocation5 + $0x650] sm:$0xff]  }
  0xe0   :  { %3423 = vmatprep.subr.bf16.mxu1 %v3739_v45  ;;  %v3799_v45 = vld [vmem:[#allocation5 + $0x6d0] sm:$0xff]  }
  0xe2   :  { %3402 = vmatpush3.bf16.msra.mxu0 %v3740_v46  ;;  %v3800_v46 = vld [vmem:[#allocation5 + $0x610] sm:$0xff]  }
  0xe3   :  { %3424 = vmatpush3.bf16.msra.mxu1 %v3741_v47  ;;  %3403 = vmatprep.subr.bf16.mxu0 %v3742_v48  ;;  %v3801_v47 = vld [vmem:[#allocation5 + $0x690] sm:$0xff]   ;;  %v3802_v48 = vld [vmem:[#allocation5 + $0x658] sm:$0xff]  }
  0xe4   :  { %3425 = vmatprep.subr.bf16.mxu1 %v3743_v49  ;;  %v3803_v49 = vld [vmem:[#allocation5 + $0x6d8] sm:$0xff]  }
  0xe6   :  { %3404 = vmatpush3.bf16.msra.mxu0 %v3744_v50  ;;  %v3804_v50 = vld [vmem:[#allocation5 + $0x618] sm:$0xff]  }
  0xe7   :  { %3426 = vmatpush3.bf16.msra.mxu1 %v3745_v51  ;;  %3405 = vmatprep.subr.bf16.mxu0 %v3746_v52  ;;  %v3805_v51 = vld [vmem:[#allocation5 + $0x698] sm:$0xff]   ;;  %v3806_v52 = vld [vmem:[#allocation5 + $0x660] sm:$0xff]  }
  0xe8   :  { %3427 = vmatprep.subr.bf16.mxu1 %v3747_v53  ;;  %v3807_v53 = vld [vmem:[#allocation5 + $0x6e0] sm:$0xff]  }
  0xea   :  { %3406 = vmatpush3.bf16.msra.mxu0 %v3748_v54  ;;  %v3808_v54 = vld [vmem:[#allocation5 + $0x620] sm:$0xff]  }
  0xeb   :  { %3428 = vmatpush3.bf16.msra.mxu1 %v3749_v55  ;;  %3435 = vmatprep.subr.bf16.mxu0 %v3754_v62  ;;  %v3809_v55 = vld [vmem:[#allocation5 + $0x6a0] sm:$0xff]   ;;  %v3816_v62 = vld [vmem:[#allocation5 + $0x630] sm:$0xff]  }
  0xec   :  { %3457 = vmatprep.subr.bf16.mxu1 %v3755_v63  ;;  %v3817_v63 = vld [vmem:[#allocation5 + $0x6b0] sm:$0xff]  }
  0xed   :  { %2597 = vmatmul.mubr.bf16.vlgmr.msra.gmra.mrb[16].mxu0 %v2941_v57  ;;  %v3811_v57 = vld [vmem:[#allocation5 + $0x6e8] sm:$0xff]  }
  0xee   :  { %2637 = vmatmul.mubr.bf16.vlgmr.msra.gmra.mrb[16].mxu1 %v2943_v60  ;;  %3436 = vmatpush3.bf16.msra.mxu0 %v3756_v0  ;;  %v3814_v60 = vld [vmem:[#allocation5 + $0x670] sm:$0xff]   ;;  %v3818_v0 = vld [vmem:[#allocation5 + $0x678] sm:$0xff]  }
  0xef   :  { %3458 = vmatpush3.bf16.msra.mxu1 %v3757_v1  ;;  %3437 = vmatprep.subr.bf16.mxu0 %v3758_v2  ;;  %v3819_v1 = vld [vmem:[#allocation5 + $0x6f8] sm:$0xff]  }
  0xf0   :  { %3459 = vmatprep.subr.bf16.mxu1 %v3759_v3  ;;  %2676 = vmatprep.mubr.bf16.mxu0 %v2946_v33  ;;  %v3820_v2 = vld [vmem:[#allocation5 + $0x638] sm:$0xff]   ;;  %v3846_v33 = vld [vmem:[#allocation5 + $0x768] sm:$0xff]  }
  0xf1   :  { %2716 = vmatprep.mubr.bf16.mxu1 %v2948_v35  ;;  %v3821_v3 = vld [vmem:[#allocation5 + $0x6b8] sm:$0xff]  }
  0xf2   :  { %3438 = vmatpush3.bf16.msra.mxu0 %v3760_v4  ;;  %v80_v4 = vld [vmem:[#allocation2 + $0x60] sm:$0xff] }
  0xf3   :  { %3460 = vmatpush3.bf16.msra.mxu1 %v3761_v5  ;;  %3439 = vmatprep.subr.bf16.mxu0 %v3762_v6  ;;  %v81_v5 = vld [vmem:[#allocation2 + $0x68] sm:$0xff]  ;;  %v2949_v6 = vcombine.low %v80_v4, %v80_v4 }
  0xf4   :  { %3461 = vmatprep.subr.bf16.mxu1 %v3763_v7  ;;  %v2950_v7 = vcombine.high %v80_v4, %v80_v4 }
  0xf6   :  { %3440 = vmatpush3.bf16.msra.mxu0 %v3764_v8  ;;  %v2951_v8 = vcombine.low %v81_v5, %v81_v5 }
  0xf7   :  { %3462 = vmatpush3.bf16.msra.mxu1 %v3765_v9  ;;  %3441 = vmatprep.subr.bf16.mxu0 %v3766_v10  ;;  %v3826_v9 = vld [vmem:[#allocation5 + $0x740] sm:$0xff]   ;;  %v2952_v10 = vcombine.high %v81_v5, %v81_v5 }
  0xf8   :  { %3463 = vmatprep.subr.bf16.mxu1 %v3767_v11  ;;  %v3827_v11 = vld [vmem:[#allocation5 + $0x7c0] sm:$0xff]  }
  0xfa   :  { %3442 = vmatpush3.bf16.msra.mxu0 %v3768_v12  ;;  %v3828_v12 = vld [vmem:[#allocation5 + $0x700] sm:$0xff]  }
  0xfb   :  { %3464 = vmatpush3.bf16.msra.mxu1 %v3769_v13  ;;  %3443 = vmatprep.subr.bf16.mxu0 %v3770_v14  ;;  %v3829_v13 = vld [vmem:[#allocation5 + $0x780] sm:$0xff]   ;;  %v3830_v14 = vld [vmem:[#allocation5 + $0x748] sm:$0xff]  }
  0xfc   :  { %3465 = vmatprep.subr.bf16.mxu1 %v3771_v15  ;;  %v3831_v15 = vld [vmem:[#allocation5 + $0x7c8] sm:$0xff]  }
  0xfe   :  { %3444 = vmatpush3.bf16.msra.mxu0 %v3772_v16  ;;  %v3832_v16 = vld [vmem:[#allocation5 + $0x708] sm:$0xff]  }
  0xff   :  { %3466 = vmatpush3.bf16.msra.mxu1 %v3773_v17  ;;  %3445 = vmatprep.subr.bf16.mxu0 %v3774_v18  ;;  %v3833_v17 = vld [vmem:[#allocation5 + $0x788] sm:$0xff]   ;;  %v3834_v18 = vld [vmem:[#allocation5 + $0x750] sm:$0xff]  }
 0x100   :  { %3467 = vmatprep.subr.bf16.mxu1 %v3775_v19  ;;  %v3835_v19 = vld [vmem:[#allocation5 + $0x7d0] sm:$0xff]  }
 0x102   :  { %3446 = vmatpush3.bf16.msra.mxu0 %v3776_v20  ;;  %v3836_v20 = vld [vmem:[#allocation5 + $0x710] sm:$0xff]  }
 0x103   :  { %3468 = vmatpush3.bf16.msra.mxu1 %v3777_v21  ;;  %3447 = vmatprep.subr.bf16.mxu0 %v3778_v22  ;;  %v3837_v21 = vld [vmem:[#allocation5 + $0x790] sm:$0xff]   ;;  %v3838_v22 = vld [vmem:[#allocation5 + $0x758] sm:$0xff]  }
 0x104   :  { %3469 = vmatprep.subr.bf16.mxu1 %v3779_v23  ;;  %v3839_v23 = vld [vmem:[#allocation5 + $0x7d8] sm:$0xff]  }
 0x106   :  { %3448 = vmatpush3.bf16.msra.mxu0 %v3780_v24  ;;  %v3840_v24 = vld [vmem:[#allocation5 + $0x718] sm:$0xff]  }
 0x107   :  { %3470 = vmatpush3.bf16.msra.mxu1 %v3781_v25  ;;  %3449 = vmatprep.subr.bf16.mxu0 %v3782_v26  ;;  %v3841_v25 = vld [vmem:[#allocation5 + $0x798] sm:$0xff]   ;;  %v3842_v26 = vld [vmem:[#allocation5 + $0x760] sm:$0xff]  }
 0x108   :  { %3471 = vmatprep.subr.bf16.mxu1 %v3783_v27  ;;  %v3843_v27 = vld [vmem:[#allocation5 + $0x7e0] sm:$0xff]  }
 0x10a   :  { %3450 = vmatpush3.bf16.msra.mxu0 %v3784_v28  ;;  %v3844_v28 = vld [vmem:[#allocation5 + $0x720] sm:$0xff]  }
 0x10b   :  { %3472 = vmatpush3.bf16.msra.mxu1 %v3785_v29  ;;  %3479 = vmatprep.subr.bf16.mxu0 %v3790_v36  ;;  %v3847_v36 = vld [vmem:[#allocation5 + $0x7e8] sm:$0xff]  }
 0x10c   :  { %3501 = vmatprep.subr.bf16.mxu1 %v3791_v37 }
 0x10d   :  { %2677 = vmatmul.mubr.bf16.vlgmr.msra.gmra.mrb[20].mxu0 %v2945_v32 }
 0x10e   :  { %2717 = vmatmul.mubr.bf16.vlgmr.msra.gmra.mrb[20].mxu1 %v2947_v34  ;;  %3480 = vmatpush3.bf16.msra.mxu0 %v3792_v38 }
 0x10f   :  { %3502 = vmatpush3.bf16.msra.mxu1 %v3793_v39  ;;  %3481 = vmatprep.subr.bf16.mxu0 %v3794_v40  ;;  %v3848_v40 = vld [vmem:[#allocation5 + $0x728] sm:$0xff]  }
 0x110   :  { %3503 = vmatprep.subr.bf16.mxu1 %v3795_v41  ;;  %2756 = vmatprep.mubr.bf16.mxu0 %v2950_v7 }
 0x111   :  { %2796 = vmatprep.mubr.bf16.mxu1 %v2952_v10 }
 0x112   :  { %3482 = vmatpush3.bf16.msra.mxu0 %v3796_v42 }
 0x113   :  { %3504 = vmatpush3.bf16.msra.mxu1 %v3797_v43  ;;  %3483 = vmatprep.subr.bf16.mxu0 %v3798_v44  ;;  %v3849_v43 = vld [vmem:[#allocation5 + $0x7a8] sm:$0xff]  }
 0x114   :  { %3505 = vmatprep.subr.bf16.mxu1 %v3799_v45  ;;  %v3850_v45 = vld [vmem:[#allocation5 + $0x770] sm:$0xff]  }
 0x116   :  { %3484 = vmatpush3.bf16.msra.mxu0 %v3800_v46  ;;  %v3851_v46 = vld [vmem:[#allocation5 + $0x7f0] sm:$0xff]  }
 0x117   :  { %3506 = vmatpush3.bf16.msra.mxu1 %v3801_v47  ;;  %3485 = vmatprep.subr.bf16.mxu0 %v3802_v48  ;;  %v3852_v47 = vld [vmem:[#allocation5 + $0x730] sm:$0xff]  }
 0x118   :  { %3507 = vmatprep.subr.bf16.mxu1 %v3803_v49  ;;  %v3853_v48 = vld [vmem:[#allocation5 + $0x7b0] sm:$0xff]   ;;  %v3854_v49 = vld [vmem:[#allocation5 + $0x778] sm:$0xff]  }
 0x11a   :  { %3486 = vmatpush3.bf16.msra.mxu0 %v3804_v50  ;;  %v3855_v50 = vld [vmem:[#allocation5 + $0x7f8] sm:$0xff]  }
 0x11b   :  { %3508 = vmatpush3.bf16.msra.mxu1 %v3805_v51  ;;  %3487 = vmatprep.subr.bf16.mxu0 %v3806_v52  ;;  %v3856_v51 = vld [vmem:[#allocation5 + $0x738] sm:$0xff]  }
 0x11c   :  { %3509 = vmatprep.subr.bf16.mxu1 %v3807_v53  ;;  %v3857_v52 = vld [vmem:[#allocation5 + $0x7b8] sm:$0xff]   ;;  %v82_v53 = vld [vmem:[#allocation2 + $0x70] sm:$0xff] }
 0x11e   :  { %3488 = vmatpush3.bf16.msra.mxu0 %v3808_v54  ;;  %v83_v54 = vld [vmem:[#allocation2 + $0x78] sm:$0xff] }
 0x11f   :  { %3510 = vmatpush3.bf16.msra.mxu1 %v3809_v55  ;;  %3489 = vmatprep.subr.bf16.mxu0 %v3810_v56  ;;  %v2953_v55 = vcombine.low %v82_v53, %v82_v53  ;;  %v2954_v56 = vcombine.high %v82_v53, %v82_v53 }
 0x120   :  { %3511 = vmatprep.subr.bf16.mxu1 %v3811_v57  ;;  %v2955_v57 = vcombine.low %v83_v54, %v83_v54 }
 0x122   :  { %3490 = vmatpush3.bf16.msra.mxu0 %v3812_v58  ;;  %v2956_v58 = vcombine.high %v83_v54, %v83_v54 }
 0x123   :  { %3512 = vmatpush3.bf16.msra.mxu1 %v3813_v59  ;;  %3491 = vmatprep.subr.bf16.mxu0 %v3814_v60 }
 0x124   :  { %3513 = vmatprep.subr.bf16.mxu1 %v3815_v61 }
 0x126   :  { %3492 = vmatpush3.bf16.msra.mxu0 %v3816_v62 }
 0x127   :  { %3514 = vmatpush3.bf16.msra.mxu1 %v3817_v63  ;;  %3493 = vmatprep.subr.bf16.mxu0 %v3818_v0 }
 0x128   :  { %3515 = vmatprep.subr.bf16.mxu1 %v3819_v1 }
 0x12a   :  { %3494 = vmatpush3.bf16.msra.mxu0 %v3820_v2 }
 0x12b   :  { %3516 = vmatpush3.bf16.msra.mxu1 %v3821_v3  ;;  %3523 = vmatprep.subr.bf16.mxu0 %v3826_v9 }
 0x12c   :  { %3545 = vmatprep.subr.bf16.mxu1 %v3827_v11 }
 0x12d   :  { %2757 = vmatmul.mubr.bf16.vlgmr.msra.gmra.mrb[24].mxu0 %v2949_v6 }
 0x12e   :  { %2797 = vmatmul.mubr.bf16.vlgmr.msra.gmra.mrb[24].mxu1 %v2951_v8  ;;  %3524 = vmatpush3.bf16.msra.mxu0 %v3828_v12 }
 0x12f   :  { %3546 = vmatpush3.bf16.msra.mxu1 %v3829_v13  ;;  %3525 = vmatprep.subr.bf16.mxu0 %v3830_v14 }
 0x130   :  { %3547 = vmatprep.subr.bf16.mxu1 %v3831_v15  ;;  %2836 = vmatprep.mubr.bf16.mxu0 %v2954_v56 }
 0x131   :  { %2876 = vmatprep.mubr.bf16.mxu1 %v2956_v58 }
 0x132   :  { %3526 = vmatpush3.bf16.msra.mxu0 %v3832_v16 }
 0x133   :  { %3548 = vmatpush3.bf16.msra.mxu1 %v3833_v17  ;;  %3527 = vmatprep.subr.bf16.mxu0 %v3834_v18 }
 0x134   :  { %3549 = vmatprep.subr.bf16.mxu1 %v3835_v19 }
 0x136   :  { %3528 = vmatpush3.bf16.msra.mxu0 %v3836_v20 }
 0x137   :  { %3550 = vmatpush3.bf16.msra.mxu1 %v3837_v21  ;;  %3529 = vmatprep.subr.bf16.mxu0 %v3838_v22 }
 0x138   :  { %3551 = vmatprep.subr.bf16.mxu1 %v3839_v23 }
 0x13a   :  { %3530 = vmatpush3.bf16.msra.mxu0 %v3840_v24 }
 0x13b   :  { %3552 = vmatpush3.bf16.msra.mxu1 %v3841_v25  ;;  %3531 = vmatprep.subr.bf16.mxu0 %v3842_v26 }
 0x13c   :  { %3553 = vmatprep.subr.bf16.mxu1 %v3843_v27 }
 0x13e   :  { %3532 = vmatpush3.bf16.msra.mxu0 %v3844_v28 }
 0x13f   :  { %3554 = vmatpush3.bf16.msra.mxu1 %v3845_v30  ;;  %3533 = vmatprep.subr.bf16.mxu0 %v3846_v33 }
 0x140   :  { %v3231_v29 = vpop.f32.mrb[0].mxu0  ;;  %3555 = vmatprep.subr.bf16.mxu1 %v3847_v36 }
 0x141   :  { %v3253_v31 = vpop.f32.mrb[0].mxu1  ;;  %v3232_v32 = vpop.f32.mrb[1].mxu0 }
 0x142   :  { %v3233_v34 = vadd.f32 %v3232_v32, %v3231_v29  ;;  %v3254_v35 = vpop.f32.mrb[1].mxu1  ;;  %v3234_v38 = vpop.f32.mrb[2].mxu0  ;;  %3534 = vmatpush3.bf16.msra.mxu0 %v3848_v40 }
 0x143   :  { %v3255_v37 = vadd.f32 %v3254_v35, %v3253_v31  ;;  %v3256_v39 = vpop.f32.mrb[2].mxu1  ;;  %v3235_v41 = vpop.f32.mrb[3].mxu0  ;;  %3556 = vmatpush3.bf16.msra.mxu1 %v3849_v43  ;;  %3535 = vmatprep.subr.bf16.mxu0 %v3850_v45 }
 0x144   :  { %v3257_v44 = vpop.f32.mrb[3].mxu1  ;;  %3557 = vmatprep.subr.bf16.mxu1 %v3851_v46 }
 0x145   :  { %v2319_v42 = vadd.f32 %v3255_v37, %v3233_v34 }
 0x146   :  { %3536 = vmatpush3.bf16.msra.mxu0 %v3852_v47 }
 0x147   :  { %3558 = vmatpush3.bf16.msra.mxu1 %v3853_v48  ;;  %3537 = vmatprep.subr.bf16.mxu0 %v3854_v49 }
 0x148   :  { %3559 = vmatprep.subr.bf16.mxu1 %v3855_v50 }
 0x14a   :  { %3538 = vmatpush3.bf16.msra.mxu0 %v3856_v51 }
 0x14b   :  { %3560 = vmatpush3.bf16.msra.mxu1 %v3857_v52 }
 0x14d   :  { %2837 = vmatmul.mubr.bf16.vlgmr.msra.gmra.mrb[28].mxu0 %v2953_v55 }
 0x14e   :  { %2877 = vmatmul.mubr.bf16.vlgmr.msra.gmra.mrb[28].mxu1 %v2955_v57 }
 0x160   :  { %v3275_v59 = vpop.f32.mrb[4].mxu0 }
 0x161   :  { %v3297_v60 = vpop.f32.mrb[4].mxu1  ;;  %v3276_v61 = vpop.f32.mrb[5].mxu0 }
 0x162   :  { %v3298_v62 = vpop.f32.mrb[5].mxu1  ;;  %v3277_v63 = vadd.f32 %v3276_v61, %v3275_v59  ;;  %v3278_v1 = vpop.f32.mrb[6].mxu0 }
 0x163   :  { %v3299_v0 = vadd.f32 %v3298_v62, %v3297_v60  ;;  %v3300_v2 = vpop.f32.mrb[6].mxu1  ;;  %v3279_v3 = vpop.f32.mrb[7].mxu0 }
 0x164   :  { %v3301_v4 = vpop.f32.mrb[7].mxu1  ;;  %v2359_v5 = vadd.f32 %v3277_v63, %v2319_v42 }
 0x166   :  { %v2399_v6 = vadd.f32 %v3299_v0, %v2359_v5 }
 0x180   :  { %v3319_v7 = vpop.f32.mrb[8].mxu0 }
 0x181   :  { %v3341_v8 = vpop.f32.mrb[8].mxu1  ;;  %v3320_v9 = vpop.f32.mrb[9].mxu0 }
 0x182   :  { %v3321_v10 = vadd.f32 %v3320_v9, %v3319_v7  ;;  %v3342_v11 = vpop.f32.mrb[9].mxu1  ;;  %v3322_v12 = vpop.f32.mrb[10].mxu0 }
 0x183   :  { %v3343_v13 = vadd.f32 %v3342_v11, %v3341_v8  ;;  %v3344_v14 = vpop.f32.mrb[10].mxu1  ;;  %v3323_v15 = vpop.f32.mrb[11].mxu0 }
 0x184   :  { %v2439_v16 = vadd.f32 %v3321_v10, %v2399_v6  ;;  %v3345_v17 = vpop.f32.mrb[11].mxu1  ;;  %v3213_v14 = vld [vmem:[#allocation7] ss:$0 sm:$0xff] }
 0x186   :  { %v2479_v18 = vadd.f32 %v3343_v13, %v2439_v16  ;;  %v3214_v16 = vld [vmem:[#allocation8] ss:$0 sm:$0xff] }
 0x1a0   :  { %v3363_v19 = vpop.f32.mrb[12].mxu0 }
 0x1a1   :  { %v3385_v20 = vpop.f32.mrb[12].mxu1  ;;  %v3364_v21 = vpop.f32.mrb[13].mxu0 }
 0x1a2   :  { %v3365_v22 = vadd.f32 %v3364_v21, %v3363_v19  ;;  %v3386_v23 = vpop.f32.mrb[13].mxu1  ;;  %v3366_v24 = vpop.f32.mrb[14].mxu0 }
 0x1a3   :  { %v3387_v25 = vadd.f32 %v3386_v23, %v3385_v20  ;;  %v3388_v26 = vpop.f32.mrb[14].mxu1  ;;  %v3367_v27 = vpop.f32.mrb[15].mxu0 }
 0x1a4   :  { %v2519_v28 = vadd.f32 %v3365_v22, %v2479_v18  ;;  %v3389_v29 = vpop.f32.mrb[15].mxu1 }
 0x1a6   :  { %v2559_v30 = vadd.f32 %v3387_v25, %v2519_v28 }
 0x1c0   :  { %v3407_v31 = vpop.f32.mrb[16].mxu0 }
 0x1c1   :  { %v3429_v32 = vpop.f32.mrb[16].mxu1  ;;  %v3408_v33 = vpop.f32.mrb[17].mxu0 }
 0x1c2   :  { %v3430_v34 = vpop.f32.mrb[17].mxu1  ;;  %v3409_v35 = vadd.f32 %v3408_v33, %v3407_v31  ;;  %v3410_v37 = vpop.f32.mrb[18].mxu0 }
 0x1c3   :  { %v3431_v36 = vadd.f32 %v3430_v34, %v3429_v32  ;;  %v3432_v38 = vpop.f32.mrb[18].mxu1  ;;  %v3411_v39 = vpop.f32.mrb[19].mxu0 }
 0x1c4   :  { %v3433_v40 = vpop.f32.mrb[19].mxu1  ;;  %v2599_v41 = vadd.f32 %v3409_v35, %v2559_v30 }
 0x1c6   :  { %v2639_v42 = vadd.f32 %v3431_v36, %v2599_v41 }
 0x1e0   :  { %v3451_v43 = vpop.f32.mrb[20].mxu0 }
 0x1e1   :  { %v3473_v44 = vpop.f32.mrb[20].mxu1  ;;  %v3452_v45 = vpop.f32.mrb[21].mxu0 }
 0x1e2   :  { %v3453_v46 = vadd.f32 %v3452_v45, %v3451_v43  ;;  %v3474_v47 = vpop.f32.mrb[21].mxu1  ;;  %v3454_v48 = vpop.f32.mrb[22].mxu0 }
 0x1e3   :  { %v3475_v49 = vadd.f32 %v3474_v47, %v3473_v44  ;;  %v3476_v50 = vpop.f32.mrb[22].mxu1  ;;  %v3455_v51 = vpop.f32.mrb[23].mxu0 }
 0x1e4   :  { %v2679_v52 = vadd.f32 %v3453_v46, %v2639_v42  ;;  %v3477_v53 = vpop.f32.mrb[23].mxu1 }
 0x1e6   :  { %v2719_v54 = vadd.f32 %v3475_v49, %v2679_v52 }
 0x200   :  { %v3495_v55 = vpop.f32.mrb[24].mxu0 }
 0x201   :  { %v3517_v56 = vpop.f32.mrb[24].mxu1  ;;  %v3496_v57 = vpop.f32.mrb[25].mxu0 }
 0x202   :  { %v3497_v58 = vadd.f32 %v3496_v57, %v3495_v55  ;;  %v3518_v59 = vpop.f32.mrb[25].mxu1  ;;  %v3498_v60 = vpop.f32.mrb[26].mxu0 }
 0x203   :  { %v3519_v61 = vadd.f32 %v3518_v59, %v3517_v56  ;;  %v3520_v62 = vpop.f32.mrb[26].mxu1  ;;  %v3499_v63 = vpop.f32.mrb[27].mxu0 }
 0x204   :  { %v2759_v0 = vadd.f32 %v3497_v58, %v2719_v54  ;;  %v3521_v1 = vpop.f32.mrb[27].mxu1 }
 0x206   :  { %v2799_v2 = vadd.f32 %v3519_v61, %v2759_v0 }
 0x220   :  { %v3539_v3 = vpop.f32.mrb[28].mxu0 }
 0x221   :  { %v3561_v4 = vpop.f32.mrb[28].mxu1  ;;  %v3540_v5 = vpop.f32.mrb[29].mxu0 }
 0x222   :  { %v3541_v6 = vadd.f32 %v3540_v5, %v3539_v3  ;;  %v3562_v7 = vpop.f32.mrb[29].mxu1  ;;  %v3542_v8 = vpop.f32.mrb[30].mxu0 }
 0x223   :  { %v3563_v9 = vadd.f32 %v3562_v7, %v3561_v4  ;;  %v3564_v10 = vpop.f32.mrb[30].mxu1  ;;  %v3543_v11 = vpop.f32.mrb[31].mxu0 }
 0x224   :  { %v2839_v12 = vadd.f32 %v3541_v6, %v2799_v2  ;;  %v3565_v13 = vpop.f32.mrb[31].mxu1 }
 0x226   :  { %v2879_v15 = vadd.f32 %v3563_v9, %v2839_v12 }
 0x228   :  { %v2891_v17 = vmul.f32 %v3213_v14, %v2879_v15 }
 0x22a   :  { %v2899_v18 = vadd.f32 %v3214_v16, %v2891_v17 }
 0x22c   :  { %v2900_v19 = vsub.f32 0.0, %v2899_v18 }
 0x22e   :  { %v2901_v20 = vmul.f32 1.442695, %v2900_v19 }
 0x230   :  { %3862 = vpow2.f32 %v2901_v20 }
 0x23a   :  { %v3863_v21 = vpop.eup %3862 }
 0x23b   :  { %v2903_v22 = vadd.f32 1.0, %v3863_v21 }
 0x23d   :  { %3864 = vrcp.f32 %v2903_v22 }
 0x247   :  { %v3865_v23 = vpop.eup %3864 }
 0x248   :  { %v2905_v24 = vmax.f32 %v3865_v23, 0.0 }
 0x24a   :  { %v2906_v25 = vmin.f32 %v2905_v24, 1.0 }
 0x24c   :  { %2907 = vst [vmem:[#allocation10] sm:$0xff] %v2906_v25 }
 0x24d   :  { %3965 = shalt.err (!%p3962_p8)
}
 0x24e   :  { %s3966_s15 = scalar_lea.hbm %s4080_s4, 128 }
 0x24f   :  { %p3967_p9 = scmp.ne.s32.totalorder %s4080_s4, %s3966_s15  ;;  %p3970_p10 = scmp.lt.u32.totalorder %s3966_s15, %s4080_s4 }
 0x251   :  { %p3972_p11 = pnand %p3970_p10, %p3967_p9 }
 0x253   :  { %3975 = shalt.err (!%p3972_p11)
}
 0x254   :  { %2917 = dma.vmem_to_hbm [thread:$0]  %s2915_s12, 128, %s4080_s4, [#allocation4]  }
 0x255   :  { %3982 = dma.done.wait [#allocation4], 128  }
 0x256   :  { %3983 = vsyncadd [#allocation4], 4294967168 }
 0x257   :  { %2921 = vsyncpa [#allocation3], 1 }
 0x258   :  { %2922 = vsyncpa [#allocation6], 1 }
 0x259   :  { %2923 = vsyncpa [#allocation9], 1 }
 0x25a   :  { %2924 = vsyncpa [#allocation4], 1 }

</bundles_post_ra>
